<compile_context>
chip_gen: v7x
topology: tpu7x:2x2x1
jax: 0.10.0
libtpu: 0.0.40
codegen_flags: <defaults>
</compile_context>

<pallas_src>
import math
from functools import partial

import jax
import jax.numpy as jnp
from jax import lax
from jax.experimental import pallas as pl
from jax.experimental.pallas import tpu as pltpu


# ---------------------------------------------------------------- utilities

def _tile(dim, target):
    """Use `target` if it cleanly divides `dim`, else fall back to the full dim."""
    return target if (dim > target and dim % target == 0) else dim


def _fit(dim, target):
    """Tile size plus zero-padded extent so the tile always divides the padded dim."""
    t = min(target, dim)
    padded = ((dim + t - 1) // t) * t
    return t, padded


# ------------------------------------------------------------- tiled matmul

def _mm_kernel(*refs, transpose_rhs, relu, has_bias, has_acc):
    if has_bias:
        x_ref, w_ref, b_ref, o_ref = refs[0], refs[1], refs[2], refs[3]
        rest = refs[4:]
    else:
        x_ref, w_ref, o_ref = refs[0], refs[1], refs[2]
        b_ref = None
        rest = refs[3:]
    # f32 output accumulates straight into o_ref (frees the scratch); bf16 keeps a scratch.
    acc_ref = rest[0] if has_acc else o_ref

    @pl.when(pl.program_id(2) == 0)
    def _():
        acc_ref[...] = jnp.zeros_like(acc_ref)

    dn = (((1,), (1,)), ((), ())) if transpose_rhs else (((1,), (0,)), ((), ()))
    acc_ref[...] += lax.dot_general(x_ref[...], w_ref[...], dn,
                                    preferred_element_type=jnp.float32)

    @pl.when(pl.program_id(2) == pl.num_programs(2) - 1)
    def _():
        r = acc_ref[...]
        if has_bias:
            r = r + b_ref[...]
        if relu:
            r = jnp.maximum(r, 0.0)
        o_ref[...] = r.astype(o_ref.dtype)


def linear_pallas(x, w, b=None, relu=False, transpose_rhs=False,
                  out_dtype=jnp.bfloat16, tm=512, tn=512, tk=512):
    """y = x @ w (+ b)(+ relu).  x: (M, K).  w: (K, N), or (N, K) if transpose_rhs.
    bf16 MXU operands, f32 accumulation, M/N/K zero-padded to tile multiples so large
    dims (e.g. the tied vocab head) never fall back to a single VMEM-busting tile."""
    M, K = x.shape
    N = w.shape[0] if transpose_rhs else w.shape[1]
    tm, Mp = _fit(M, tm)
    tn, Np = _fit(N, tn)
    tk, Kp = _fit(K, tk)

    xb = x.astype(jnp.bfloat16)
    wb = w.astype(jnp.bfloat16)
    if (Mp, Kp) != (M, K):
        xb = jnp.pad(xb, ((0, Mp - M), (0, Kp - K)))
    if transpose_rhs:
        # tied-head path: contract against emb_table's last dim directly (no .T copy in HBM)
        if (Np, Kp) != (N, K):
            wb = jnp.pad(wb, ((0, Np - N), (0, Kp - K)))
        w_spec = pl.BlockSpec((tn, tk), lambda i, j, kk: (j, kk))
    else:
        if (Kp, Np) != (K, N):
            wb = jnp.pad(wb, ((0, Kp - K), (0, Np - N)))
        w_spec = pl.BlockSpec((tk, tn), lambda i, j, kk: (kk, j))

    x_spec = pl.BlockSpec((tm, tk), lambda i, j, kk: (i, kk))
    o_spec = pl.BlockSpec((tm, tn), lambda i, j, kk: (i, j))
    grid = (Mp // tm, Np // tn, Kp // tk)
    has_acc = out_dtype != jnp.float32
    scratch = [pltpu.VMEM((tm, tn), jnp.float32)] if has_acc else []

    args = [xb, wb]
    in_specs = [x_spec, w_spec]
    has_bias = b is not None
    if has_bias:
        b2 = b.reshape(1, N).astype(jnp.float32)
        if Np != N:
            b2 = jnp.pad(b2, ((0, 0), (0, Np - N)))
        args.append(b2)
        in_specs.append(pl.BlockSpec((1, tn), lambda i, j, kk: (0, j)))

    out = pl.pallas_call(
        partial(_mm_kernel, transpose_rhs=transpose_rhs, relu=relu,
                has_bias=has_bias, has_acc=has_acc),
        out_shape=jax.ShapeDtypeStruct((Mp, Np), out_dtype),
        grid=grid, in_specs=in_specs, out_specs=o_spec,
        scratch_shapes=scratch,
        compiler_params=pltpu.CompilerParams(
            dimension_semantics=("parallel", "parallel", "arbitrary")),
    )(*args)
    if (Mp, Np) != (M, N):
        out = out[:M, :N]
    return out


# --------------------------------------------------------- fused attention

def _attn_kernel(q_ref, k_ref, v_ref, p_ref, u_ref, vb_ref, o_ref, *,
                 num_heads, head_dim, seq_len, q_tile, mem_len, scale):
    S, TQ, D, H = seq_len, q_tile, head_dim, num_heads
    T = k_ref.shape[1]                                   # mem_len + S

    # hoisted out of the head loop: bias adds + bf16 casts on the full (TQ, HD) tile
    q = q_ref[0].astype(jnp.float32)
    qu = (q + u_ref[...]).astype(jnp.bfloat16)
    qv = (q + vb_ref[...]).astype(jnp.bfloat16)
    k = k_ref[0]                                         # (T, HD)  bf16
    v = v_ref[0]
    p = p_ref[...]                                       # (Tpad, HD) bf16 (last S rows zero)

    s0 = pl.program_id(1) * TQ
    row = lax.broadcasted_iota(jnp.int32, (TQ, T), 0) + s0
    col = lax.broadcasted_iota(jnp.int32, (TQ, T), 1)
    masked = col > row + mem_len                         # causal mask built in-kernel

    # per-row left-shift amounts for the relative shift: a[r] = S - 1 - (s0 + r)
    a = (S - 1 - s0) - lax.broadcasted_iota(jnp.int32, (TQ, 1), 0)
    nbits = (S - 1).bit_length()
    shift_take = [(a & (1 << bit)) != 0 for bit in range(nbits)]

    for h in range(H):
        lo, hi = h * D, (h + 1) * D
        quh, qvh = qu[:, lo:hi], qv[:, lo:hi]
        kh, vh, ph = k[:, lo:hi], v[:, lo:hi], p[:, lo:hi]

        content = lax.dot_general(quh, kh, (((1,), (1,)), ((), ())),
                                  preferred_element_type=jnp.float32)      # (TQ, T)
        raw = lax.dot_general(qvh, ph, (((1,), (1,)), ((), ())),
                              preferred_element_type=jnp.float32)          # (TQ, Tpad)

        # relative shift: pos[r, t] = raw[r, t + (S - 1 - (s0 + r))]
        # O(log S) whole-tile zero-fill lane shifts + per-row selects (no per-row slices).
        cur = raw
        for bit in range(nbits):
            c = 1 << bit
            shifted = jnp.concatenate(
                [cur[:, c:], jnp.zeros((TQ, c), cur.dtype)], axis=1)
            cur = jnp.where(shift_take[bit], shifted, cur)
        pos = cur[:, :T]

        att = (content + pos) * scale
        att = jnp.where(masked, -1e30, att)
        m = jnp.max(att, axis=-1, keepdims=True)
        e = jnp.exp(att - m)
        pr = e * pl.reciprocal(jnp.sum(e, axis=-1, keepdims=True), approx=True)
        outh = lax.dot_general(pr.astype(jnp.bfloat16), vh,
                               (((1,), (0,)), ((), ())),
                               preferred_element_type=jnp.float32)         # (TQ, D)
        o_ref[0, :, lo:hi] = outh.astype(o_ref.dtype)   # lane-dense block per grid step


def attention_pallas(qkv, p_pad, u2, v2, *, num_heads, head_dim, mem_len, scale,
                     q_tile=256):
    """Fused relative multi-head attention.

    qkv:   (B, S, 3*H*D) bf16 — q|k|v packed on the lane axis; read via lane-block
           index maps (no HBM slice copies).
    p_pad: (T + S, H*D) bf16  — positional projection, S zero rows appended so the
           rel-shift window is always in range (padded entries contribute exactly 0).
    u2,v2: (1, H*D) f32       — content / position biases.
    """
    B, S, HD3 = qkv.shape
    HD = HD3 // 3
    T = mem_len + S
    Tpad = p_pad.shape[0]
    TQ = _tile(S, q_tile)
    # TODO(synk): for very long S, add flash-style online-softmax KV tiling instead of
    #             holding the full (T, HD) k/v and (TQ, T) scores per step.

    kernel = partial(_attn_kernel, num_heads=num_heads, head_dim=head_dim,
                     seq_len=S, q_tile=TQ, mem_len=mem_len, scale=scale)
    return pl.pallas_call(
        kernel,
        out_shape=jax.ShapeDtypeStruct((B, S, HD), jnp.bfloat16),
        grid=(B, S // TQ),
        in_specs=[pl.BlockSpec((1, TQ, HD), lambda b, qi: (b, qi, 0)),   # q
                  pl.BlockSpec((1, T, HD), lambda b, qi: (b, 0, 1)),     # k
                  pl.BlockSpec((1, T, HD), lambda b, qi: (b, 0, 2)),     # v
                  pl.BlockSpec((Tpad, HD), lambda b, qi: (0, 0)),        # rel-pos proj
                  pl.BlockSpec((1, HD), lambda b, qi: (0, 0)),           # u bias
                  pl.BlockSpec((1, HD), lambda b, qi: (0, 0))],          # v bias
        out_specs=pl.BlockSpec((1, TQ, HD), lambda b, qi: (b, qi, 0)),
        compiler_params=pltpu.CompilerParams(
            dimension_semantics=("parallel", "parallel"),
            vmem_limit_bytes=32 * 1024 * 1024),
    )(qkv, qkv, qkv, p_pad, u2, v2)


# ----------------------------------- Wfc matmul + residual + LayerNorm fused

def _fc_res_ln_kernel(x_ref, w_ref, res_ref, g_ref, b_ref, o_ref, acc_ref, *, eps):
    @pl.when(pl.program_id(1) == 0)
    def _():
        acc_ref[...] = jnp.zeros_like(acc_ref)

    acc_ref[...] += lax.dot_general(x_ref[...], w_ref[...],
                                    (((1,), (0,)), ((), ())),
                                    preferred_element_type=jnp.float32)

    @pl.when(pl.program_id(1) == pl.num_programs(1) - 1)
    def _():
        y = acc_ref[...] + res_ref[...].astype(jnp.float32)
        mean = jnp.mean(y, axis=-1, keepdims=True)
        yc = y - mean
        var = jnp.mean(yc * yc, axis=-1, keepdims=True)
        o_ref[...] = (yc * lax.rsqrt(var + eps) * g_ref[...]
                      + b_ref[...]).astype(o_ref.dtype)


def linear_residual_ln_pallas(x, w, res, gamma, beta, eps=1e-5, tm=512, tk=512):
    """LayerNorm(x @ w + res): the attention fc projection, residual add and norm0
    fused into one kernel (the (M, E) a_out never leaves VMEM)."""
    M, K = x.shape
    E = w.shape[1]
    tm = _tile(M, tm)
    tk = _tile(K, tk)
    g2 = gamma.reshape(1, E).astype(jnp.float32)
    b2 = beta.reshape(1, E).astype(jnp.float32)

    return pl.pallas_call(
        partial(_fc_res_ln_kernel, eps=eps),
        out_shape=jax.ShapeDtypeStruct((M, E), jnp.bfloat16),
        grid=(M // tm, K // tk),
        in_specs=[pl.BlockSpec((tm, tk), lambda i, kk: (i, kk)),
                  pl.BlockSpec((tk, E), lambda i, kk: (kk, 0)),
                  pl.BlockSpec((tm, E), lambda i, kk: (i, 0)),
                  pl.BlockSpec((1, E), lambda i, kk: (0, 0)),
                  pl.BlockSpec((1, E), lambda i, kk: (0, 0))],
        out_specs=pl.BlockSpec((tm, E), lambda i, kk: (i, 0)),
        scratch_shapes=[pltpu.VMEM((tm, E), jnp.float32)],
        compiler_params=pltpu.CompilerParams(
            dimension_semantics=("parallel", "arbitrary")),
    )(x.astype(jnp.bfloat16), w.astype(jnp.bfloat16), res.astype(jnp.bfloat16),
      g2, b2)


# ----------------------------------------- fused FFN + residual + LayerNorm

def _ffn_kernel(h_ref, w1_ref, b1_ref, w2_ref, b2_ref, g_ref, be_ref, o_ref, *, eps):
    hv = h_ref[...]                                                     # (tm, E) bf16
    a = lax.dot_general(hv, w1_ref[...], (((1,), (0,)), ((), ())),
                        preferred_element_type=jnp.float32) + b1_ref[...]
    a = jnp.maximum(a, 0.0)                                             # (tm, F)
    y = lax.dot_general(a.astype(jnp.bfloat16), w2_ref[...],
                        (((1,), (0,)), ((), ())),
                        preferred_element_type=jnp.float32) + b2_ref[...]
    y = y + hv.astype(jnp.float32)                                      # residual
    mean = jnp.mean(y, axis=-1, keepdims=True)
    yc = y - mean
    var = jnp.mean(yc * yc, axis=-1, keepdims=True)
    o_ref[...] = (yc * lax.rsqrt(var + eps) * g_ref[...]
                  + be_ref[...]).astype(o_ref.dtype)


def ffn_residual_ln_pallas(h, w1, b1, w2, b2, gamma, beta, eps=1e-5, tm=256):
    """LayerNorm(relu(h @ W1 + b1) @ W2 + b2 + h); the (tm, 4E) intermediate stays in VMEM."""
    N, E = h.shape
    F = w1.shape[1]
    tm = _tile(N, tm)
    # TODO(synk): for very large E, tile the F axis (accumulate the 2nd matmul in scratch)
    #             so the resident W1/W2 stay inside v7x's 64 MiB VMEM.
    b1r = b1.reshape(1, F).astype(jnp.float32)
    b2r = b2.reshape(1, E).astype(jnp.float32)
    g2 = gamma.reshape(1, E).astype(jnp.float32)
    be2 = beta.reshape(1, E).astype(jnp.float32)

    return pl.pallas_call(
        partial(_ffn_kernel, eps=eps),
        out_shape=jax.ShapeDtypeStruct((N, E), jnp.bfloat16),
        grid=(N // tm,),
        in_specs=[pl.BlockSpec((tm, E), lambda i: (i, 0)),
                  pl.BlockSpec((E, F), lambda i: (0, 0)),
                  pl.BlockSpec((1, F), lambda i: (0, 0)),
                  pl.BlockSpec((F, E), lambda i: (0, 0)),
                  pl.BlockSpec((1, E), lambda i: (0, 0)),
                  pl.BlockSpec((1, E), lambda i: (0, 0)),
                  pl.BlockSpec((1, E), lambda i: (0, 0))],
        out_specs=pl.BlockSpec((tm, E), lambda i: (i, 0)),
        compiler_params=pltpu.CompilerParams(
            dimension_semantics=("parallel",),
            vmem_limit_bytes=32 * 1024 * 1024),
    )(h.astype(jnp.bfloat16), w1.astype(jnp.bfloat16), b1r,
      w2.astype(jnp.bfloat16), b2r, g2, be2)


# -------------------------------------------------------------- model glue

def decoder_block(lp, x, emb_pos_pad, u2, v2, cfg):
    """One DecoderBlock. x: (B, S, E) bf16 batch-first activations."""
    B, S, E = x.shape
    H, D = cfg["num_heads"], cfg["head_dim"]
    HD = H * D
    M = 0   # TODO(synk): recurrent memory cache (emb_mem / update_memory) not reproduced;
            #             first forward call with empty memory only.
    scale = 1.0 / cfg["head_dim"] ** 5   # reproduces the module's literal 1/head_dim**5

    x2 = x.reshape(B * S, E)
    # fused Wq|Wk|Wv projection (valid because memory is empty, so Wq and Wkv share inputs)
    qkv = linear_pallas(x2, lp["Wqkv"]).reshape(B, S, 3 * HD)            # bf16
    p_pad = linear_pallas(emb_pos_pad, lp["Wp"])                         # (T+S, HD) bf16

    attn = attention_pallas(qkv, p_pad, u2, v2, num_heads=H, head_dim=D,
                            mem_len=M, scale=scale)                      # (B, S, HD) bf16
    # dropout -> identity (inference); fc + residual + norm0 fused
    h = linear_residual_ln_pallas(attn.reshape(B * S, HD), lp["Wfc"],
                                  x2, lp["ln0_g"], lp["ln0_b"])
    out = ffn_residual_ln_pallas(h, lp["W1"], lp["b1"], lp["W2"], lp["b2"],
                                 lp["ln1_g"], lp["ln1_b"])
    return out.reshape(B, S, E)


def transformer_xl_forward(params, token_ids, cfg):
    S, B = token_ids.shape
    E, V = cfg["emb_dim"], cfg["vocab_size"]
    HD = cfg["num_heads"] * cfg["head_dim"]
    M = 0
    T = M + S
    emb_word = params["emb_table"][token_ids] * math.sqrt(E)            # (S, B, E) gather in JAX
    x = emb_word.transpose(1, 0, 2).astype(jnp.bfloat16)                # batch-first, bf16
    positions = jnp.arange(T - 1, -1, -1, dtype=jnp.float32)
    inv_freq = 1.0 / (10000.0 ** (jnp.arange(0, E, 2, dtype=jnp.float32) / E))
    angle = positions[:, None] * inv_freq[None, :]
    emb_pos = jnp.concatenate([jnp.sin(angle), jnp.cos(angle)], axis=1)  # (T, E)
    # S zero rows appended BEFORE the Wp projection: the rel-shift window is always in
    # range and the padded entries project to exactly 0 (Wp has no bias).
    emb_pos_pad = jnp.concatenate([emb_pos, jnp.zeros((S, E), emb_pos.dtype)], axis=0)
    u2 = params["u"].reshape(1, HD)
    v2 = params["v"].reshape(1, HD)

    for lp in params["layers"]:
        x = decoder_block(lp, x, emb_pos_pad, u2, v2, cfg)

    # Tied projection head: contracts against emb_table's last dim (transpose_rhs) so no
    # (E, V) transposed copy is made in HBM; output kept f32.
    logits = linear_pallas(x.reshape(B * S, E), params["emb_table"],
                           params["proj_bias"], transpose_rhs=True,
                           out_dtype=jnp.float32)                        # (B*S, V)
    return logits.reshape(B, S, V).transpose(1, 0, 2)                    # (S, B, V)


# ---------------------------- parameters & reference --------------------------

def init_params(key, cfg):
    V, E = cfg["vocab_size"], cfg["emb_dim"]
    H, D, L = cfg["num_heads"], cfg["head_dim"], cfg["num_layers"]
    F = 4 * E
    keys = jax.random.split(key, 5 + L)

    def w(k, shape, scale=0.05):
        return jax.random.normal(k, shape, jnp.float32) * scale

    params = {
        "emb_table": w(keys[0], (V, E)),            # tied with projection head weight
        "proj_bias": w(keys[1], (V,), 0.02),
        # module inits u, v to zeros; small randoms here to exercise the path
        "u": w(keys[2], (H, D), 0.02),
        "v": w(keys[3], (H, D), 0.02),
        "layers": [],
    }
    for l in range(L):
        k0, k1, k2, k3, k4 = jax.random.split(keys[5 + l], 5)
        params["layers"].append({
            # Wq | Wk | Wv pre-fused at init (outside jit): no (E, 3HD) copy per forward
            "Wqkv": w(k0, (E, 3 * H * D)),
            "Wp": w(k1, (E, H * D)),
            "Wfc": w(k2, (H * D, E)),
            "ln0_g": jnp.ones((E,), jnp.float32),
            "ln0_b": jnp.zeros((E,), jnp.float32),
            "W1": w(k3, (E, F)),
            "b1": jnp.zeros((F,), jnp.float32),
            "W2": w(k4, (F, E)),
            "b2": jnp.zeros((E,), jnp.float32),
            "ln1_g": jnp.ones((E,), jnp.float32),
            "ln1_b": jnp.zeros((E,), jnp.float32),
        })
    return params


def rel_shift(x):
    """Exact replica of MultiHeadAttention._rel_shift reshape trick. x: (Q, I, B, H)."""
    Q, I, B, H = x.shape
    zero = jnp.zeros_like(x[:, :1])
    y = jnp.concatenate([zero, x], axis=1)        # (Q, I+1, B, H)
    y = y.reshape(I + 1, Q, B, H)[1:]             # (I, Q, B, H)
    return y.reshape(Q, I, B, H)


def reference_forward(params, token_ids, cfg):
    """Pure-JAX f32 mirror of the PyTorch forward (eval mode), for verification."""
    S, B = token_ids.shape
    E, H, D = cfg["emb_dim"], cfg["num_heads"], cfg["head_dim"]
    HD = H * D
    M = 0
    T = M + S
    emb_word = params["emb_table"][token_ids] * math.sqrt(E)
    positions = jnp.arange(T - 1, -1, -1, dtype=jnp.float32)
    inv_freq = 1.0 / (10000.0 ** (jnp.arange(0, E, 2, dtype=jnp.float32) / E))
    angle = positions[:, None] * inv_freq[None, :]
    emb_pos = jnp.concatenate([jnp.sin(angle), jnp.cos(angle)], axis=1)[:, None, :]
    mask = jnp.triu(jnp.ones((S, T), bool), k=1 + M)[:, :, None, None]
    scale = 1.0 / D ** 5

    def layernorm(x, g, b):
        m = x.mean(-1, keepdims=True)
        v = ((x - m) ** 2).mean(-1, keepdims=True)
        return (x - m) / jnp.sqrt(v + 1e-5) * g + b

    layer_out = emb_word
    for p in params["layers"]:
        emb = layer_out
        q = (layer_out @ p["Wqkv"][:, :HD]).reshape(S, B, H, D)
        kv = emb @ p["Wqkv"][:, HD:]
        k = kv[..., :HD].reshape(T, B, H, D)
        v = kv[..., HD:].reshape(T, B, H, D)
        pp = (emb_pos @ p["Wp"]).reshape(T, H, D)
        ac = jnp.einsum('qbhd,ibhd->qibh', q + params["u"], k)
        ap = rel_shift(jnp.einsum('qbhd,ihd->qibh', q + params["v"], pp))
        att = jnp.where(mask, -jnp.inf, ac + ap)
        att = jax.nn.softmax(att * scale, axis=1)
        out = jnp.einsum('qibh,ibhd->qbhd', att, v).reshape(S, B, HD)
        a_out = out @ p["Wfc"]
        h = layernorm(a_out + layer_out, p["ln0_g"], p["ln0_b"])
        ff = jnp.maximum(h @ p["W1"] + p["b1"], 0.0) @ p["W2"] + p["b2"]
        layer_out = layernorm(ff + h, p["ln1_g"], p["ln1_b"])
    return layer_out @ params["emb_table"].T + params["proj_bias"]


if __name__ == "__main__":
    cfg = dict(vocab_size=256, num_layers=2, emb_dim=128, head_dim=32, num_heads=4)
    S, B = 16, 2

    key = jax.random.PRNGKey(0)
    kp, kt = jax.random.split(key)
    params = init_params(kp, cfg)
    token_ids = jax.random.randint(kt, (S, B), 0, cfg["vocab_size"], dtype=jnp.int32)

    fwd = jax.jit(partial(transformer_xl_forward, cfg=cfg))
    logits = jax.block_until_ready(fwd(params, token_ids))

    assert logits.shape == (S, B, cfg["vocab_size"])
    ref = reference_forward(params, token_ids, cfg)
    assert bool(jnp.all(jnp.isfinite(logits)))
    assert bool(jnp.allclose(logits, ref, atol=5e-2, rtol=5e-2)), "mismatch vs JAX reference"
    print("KERNEL_OK")
</pallas_src>

<mosaic_0001>
module attributes {stable_mosaic.version = 11 : i64} {
  func.func @_mm_kernel(%arg0: i32, %arg1: i32, %arg2: i32, %arg3: memref<32x128xbf16, #tpu.memory_space<vmem>>, %arg4: memref<128x128xbf16, #tpu.memory_space<vmem>>, %arg5: memref<32x128xbf16, #tpu.memory_space<vmem>>, %arg6: memref<32x128xf32, #tpu.memory_space<vmem>>) attributes {dimension_semantics = [#tpu.dimension_semantics<parallel>, #tpu.dimension_semantics<parallel>, #tpu.dimension_semantics<arbitrary>], iteration_bounds = array<i64: 1, 1, 1>, scalar_prefetch = 0 : i64, scratch_operands = 1 : i64, tpu.core_type = #tpu.core_type<tc>, window_params = [{transform_indices = @transform_0, window_bounds = array<i64: 32, 128>}, {transform_indices = @transform_1, window_bounds = array<i64: 128, 128>}, {transform_indices = @transform_2, window_bounds = array<i64: 32, 128>}]} {
    %c0_i32 = arith.constant 0 : i32
    %0 = arith.cmpi eq, %arg2, %c0_i32 : i32
    %1 = arith.extui %0 : i1 to i32
    %c0_i32_0 = arith.constant 0 : i32
    %2 = arith.cmpi ne, %1, %c0_i32_0 : i32
    scf.if %2 {
      %cst_10 = arith.constant 0.000000e+00 : f32
      %12 = vector.broadcast %cst_10 : f32 to vector<32x128xf32>
      %c0_11 = arith.constant 0 : index
      %c0_12 = arith.constant 0 : index
      %13 = vector.load %arg6[%c0_11, %c0_12] : memref<32x128xf32, #tpu.memory_space<vmem>>, vector<32x128xf32>
      tpu.vector_store %arg6[%c0_11, %c0_12], %12 {strides = array<i32>} : memref<32x128xf32, #tpu.memory_space<vmem>>, vector<32x128xf32>,
    } else {
    }
    %c0 = arith.constant 0 : index
    %c0_1 = arith.constant 0 : index
    %3 = vector.load %arg6[%c0, %c0_1] : memref<32x128xf32, #tpu.memory_space<vmem>>, vector<32x128xf32>
    %c0_2 = arith.constant 0 : index
    %c0_3 = arith.constant 0 : index
    %4 = vector.load %arg3[%c0_2, %c0_3] : memref<32x128xbf16, #tpu.memory_space<vmem>>, vector<32x128xbf16>
    %c0_4 = arith.constant 0 : index
    %c0_5 = arith.constant 0 : index
    %5 = vector.load %arg4[%c0_4, %c0_5] : memref<128x128xbf16, #tpu.memory_space<vmem>>, vector<128x128xbf16>
    %cst = arith.constant dense<0.000000e+00> : vector<32x128xf32>
    %6 = tpu.matmul %4, %5, %cst {dimension_numbers = #tpu.dot_dimension_numbers<[1], [0], [0], [1], [0, 0, 1, 1], [], []>} : vector<32x128xbf16>, vector<128x128xbf16>, vector<32x128xf32> -> vector<32x128xf32>
    %7 = arith.addf %3, %6 : vector<32x128xf32>
    %c0_6 = arith.constant 0 : index
    %c0_7 = arith.constant 0 : index
    %8 = vector.load %arg6[%c0_6, %c0_7] : memref<32x128xf32, #tpu.memory_space<vmem>>, vector<32x128xf32>
    tpu.vector_store %arg6[%c0_6, %c0_7], %7 {strides = array<i32>} : memref<32x128xf32, #tpu.memory_space<vmem>>, vector<32x128xf32>,
    %c0_i32_8 = arith.constant 0 : i32
    %9 = arith.cmpi eq, %arg2, %c0_i32_8 : i32
    %10 = arith.extui %9 : i1 to i32
    %c0_i32_9 = arith.constant 0 : i32
    %11 = arith.cmpi ne, %10, %c0_i32_9 : i32
    scf.if %11 {
      %c0_10 = arith.constant 0 : index
      %c0_11 = arith.constant 0 : index
      %12 = vector.load %arg6[%c0_10, %c0_11] : memref<32x128xf32, #tpu.memory_space<vmem>>, vector<32x128xf32>
      %13 = arith.truncf %12 : vector<32x128xf32> to vector<32x128xbf16>
      %c0_12 = arith.constant 0 : index
      %c0_13 = arith.constant 0 : index
      %14 = vector.load %arg5[%c0_12, %c0_13] : memref<32x128xbf16, #tpu.memory_space<vmem>>, vector<32x128xbf16>
      tpu.vector_store %arg5[%c0_12, %c0_13], %13 {strides = array<i32>} : memref<32x128xbf16, #tpu.memory_space<vmem>>, vector<32x128xbf16>,
    } else {
    }
    return
  }
  func.func @transform_0(%arg0: i32, %arg1: i32, %arg2: i32) -> (i32, i32) {
    %c0_i32 = arith.constant 0 : i32
    return %arg0, %arg2 : i32, i32
  }
  func.func @transform_1(%arg0: i32, %arg1: i32, %arg2: i32) -> (i32, i32) {
    %c0_i32 = arith.constant 0 : i32
    return %arg2, %arg1 : i32, i32
  }
  func.func @transform_2(%arg0: i32, %arg1: i32, %arg2: i32) -> (i32, i32) {
    %c0_i32 = arith.constant 0 : i32
    return %arg0, %arg1 : i32, i32
  }
}

module attributes {stable_mosaic.version = 11 : i64} {
  func.func @_mm_kernel(%arg0: i32, %arg1: i32, %arg2: i32, %arg3: memref<32x128xbf16, #tpu.memory_space<vmem>>, %arg4: memref<128x384xbf16, #tpu.memory_space<vmem>>, %arg5: memref<32x384xbf16, #tpu.memory_space<vmem>>, %arg6: memref<32x384xf32, #tpu.memory_space<vmem>>) attributes {dimension_semantics = [#tpu.dimension_semantics<parallel>, #tpu.dimension_semantics<parallel>, #tpu.dimension_semantics<arbitrary>], iteration_bounds = array<i64: 1, 1, 1>, scalar_prefetch = 0 : i64, scratch_operands = 1 : i64, tpu.core_type = #tpu.core_type<tc>, window_params = [{transform_indices = @transform_0, window_bounds = array<i64: 32, 128>}, {transform_indices = @transform_1, window_bounds = array<i64: 128, 384>}, {transform_indices = @transform_2, window_bounds = array<i64: 32, 384>}]} {
    %c0_i32 = arith.constant 0 : i32
    %0 = arith.cmpi eq, %arg2, %c0_i32 : i32
    %1 = arith.extui %0 : i1 to i32
    %c0_i32_0 = arith.constant 0 : i32
    %2 = arith.cmpi ne, %1, %c0_i32_0 : i32
    scf.if %2 {
      %cst_10 = arith.constant 0.000000e+00 : f32
      %12 = vector.broadcast %cst_10 : f32 to vector<32x384xf32>
      %c0_11 = arith.constant 0 : index
      %c0_12 = arith.constant 0 : index
      %13 = vector.load %arg6[%c0_11, %c0_12] : memref<32x384xf32, #tpu.memory_space<vmem>>, vector<32x384xf32>
      tpu.vector_store %arg6[%c0_11, %c0_12], %12 {strides = array<i32>} : memref<32x384xf32, #tpu.memory_space<vmem>>, vector<32x384xf32>,
    } else {
    }
    %c0 = arith.constant 0 : index
    %c0_1 = arith.constant 0 : index
    %3 = vector.load %arg6[%c0, %c0_1] : memref<32x384xf32, #tpu.memory_space<vmem>>, vector<32x384xf32>
    %c0_2 = arith.constant 0 : index
    %c0_3 = arith.constant 0 : index
    %4 = vector.load %arg3[%c0_2, %c0_3] : memref<32x128xbf16, #tpu.memory_space<vmem>>, vector<32x128xbf16>
    %c0_4 = arith.constant 0 : index
    %c0_5 = arith.constant 0 : index
    %5 = vector.load %arg4[%c0_4, %c0_5] : memref<128x384xbf16, #tpu.memory_space<vmem>>, vector<128x384xbf16>
    %cst = arith.constant dense<0.000000e+00> : vector<32x384xf32>
    %6 = tpu.matmul %4, %5, %cst {dimension_numbers = #tpu.dot_dimension_numbers<[1], [0], [0], [1], [0, 0, 1, 1], [], []>} : vector<32x128xbf16>, vector<128x384xbf16>, vector<32x384xf32> -> vector<32x384xf32>
    %7 = arith.addf %3, %6 : vector<32x384xf32>
    %c0_6 = arith.constant 0 : index
    %c0_7 = arith.constant 0 : index
    %8 = vector.load %arg6[%c0_6, %c0_7] : memref<32x384xf32, #tpu.memory_space<vmem>>, vector<32x384xf32>
    tpu.vector_store %arg6[%c0_6, %c0_7], %7 {strides = array<i32>} : memref<32x384xf32, #tpu.memory_space<vmem>>, vector<32x384xf32>,
    %c0_i32_8 = arith.constant 0 : i32
    %9 = arith.cmpi eq, %arg2, %c0_i32_8 : i32
    %10 = arith.extui %9 : i1 to i32
    %c0_i32_9 = arith.constant 0 : i32
    %11 = arith.cmpi ne, %10, %c0_i32_9 : i32
    scf.if %11 {
      %c0_10 = arith.constant 0 : index
      %c0_11 = arith.constant 0 : index
      %12 = vector.load %arg6[%c0_10, %c0_11] : memref<32x384xf32, #tpu.memory_space<vmem>>, vector<32x384xf32>
      %13 = arith.truncf %12 : vector<32x384xf32> to vector<32x384xbf16>
      %c0_12 = arith.constant 0 : index
      %c0_13 = arith.constant 0 : index
      %14 = vector.load %arg5[%c0_12, %c0_13] : memref<32x384xbf16, #tpu.memory_space<vmem>>, vector<32x384xbf16>
      tpu.vector_store %arg5[%c0_12, %c0_13], %13 {strides = array<i32>} : memref<32x384xbf16, #tpu.memory_space<vmem>>, vector<32x384xbf16>,
    } else {
    }
    return
  }
  func.func @transform_0(%arg0: i32, %arg1: i32, %arg2: i32) -> (i32, i32) {
    %c0_i32 = arith.constant 0 : i32
    return %arg0, %arg2 : i32, i32
  }
  func.func @transform_1(%arg0: i32, %arg1: i32, %arg2: i32) -> (i32, i32) {
    %c0_i32 = arith.constant 0 : i32
    return %arg2, %arg1 : i32, i32
  }
  func.func @transform_2(%arg0: i32, %arg1: i32, %arg2: i32) -> (i32, i32) {
    %c0_i32 = arith.constant 0 : i32
    return %arg0, %arg1 : i32, i32
  }
}

module attributes {stable_mosaic.version = 11 : i64} {
  func.func @_attn_kernel(%arg0: i32, %arg1: i32, %arg2: memref<1x16x128xbf16, #tpu.memory_space<vmem>>, %arg3: memref<1x16x128xbf16, #tpu.memory_space<vmem>>, %arg4: memref<1x16x128xbf16, #tpu.memory_space<vmem>>, %arg5: memref<32x128xbf16, #tpu.memory_space<vmem>>, %arg6: memref<1x128xf32, #tpu.memory_space<vmem>>, %arg7: memref<1x128xf32, #tpu.memory_space<vmem>>, %arg8: memref<1x16x128xbf16, #tpu.memory_space<vmem>>) attributes {dimension_semantics = [#tpu.dimension_semantics<parallel>, #tpu.dimension_semantics<parallel>], iteration_bounds = array<i64: 2, 1>, scalar_prefetch = 0 : i64, scratch_operands = 0 : i64, tpu.core_type = #tpu.core_type<tc>, window_params = [{transform_indices = @transform_0, window_bounds = array<i64: 1, 16, 128>}, {transform_indices = @transform_1, window_bounds = array<i64: 1, 16, 128>}, {transform_indices = @transform_2, window_bounds = array<i64: 1, 16, 128>}, {pipeline_mode = #tpu.pipeline_mode<synchronous>, transform_indices = @transform_3, window_bounds = array<i64: 32, 128>}, {pipeline_mode = #tpu.pipeline_mode<synchronous>, transform_indices = @transform_4, window_bounds = array<i64: 1, 128>}, {pipeline_mode = #tpu.pipeline_mode<synchronous>, transform_indices = @transform_5, window_bounds = array<i64: 1, 128>}, {transform_indices = @transform_6, window_bounds = array<i64: 1, 16, 128>}]} {
    %c0 = arith.constant 0 : index
    %c0_0 = arith.constant 0 : index
    %c0_1 = arith.constant 0 : index
    %0 = vector.load %arg2[%c0, %c0_0, %c0_1] : memref<1x16x128xbf16, #tpu.memory_space<vmem>>, vector<1x16x128xbf16>
    %1 = vector.shape_cast %0 : vector<1x16x128xbf16> to vector<16x128xbf16>
    %2 = arith.extf %1 : vector<16x128xbf16> to vector<16x128xf32>
    %c0_2 = arith.constant 0 : index
    %c0_3 = arith.constant 0 : index
    %3 = vector.load %arg6[%c0_2, %c0_3] : memref<1x128xf32, #tpu.memory_space<vmem>>, vector<1x128xf32>
    %4 = vector.broadcast %3 : vector<1x128xf32> to vector<16x128xf32>
    %5 = arith.addf %2, %4 : vector<16x128xf32>
    %6 = arith.truncf %5 : vector<16x128xf32> to vector<16x128xbf16>
    %c0_4 = arith.constant 0 : index
    %c0_5 = arith.constant 0 : index
    %7 = vector.load %arg7[%c0_4, %c0_5] : memref<1x128xf32, #tpu.memory_space<vmem>>, vector<1x128xf32>
    %8 = vector.broadcast %7 : vector<1x128xf32> to vector<16x128xf32>
    %9 = arith.addf %2, %8 : vector<16x128xf32>
    %10 = arith.truncf %9 : vector<16x128xf32> to vector<16x128xbf16>
    %c0_6 = arith.constant 0 : index
    %c0_7 = arith.constant 0 : index
    %c0_8 = arith.constant 0 : index
    %11 = vector.load %arg3[%c0_6, %c0_7, %c0_8] : memref<1x16x128xbf16, #tpu.memory_space<vmem>>, vector<1x16x128xbf16>
    %12 = vector.shape_cast %11 : vector<1x16x128xbf16> to vector<16x128xbf16>
    %c0_9 = arith.constant 0 : index
    %c0_10 = arith.constant 0 : index
    %c0_11 = arith.constant 0 : index
    %13 = vector.load %arg4[%c0_9, %c0_10, %c0_11] : memref<1x16x128xbf16, #tpu.memory_space<vmem>>, vector<1x16x128xbf16>
    %14 = vector.shape_cast %13 : vector<1x16x128xbf16> to vector<16x128xbf16>
    %c0_12 = arith.constant 0 : index
    %c0_13 = arith.constant 0 : index
    %15 = vector.load %arg5[%c0_12, %c0_13] : memref<32x128xbf16, #tpu.memory_space<vmem>>, vector<32x128xbf16>
    %c16_i32 = arith.constant 16 : i32
    %16 = arith.muli %arg1, %c16_i32 : i32
    %17 = tpu.iota {dimensions = array<i32: 0>} : vector<16x16xi32>
    %18 = vector.broadcast %16 : i32 to vector<16x16xi32>
    %19 = arith.addi %17, %18 : vector<16x16xi32>
    %20 = tpu.iota {dimensions = array<i32: 1>} : vector<16x16xi32>
    %c0_i32 = arith.constant 0 : i32
    %21 = vector.broadcast %c0_i32 : i32 to vector<16x16xi32>
    %22 = arith.addi %19, %21 : vector<16x16xi32>
    %23 = arith.cmpi sgt, %20, %22 : vector<16x16xi32>
    %c15_i32 = arith.constant 15 : i32
    %24 = arith.subi %c15_i32, %16 : i32
    %25 = tpu.iota {dimensions = array<i32: 0>} : vector<16x1xi32>
    %26 = vector.broadcast %24 : i32 to vector<16x1xi32>
    %27 = arith.subi %26, %25 : vector<16x1xi32>
    %c1_i32 = arith.constant 1 : i32
    %28 = vector.broadcast %c1_i32 : i32 to vector<16x1xi32>
    %29 = arith.andi %27, %28 : vector<16x1xi32>
    %c0_i32_14 = arith.constant 0 : i32
    %30 = vector.broadcast %c0_i32_14 : i32 to vector<16x1xi32>
    %31 = arith.cmpi ne, %29, %30 : vector<16x1xi32>
    %c2_i32 = arith.constant 2 : i32
    %32 = vector.broadcast %c2_i32 : i32 to vector<16x1xi32>
    %33 = arith.andi %27, %32 : vector<16x1xi32>
    %c0_i32_15 = arith.constant 0 : i32
    %34 = vector.broadcast %c0_i32_15 : i32 to vector<16x1xi32>
    %35 = arith.cmpi ne, %33, %34 : vector<16x1xi32>
    %c4_i32 = arith.constant 4 : i32
    %36 = vector.broadcast %c4_i32 : i32 to vector<16x1xi32>
    %37 = arith.andi %27, %36 : vector<16x1xi32>
    %c0_i32_16 = arith.constant 0 : i32
    %38 = vector.broadcast %c0_i32_16 : i32 to vector<16x1xi32>
    %39 = arith.cmpi ne, %37, %38 : vector<16x1xi32>
    %c8_i32 = arith.constant 8 : i32
    %40 = vector.broadcast %c8_i32 : i32 to vector<16x1xi32>
    %41 = arith.andi %27, %40 : vector<16x1xi32>
    %c0_i32_17 = arith.constant 0 : i32
    %42 = vector.broadcast %c0_i32_17 : i32 to vector<16x1xi32>
    %43 = arith.cmpi ne, %41, %42 : vector<16x1xi32>
    %44 = vector.extract_strided_slice %6 {offsets = [0, 0], sizes = [16, 32], strides = [1, 1]} : vector<16x128xbf16> to vector<16x32xbf16>
    %45 = vector.extract_strided_slice %10 {offsets = [0, 0], sizes = [16, 32], strides = [1, 1]} : vector<16x128xbf16> to vector<16x32xbf16>
    %46 = vector.extract_strided_slice %12 {offsets = [0, 0], sizes = [16, 32], strides = [1, 1]} : vector<16x128xbf16> to vector<16x32xbf16>
    %47 = vector.extract_strided_slice %14 {offsets = [0, 0], sizes = [16, 32], strides = [1, 1]} : vector<16x128xbf16> to vector<16x32xbf16>
    %48 = vector.extract_strided_slice %15 {offsets = [0, 0], sizes = [32, 32], strides = [1, 1]} : vector<32x128xbf16> to vector<32x32xbf16>
    %cst = arith.constant dense<0.000000e+00> : vector<16x16xf32>
    %49 = tpu.matmul %44, %46, %cst {dimension_numbers = #tpu.dot_dimension_numbers<[1], [1], [0], [0], [0, 0, 1, 0], [], []>} : vector<16x32xbf16>, vector<16x32xbf16>, vector<16x16xf32> -> vector<16x16xf32>
    %cst_18 = arith.constant dense<0.000000e+00> : vector<16x32xf32>
    %50 = tpu.matmul %45, %48, %cst_18 {dimension_numbers = #tpu.dot_dimension_numbers<[1], [1], [0], [0], [0, 0, 1, 0], [], []>} : vector<16x32xbf16>, vector<32x32xbf16>, vector<16x32xf32> -> vector<16x32xf32>
    %51 = vector.extract_strided_slice %50 {offsets = [0, 1], sizes = [16, 31], strides = [1, 1]} : vector<16x32xf32> to vector<16x31xf32>
    %cst_19 = arith.constant 0.000000e+00 : f32
    %52 = vector.broadcast %cst_19 : f32 to vector<16x1xf32>
    %53 = tpu.concatenate %51, %52 in 1 : vector<16x31xf32>, vector<16x1xf32> -> vector<16x32xf32>
    %54 = vector.shape_cast %31 : vector<16x1xi1> to vector<16x1xi1>
    %55 = vector.broadcast %54 : vector<16x1xi1> to vector<16x32xi1>
    %56 = arith.select %55, %53, %50 : vector<16x32xi1>, vector<16x32xf32>
    %57 = vector.extract_strided_slice %56 {offsets = [0, 2], sizes = [16, 30], strides = [1, 1]} : vector<16x32xf32> to vector<16x30xf32>
    %cst_20 = arith.constant 0.000000e+00 : f32
    %58 = vector.broadcast %cst_20 : f32 to vector<16x2xf32>
    %59 = tpu.concatenate %57, %58 in 1 : vector<16x30xf32>, vector<16x2xf32> -> vector<16x32xf32>
    %60 = vector.shape_cast %35 : vector<16x1xi1> to vector<16x1xi1>
    %61 = vector.broadcast %60 : vector<16x1xi1> to vector<16x32xi1>
    %62 = arith.select %61, %59, %56 : vector<16x32xi1>, vector<16x32xf32>
    %63 = vector.extract_strided_slice %62 {offsets = [0, 4], sizes = [16, 28], strides = [1, 1]} : vector<16x32xf32> to vector<16x28xf32>
    %cst_21 = arith.constant 0.000000e+00 : f32
    %64 = vector.broadcast %cst_21 : f32 to vector<16x4xf32>
    %65 = tpu.concatenate %63, %64 in 1 : vector<16x28xf32>, vector<16x4xf32> -> vector<16x32xf32>
    %66 = vector.shape_cast %39 : vector<16x1xi1> to vector<16x1xi1>
    %67 = vector.broadcast %66 : vector<16x1xi1> to vector<16x32xi1>
    %68 = arith.select %67, %65, %62 : vector<16x32xi1>, vector<16x32xf32>
    %69 = vector.extract_strided_slice %68 {offsets = [0, 8], sizes = [16, 24], strides = [1, 1]} : vector<16x32xf32> to vector<16x24xf32>
    %cst_22 = arith.constant 0.000000e+00 : f32
    %70 = vector.broadcast %cst_22 : f32 to vector<16x8xf32>
    %71 = tpu.concatenate %69, %70 in 1 : vector<16x24xf32>, vector<16x8xf32> -> vector<16x32xf32>
    %72 = vector.shape_cast %43 : vector<16x1xi1> to vector<16x1xi1>
    %73 = vector.broadcast %72 : vector<16x1xi1> to vector<16x32xi1>
    %74 = arith.select %73, %71, %68 : vector<16x32xi1>, vector<16x32xf32>
    %75 = vector.extract_strided_slice %74 {offsets = [0, 0], sizes = [16, 16], strides = [1, 1]} : vector<16x32xf32> to vector<16x16xf32>
    %76 = arith.addf %49, %75 : vector<16x16xf32>
    %cst_23 = arith.constant 2.98023224E-8 : f32
    %77 = vector.broadcast %cst_23 : f32 to vector<16x16xf32>
    %78 = arith.mulf %76, %77 : vector<16x16xf32>
    %cst_24 = arith.constant -1.000000e+30 : f32
    %79 = vector.broadcast %cst_24 : f32 to vector<16x16xf32>
    %80 = arith.select %23, %79, %78 : vector<16x16xi1>, vector<16x16xf32>
    %cst_25 = arith.constant dense<0xFF800000> : vector<16xf32>
    %81 = vector.multi_reduction <maximumf>, %80, %cst_25 [1] : vector<16x16xf32> to vector<16xf32>
    %82 = vector.shape_cast %81 : vector<16xf32> to vector<16x1xf32>
    %83 = vector.broadcast %82 : vector<16x1xf32> to vector<16x16xf32>
    %84 = arith.subf %80, %83 : vector<16x16xf32>
    %85 = math.exp %84 : vector<16x16xf32>
    %cst_26 = arith.constant dense<0.000000e+00> : vector<16xf32>
    %86 = vector.multi_reduction <add>, %85, %cst_26 [1] : vector<16x16xf32> to vector<16xf32>
    %87 = vector.shape_cast %86 : vector<16xf32> to vector<16x1xf32>
    %88 = tpu.reciprocal %87 {approx = true} : vector<16x1xf32> -> vector<16x1xf32>
    %89 = vector.broadcast %88 : vector<16x1xf32> to vector<16x16xf32>
    %90 = arith.mulf %85, %89 : vector<16x16xf32>
    %91 = arith.truncf %90 : vector<16x16xf32> to vector<16x16xbf16>
    %cst_27 = arith.constant dense<0.000000e+00> : vector<16x32xf32>
    %92 = tpu.matmul %91, %47, %cst_27 {dimension_numbers = #tpu.dot_dimension_numbers<[1], [0], [0], [1], [0, 0, 1, 1], [], []>} : vector<16x16xbf16>, vector<16x32xbf16>, vector<16x32xf32> -> vector<16x32xf32>
    %93 = arith.truncf %92 : vector<16x32xf32> to vector<16x32xbf16>
    %c0_28 = arith.constant 0 : index
    %c0_29 = arith.constant 0 : index
    %c0_30 = arith.constant 0 : index
    %94 = vector.load %arg8[%c0_28, %c0_29, %c0_30] : memref<1x16x128xbf16, #tpu.memory_space<vmem>>, vector<1x16x32xbf16>
    %95 = vector.shape_cast %94 : vector<1x16x32xbf16> to vector<16x32xbf16>
    %96 = vector.shape_cast %93 : vector<16x32xbf16> to vector<1x16x32xbf16>
    tpu.vector_store %arg8[%c0_28, %c0_29, %c0_30], %96 {strides = array<i32>} : memref<1x16x128xbf16, #tpu.memory_space<vmem>>, vector<1x16x32xbf16>,
    %97 = vector.extract_strided_slice %6 {offsets = [0, 32], sizes = [16, 32], strides = [1, 1]} : vector<16x128xbf16> to vector<16x32xbf16>
    %98 = vector.extract_strided_slice %10 {offsets = [0, 32], sizes = [16, 32], strides = [1, 1]} : vector<16x128xbf16> to vector<16x32xbf16>
    %99 = vector.extract_strided_slice %12 {offsets = [0, 32], sizes = [16, 32], strides = [1, 1]} : vector<16x128xbf16> to vector<16x32xbf16>
    %100 = vector.extract_strided_slice %14 {offsets = [0, 32], sizes = [16, 32], strides = [1, 1]} : vector<16x128xbf16> to vector<16x32xbf16>
    %101 = vector.extract_strided_slice %15 {offsets = [0, 32], sizes = [32, 32], strides = [1, 1]} : vector<32x128xbf16> to vector<32x32xbf16>
    %cst_31 = arith.constant dense<0.000000e+00> : vector<16x16xf32>
    %102 = tpu.matmul %97, %99, %cst_31 {dimension_numbers = #tpu.dot_dimension_numbers<[1], [1], [0], [0], [0, 0, 1, 0], [], []>} : vector<16x32xbf16>, vector<16x32xbf16>, vector<16x16xf32> -> vector<16x16xf32>
    %cst_32 = arith.constant dense<0.000000e+00> : vector<16x32xf32>
    %103 = tpu.matmul %98, %101, %cst_32 {dimension_numbers = #tpu.dot_dimension_numbers<[1], [1], [0], [0], [0, 0, 1, 0], [], []>} : vector<16x32xbf16>, vector<32x32xbf16>, vector<16x32xf32> -> vector<16x32xf32>
    %104 = vector.extract_strided_slice %103 {offsets = [0, 1], sizes = [16, 31], strides = [1, 1]} : vector<16x32xf32> to vector<16x31xf32>
    %cst_33 = arith.constant 0.000000e+00 : f32
    %105 = vector.broadcast %cst_33 : f32 to vector<16x1xf32>
    %106 = tpu.concatenate %104, %105 in 1 : vector<16x31xf32>, vector<16x1xf32> -> vector<16x32xf32>
    %107 = vector.shape_cast %31 : vector<16x1xi1> to vector<16x1xi1>
    %108 = vector.broadcast %107 : vector<16x1xi1> to vector<16x32xi1>
    %109 = arith.select %108, %106, %103 : vector<16x32xi1>, vector<16x32xf32>
    %110 = vector.extract_strided_slice %109 {offsets = [0, 2], sizes = [16, 30], strides = [1, 1]} : vector<16x32xf32> to vector<16x30xf32>
    %cst_34 = arith.constant 0.000000e+00 : f32
    %111 = vector.broadcast %cst_34 : f32 to vector<16x2xf32>
    %112 = tpu.concatenate %110, %111 in 1 : vector<16x30xf32>, vector<16x2xf32> -> vector<16x32xf32>
    %113 = vector.shape_cast %35 : vector<16x1xi1> to vector<16x1xi1>
    %114 = vector.broadcast %113 : vector<16x1xi1> to vector<16x32xi1>
    %115 = arith.select %114, %112, %109 : vector<16x32xi1>, vector<16x32xf32>
    %116 = vector.extract_strided_slice %115 {offsets = [0, 4], sizes = [16, 28], strides = [1, 1]} : vector<16x32xf32> to vector<16x28xf32>
    %cst_35 = arith.constant 0.000000e+00 : f32
    %117 = vector.broadcast %cst_35 : f32 to vector<16x4xf32>
    %118 = tpu.concatenate %116, %117 in 1 : vector<16x28xf32>, vector<16x4xf32> -> vector<16x32xf32>
    %119 = vector.shape_cast %39 : vector<16x1xi1> to vector<16x1xi1>
    %120 = vector.broadcast %119 : vector<16x1xi1> to vector<16x32xi1>
    %121 = arith.select %120, %118, %115 : vector<16x32xi1>, vector<16x32xf32>
    %122 = vector.extract_strided_slice %121 {offsets = [0, 8], sizes = [16, 24], strides = [1, 1]} : vector<16x32xf32> to vector<16x24xf32>
    %cst_36 = arith.constant 0.000000e+00 : f32
    %123 = vector.broadcast %cst_36 : f32 to vector<16x8xf32>
    %124 = tpu.concatenate %122, %123 in 1 : vector<16x24xf32>, vector<16x8xf32> -> vector<16x32xf32>
    %125 = vector.shape_cast %43 : vector<16x1xi1> to vector<16x1xi1>
    %126 = vector.broadcast %125 : vector<16x1xi1> to vector<16x32xi1>
    %127 = arith.select %126, %124, %121 : vector<16x32xi1>, vector<16x32xf32>
    %128 = vector.extract_strided_slice %127 {offsets = [0, 0], sizes = [16, 16], strides = [1, 1]} : vector<16x32xf32> to vector<16x16xf32>
    %129 = arith.addf %102, %128 : vector<16x16xf32>
    %cst_37 = arith.constant 2.98023224E-8 : f32
    %130 = vector.broadcast %cst_37 : f32 to vector<16x16xf32>
    %131 = arith.mulf %129, %130 : vector<16x16xf32>
    %cst_38 = arith.constant -1.000000e+30 : f32
    %132 = vector.broadcast %cst_38 : f32 to vector<16x16xf32>
    %133 = arith.select %23, %132, %131 : vector<16x16xi1>, vector<16x16xf32>
    %cst_39 = arith.constant dense<0xFF800000> : vector<16xf32>
    %134 = vector.multi_reduction <maximumf>, %133, %cst_39 [1] : vector<16x16xf32> to vector<16xf32>
    %135 = vector.shape_cast %134 : vector<16xf32> to vector<16x1xf32>
    %136 = vector.broadcast %135 : vector<16x1xf32> to vector<16x16xf32>
    %137 = arith.subf %133, %136 : vector<16x16xf32>
    %138 = math.exp %137 : vector<16x16xf32>
    %cst_40 = arith.constant dense<0.000000e+00> : vector<16xf32>
    %139 = vector.multi_reduction <add>, %138, %cst_40 [1] : vector<16x16xf32> to vector<16xf32>
    %140 = vector.shape_cast %139 : vector<16xf32> to vector<16x1xf32>
    %141 = tpu.reciprocal %140 {approx = true} : vector<16x1xf32> -> vector<16x1xf32>
    %142 = vector.broadcast %141 : vector<16x1xf32> to vector<16x16xf32>
    %143 = arith.mulf %138, %142 : vector<16x16xf32>
    %144 = arith.truncf %143 : vector<16x16xf32> to vector<16x16xbf16>
    %cst_41 = arith.constant dense<0.000000e+00> : vector<16x32xf32>
    %145 = tpu.matmul %144, %100, %cst_41 {dimension_numbers = #tpu.dot_dimension_numbers<[1], [0], [0], [1], [0, 0, 1, 1], [], []>} : vector<16x16xbf16>, vector<16x32xbf16>, vector<16x32xf32> -> vector<16x32xf32>
    %146 = arith.truncf %145 : vector<16x32xf32> to vector<16x32xbf16>
    %c0_42 = arith.constant 0 : index
    %c0_43 = arith.constant 0 : index
    %c32 = arith.constant 32 : index
    %147 = vector.load %arg8[%c0_42, %c0_43, %c32] : memref<1x16x128xbf16, #tpu.memory_space<vmem>>, vector<1x16x32xbf16>
    %148 = vector.shape_cast %147 : vector<1x16x32xbf16> to vector<16x32xbf16>
    %149 = vector.shape_cast %146 : vector<16x32xbf16> to vector<1x16x32xbf16>
    tpu.vector_store %arg8[%c0_42, %c0_43, %c32], %149 {strides = array<i32>} : memref<1x16x128xbf16, #tpu.memory_space<vmem>>, vector<1x16x32xbf16>,
    %150 = vector.extract_strided_slice %6 {offsets = [0, 64], sizes = [16, 32], strides = [1, 1]} : vector<16x128xbf16> to vector<16x32xbf16>
    %151 = vector.extract_strided_slice %10 {offsets = [0, 64], sizes = [16, 32], strides = [1, 1]} : vector<16x128xbf16> to vector<16x32xbf16>
    %152 = vector.extract_strided_slice %12 {offsets = [0, 64], sizes = [16, 32], strides = [1, 1]} : vector<16x128xbf16> to vector<16x32xbf16>
    %153 = vector.extract_strided_slice %14 {offsets = [0, 64], sizes = [16, 32], strides = [1, 1]} : vector<16x128xbf16> to vector<16x32xbf16>
    %154 = vector.extract_strided_slice %15 {offsets = [0, 64], sizes = [32, 32], strides = [1, 1]} : vector<32x128xbf16> to vector<32x32xbf16>
    %cst_44 = arith.constant dense<0.000000e+00> : vector<16x16xf32>
    %155 = tpu.matmul %150, %152, %cst_44 {dimension_numbers = #tpu.dot_dimension_numbers<[1], [1], [0], [0], [0, 0, 1, 0], [], []>} : vector<16x32xbf16>, vector<16x32xbf16>, vector<16x16xf32> -> vector<16x16xf32>
    %cst_45 = arith.constant dense<0.000000e+00> : vector<16x32xf32>
    %156 = tpu.matmul %151, %154, %cst_45 {dimension_numbers = #tpu.dot_dimension_numbers<[1], [1], [0], [0], [0, 0, 1, 0], [], []>} : vector<16x32xbf16>, vector<32x32xbf16>, vector<16x32xf32> -> vector<16x32xf32>
    %157 = vector.extract_strided_slice %156 {offsets = [0, 1], sizes = [16, 31], strides = [1, 1]} : vector<16x32xf32> to vector<16x31xf32>
    %cst_46 = arith.constant 0.000000e+00 : f32
    %158 = vector.broadcast %cst_46 : f32 to vector<16x1xf32>
    %159 = tpu.concatenate %157, %158 in 1 : vector<16x31xf32>, vector<16x1xf32> -> vector<16x32xf32>
    %160 = vector.shape_cast %31 : vector<16x1xi1> to vector<16x1xi1>
    %161 = vector.broadcast %160 : vector<16x1xi1> to vector<16x32xi1>
    %162 = arith.select %161, %159, %156 : vector<16x32xi1>, vector<16x32xf32>
    %163 = vector.extract_strided_slice %162 {offsets = [0, 2], sizes = [16, 30], strides = [1, 1]} : vector<16x32xf32> to vector<16x30xf32>
    %cst_47 = arith.constant 0.000000e+00 : f32
    %164 = vector.broadcast %cst_47 : f32 to vector<16x2xf32>
    %165 = tpu.concatenate %163, %164 in 1 : vector<16x30xf32>, vector<16x2xf32> -> vector<16x32xf32>
    %166 = vector.shape_cast %35 : vector<16x1xi1> to vector<16x1xi1>
    %167 = vector.broadcast %166 : vector<16x1xi1> to vector<16x32xi1>
    %168 = arith.select %167, %165, %162 : vector<16x32xi1>, vector<16x32xf32>
    %169 = vector.extract_strided_slice %168 {offsets = [0, 4], sizes = [16, 28], strides = [1, 1]} : vector<16x32xf32> to vector<16x28xf32>
    %cst_48 = arith.constant 0.000000e+00 : f32
    %170 = vector.broadcast %cst_48 : f32 to vector<16x4xf32>
    %171 = tpu.concatenate %169, %170 in 1 : vector<16x28xf32>, vector<16x4xf32> -> vector<16x32xf32>
    %172 = vector.shape_cast %39 : vector<16x1xi1> to vector<16x1xi1>
    %173 = vector.broadcast %172 : vector<16x1xi1> to vector<16x32xi1>
    %174 = arith.select %173, %171, %168 : vector<16x32xi1>, vector<16x32xf32>
    %175 = vector.extract_strided_slice %174 {offsets = [0, 8], sizes = [16, 24], strides = [1, 1]} : vector<16x32xf32> to vector<16x24xf32>
    %cst_49 = arith.constant 0.000000e+00 : f32
    %176 = vector.broadcast %cst_49 : f32 to vector<16x8xf32>
    %177 = tpu.concatenate %175, %176 in 1 : vector<16x24xf32>, vector<16x8xf32> -> vector<16x32xf32>
    %178 = vector.shape_cast %43 : vector<16x1xi1> to vector<16x1xi1>
    %179 = vector.broadcast %178 : vector<16x1xi1> to vector<16x32xi1>
    %180 = arith.select %179, %177, %174 : vector<16x32xi1>, vector<16x32xf32>
    %181 = vector.extract_strided_slice %180 {offsets = [0, 0], sizes = [16, 16], strides = [1, 1]} : vector<16x32xf32> to vector<16x16xf32>
    %182 = arith.addf %155, %181 : vector<16x16xf32>
    %cst_50 = arith.constant 2.98023224E-8 : f32
    %183 = vector.broadcast %cst_50 : f32 to vector<16x16xf32>
    %184 = arith.mulf %182, %183 : vector<16x16xf32>
    %cst_51 = arith.constant -1.000000e+30 : f32
    %185 = vector.broadcast %cst_51 : f32 to vector<16x16xf32>
    %186 = arith.select %23, %185, %184 : vector<16x16xi1>, vector<16x16xf32>
    %cst_52 = arith.constant dense<0xFF800000> : vector<16xf32>
    %187 = vector.multi_reduction <maximumf>, %186, %cst_52 [1] : vector<16x16xf32> to vector<16xf32>
    %188 = vector.shape_cast %187 : vector<16xf32> to vector<16x1xf32>
    %189 = vector.broadcast %188 : vector<16x1xf32> to vector<16x16xf32>
    %190 = arith.subf %186, %189 : vector<16x16xf32>
    %191 = math.exp %190 : vector<16x16xf32>
    %cst_53 = arith.constant dense<0.000000e+00> : vector<16xf32>
    %192 = vector.multi_reduction <add>, %191, %cst_53 [1] : vector<16x16xf32> to vector<16xf32>
    %193 = vector.shape_cast %192 : vector<16xf32> to vector<16x1xf32>
    %194 = tpu.reciprocal %193 {approx = true} : vector<16x1xf32> -> vector<16x1xf32>
    %195 = vector.broadcast %194 : vector<16x1xf32> to vector<16x16xf32>
    %196 = arith.mulf %191, %195 : vector<16x16xf32>
    %197 = arith.truncf %196 : vector<16x16xf32> to vector<16x16xbf16>
    %cst_54 = arith.constant dense<0.000000e+00> : vector<16x32xf32>
    %198 = tpu.matmul %197, %153, %cst_54 {dimension_numbers = #tpu.dot_dimension_numbers<[1], [0], [0], [1], [0, 0, 1, 1], [], []>} : vector<16x16xbf16>, vector<16x32xbf16>, vector<16x32xf32> -> vector<16x32xf32>
    %199 = arith.truncf %198 : vector<16x32xf32> to vector<16x32xbf16>
    %c0_55 = arith.constant 0 : index
    %c0_56 = arith.constant 0 : index
    %c64 = arith.constant 64 : index
    %200 = vector.load %arg8[%c0_55, %c0_56, %c64] : memref<1x16x128xbf16, #tpu.memory_space<vmem>>, vector<1x16x32xbf16>
    %201 = vector.shape_cast %200 : vector<1x16x32xbf16> to vector<16x32xbf16>
    %202 = vector.shape_cast %199 : vector<16x32xbf16> to vector<1x16x32xbf16>
    tpu.vector_store %arg8[%c0_55, %c0_56, %c64], %202 {strides = array<i32>} : memref<1x16x128xbf16, #tpu.memory_space<vmem>>, vector<1x16x32xbf16>,
    %203 = vector.extract_strided_slice %6 {offsets = [0, 96], sizes = [16, 32], strides = [1, 1]} : vector<16x128xbf16> to vector<16x32xbf16>
    %204 = vector.extract_strided_slice %10 {offsets = [0, 96], sizes = [16, 32], strides = [1, 1]} : vector<16x128xbf16> to vector<16x32xbf16>
    %205 = vector.extract_strided_slice %12 {offsets = [0, 96], sizes = [16, 32], strides = [1, 1]} : vector<16x128xbf16> to vector<16x32xbf16>
    %206 = vector.extract_strided_slice %14 {offsets = [0, 96], sizes = [16, 32], strides = [1, 1]} : vector<16x128xbf16> to vector<16x32xbf16>
    %207 = vector.extract_strided_slice %15 {offsets = [0, 96], sizes = [32, 32], strides = [1, 1]} : vector<32x128xbf16> to vector<32x32xbf16>
    %cst_57 = arith.constant dense<0.000000e+00> : vector<16x16xf32>
    %208 = tpu.matmul %203, %205, %cst_57 {dimension_numbers = #tpu.dot_dimension_numbers<[1], [1], [0], [0], [0, 0, 1, 0], [], []>} : vector<16x32xbf16>, vector<16x32xbf16>, vector<16x16xf32> -> vector<16x16xf32>
    %cst_58 = arith.constant dense<0.000000e+00> : vector<16x32xf32>
    %209 = tpu.matmul %204, %207, %cst_58 {dimension_numbers = #tpu.dot_dimension_numbers<[1], [1], [0], [0], [0, 0, 1, 0], [], []>} : vector<16x32xbf16>, vector<32x32xbf16>, vector<16x32xf32> -> vector<16x32xf32>
    %210 = vector.extract_strided_slice %209 {offsets = [0, 1], sizes = [16, 31], strides = [1, 1]} : vector<16x32xf32> to vector<16x31xf32>
    %cst_59 = arith.constant 0.000000e+00 : f32
    %211 = vector.broadcast %cst_59 : f32 to vector<16x1xf32>
    %212 = tpu.concatenate %210, %211 in 1 : vector<16x31xf32>, vector<16x1xf32> -> vector<16x32xf32>
    %213 = vector.shape_cast %31 : vector<16x1xi1> to vector<16x1xi1>
    %214 = vector.broadcast %213 : vector<16x1xi1> to vector<16x32xi1>
    %215 = arith.select %214, %212, %209 : vector<16x32xi1>, vector<16x32xf32>
    %216 = vector.extract_strided_slice %215 {offsets = [0, 2], sizes = [16, 30], strides = [1, 1]} : vector<16x32xf32> to vector<16x30xf32>
    %cst_60 = arith.constant 0.000000e+00 : f32
    %217 = vector.broadcast %cst_60 : f32 to vector<16x2xf32>
    %218 = tpu.concatenate %216, %217 in 1 : vector<16x30xf32>, vector<16x2xf32> -> vector<16x32xf32>
    %219 = vector.shape_cast %35 : vector<16x1xi1> to vector<16x1xi1>
    %220 = vector.broadcast %219 : vector<16x1xi1> to vector<16x32xi1>
    %221 = arith.select %220, %218, %215 : vector<16x32xi1>, vector<16x32xf32>
    %222 = vector.extract_strided_slice %221 {offsets = [0, 4], sizes = [16, 28], strides = [1, 1]} : vector<16x32xf32> to vector<16x28xf32>
    %cst_61 = arith.constant 0.000000e+00 : f32
    %223 = vector.broadcast %cst_61 : f32 to vector<16x4xf32>
    %224 = tpu.concatenate %222, %223 in 1 : vector<16x28xf32>, vector<16x4xf32> -> vector<16x32xf32>
    %225 = vector.shape_cast %39 : vector<16x1xi1> to vector<16x1xi1>
    %226 = vector.broadcast %225 : vector<16x1xi1> to vector<16x32xi1>
    %227 = arith.select %226, %224, %221 : vector<16x32xi1>, vector<16x32xf32>
    %228 = vector.extract_strided_slice %227 {offsets = [0, 8], sizes = [16, 24], strides = [1, 1]} : vector<16x32xf32> to vector<16x24xf32>
    %cst_62 = arith.constant 0.000000e+00 : f32
    %229 = vector.broadcast %cst_62 : f32 to vector<16x8xf32>
    %230 = tpu.concatenate %228, %229 in 1 : vector<16x24xf32>, vector<16x8xf32> -> vector<16x32xf32>
    %231 = vector.shape_cast %43 : vector<16x1xi1> to vector<16x1xi1>
    %232 = vector.broadcast %231 : vector<16x1xi1> to vector<16x32xi1>
    %233 = arith.select %232, %230, %227 : vector<16x32xi1>, vector<16x32xf32>
    %234 = vector.extract_strided_slice %233 {offsets = [0, 0], sizes = [16, 16], strides = [1, 1]} : vector<16x32xf32> to vector<16x16xf32>
    %235 = arith.addf %208, %234 : vector<16x16xf32>
    %cst_63 = arith.constant 2.98023224E-8 : f32
    %236 = vector.broadcast %cst_63 : f32 to vector<16x16xf32>
    %237 = arith.mulf %235, %236 : vector<16x16xf32>
    %cst_64 = arith.constant -1.000000e+30 : f32
    %238 = vector.broadcast %cst_64 : f32 to vector<16x16xf32>
    %239 = arith.select %23, %238, %237 : vector<16x16xi1>, vector<16x16xf32>
    %cst_65 = arith.constant dense<0xFF800000> : vector<16xf32>
    %240 = vector.multi_reduction <maximumf>, %239, %cst_65 [1] : vector<16x16xf32> to vector<16xf32>
    %241 = vector.shape_cast %240 : vector<16xf32> to vector<16x1xf32>
    %242 = vector.broadcast %241 : vector<16x1xf32> to vector<16x16xf32>
    %243 = arith.subf %239, %242 : vector<16x16xf32>
    %244 = math.exp %243 : vector<16x16xf32>
    %cst_66 = arith.constant dense<0.000000e+00> : vector<16xf32>
    %245 = vector.multi_reduction <add>, %244, %cst_66 [1] : vector<16x16xf32> to vector<16xf32>
    %246 = vector.shape_cast %245 : vector<16xf32> to vector<16x1xf32>
    %247 = tpu.reciprocal %246 {approx = true} : vector<16x1xf32> -> vector<16x1xf32>
    %248 = vector.broadcast %247 : vector<16x1xf32> to vector<16x16xf32>
    %249 = arith.mulf %244, %248 : vector<16x16xf32>
    %250 = arith.truncf %249 : vector<16x16xf32> to vector<16x16xbf16>
    %cst_67 = arith.constant dense<0.000000e+00> : vector<16x32xf32>
    %251 = tpu.matmul %250, %206, %cst_67 {dimension_numbers = #tpu.dot_dimension_numbers<[1], [0], [0], [1], [0, 0, 1, 1], [], []>} : vector<16x16xbf16>, vector<16x32xbf16>, vector<16x32xf32> -> vector<16x32xf32>
    %252 = arith.truncf %251 : vector<16x32xf32> to vector<16x32xbf16>
    %c0_68 = arith.constant 0 : index
    %c0_69 = arith.constant 0 : index
    %c96 = arith.constant 96 : index
    %253 = vector.load %arg8[%c0_68, %c0_69, %c96] : memref<1x16x128xbf16, #tpu.memory_space<vmem>>, vector<1x16x32xbf16>
    %254 = vector.shape_cast %253 : vector<1x16x32xbf16> to vector<16x32xbf16>
    %255 = vector.shape_cast %252 : vector<16x32xbf16> to vector<1x16x32xbf16>
    tpu.vector_store %arg8[%c0_68, %c0_69, %c96], %255 {strides = array<i32>} : memref<1x16x128xbf16, #tpu.memory_space<vmem>>, vector<1x16x32xbf16>,
    return
  }
  func.func @transform_0(%arg0: i32, %arg1: i32) -> (i32, i32, i32) {
    %c0_i32 = arith.constant 0 : i32
    %c0_i32_0 = arith.constant 0 : i32
    return %arg0, %arg1, %c0_i32 : i32, i32, i32
  }
  func.func @transform_1(%arg0: i32, %arg1: i32) -> (i32, i32, i32) {
    %c0_i32 = arith.constant 0 : i32
    %c1_i32 = arith.constant 1 : i32
    %c0_i32_0 = arith.constant 0 : i32
    return %arg0, %c0_i32, %c1_i32 : i32, i32, i32
  }
  func.func @transform_2(%arg0: i32, %arg1: i32) -> (i32, i32, i32) {
    %c0_i32 = arith.constant 0 : i32
    %c2_i32 = arith.constant 2 : i32
    %c0_i32_0 = arith.constant 0 : i32
    return %arg0, %c0_i32, %c2_i32 : i32, i32, i32
  }
  func.func @transform_3(%arg0: i32, %arg1: i32) -> (i32, i32) {
    %c0_i32 = arith.constant 0 : i32
    %c0_i32_0 = arith.constant 0 : i32
    %c0_i32_1 = arith.constant 0 : i32
    return %c0_i32, %c0_i32_0 : i32, i32
  }
  func.func @transform_4(%arg0: i32, %arg1: i32) -> (i32, i32) {
    %c0_i32 = arith.constant 0 : i32
    %c0_i32_0 = arith.constant 0 : i32
    %c0_i32_1 = arith.constant 0 : i32
    return %c0_i32, %c0_i32_0 : i32, i32
  }
  func.func @transform_5(%arg0: i32, %arg1: i32) -> (i32, i32) {
    %c0_i32 = arith.constant 0 : i32
    %c0_i32_0 = arith.constant 0 : i32
    %c0_i32_1 = arith.constant 0 : i32
    return %c0_i32, %c0_i32_0 : i32, i32
  }
  func.func @transform_6(%arg0: i32, %arg1: i32) -> (i32, i32, i32) {
    %c0_i32 = arith.constant 0 : i32
    %c0_i32_0 = arith.constant 0 : i32
    return %arg0, %arg1, %c0_i32 : i32, i32, i32
  }
}

module attributes {stable_mosaic.version = 11 : i64} {
  func.func @_fc_res_ln_kernel(%arg0: i32, %arg1: i32, %arg2: memref<32x128xbf16, #tpu.memory_space<vmem>>, %arg3: memref<128x128xbf16, #tpu.memory_space<vmem>>, %arg4: memref<32x128xbf16, #tpu.memory_space<vmem>>, %arg5: memref<1x128xf32, #tpu.memory_space<vmem>>, %arg6: memref<1x128xf32, #tpu.memory_space<vmem>>, %arg7: memref<32x128xbf16, #tpu.memory_space<vmem>>, %arg8: memref<32x128xf32, #tpu.memory_space<vmem>>) attributes {dimension_semantics = [#tpu.dimension_semantics<parallel>, #tpu.dimension_semantics<arbitrary>], iteration_bounds = array<i64: 1, 1>, scalar_prefetch = 0 : i64, scratch_operands = 1 : i64, tpu.core_type = #tpu.core_type<tc>, window_params = [{transform_indices = @transform_0, window_bounds = array<i64: 32, 128>}, {transform_indices = @transform_1, window_bounds = array<i64: 128, 128>}, {transform_indices = @transform_2, window_bounds = array<i64: 32, 128>}, {pipeline_mode = #tpu.pipeline_mode<synchronous>, transform_indices = @transform_3, window_bounds = array<i64: 1, 128>}, {pipeline_mode = #tpu.pipeline_mode<synchronous>, transform_indices = @transform_4, window_bounds = array<i64: 1, 128>}, {transform_indices = @transform_5, window_bounds = array<i64: 32, 128>}]} {
    %c0_i32 = arith.constant 0 : i32
    %0 = arith.cmpi eq, %arg1, %c0_i32 : i32
    %1 = arith.extui %0 : i1 to i32
    %c0_i32_0 = arith.constant 0 : i32
    %2 = arith.cmpi ne, %1, %c0_i32_0 : i32
    scf.if %2 {
      %cst_10 = arith.constant 0.000000e+00 : f32
      %12 = vector.broadcast %cst_10 : f32 to vector<32x128xf32>
      %c0_11 = arith.constant 0 : index
      %c0_12 = arith.constant 0 : index
      %13 = vector.load %arg8[%c0_11, %c0_12] : memref<32x128xf32, #tpu.memory_space<vmem>>, vector<32x128xf32>
      tpu.vector_store %arg8[%c0_11, %c0_12], %12 {strides = array<i32>} : memref<32x128xf32, #tpu.memory_space<vmem>>, vector<32x128xf32>,
    } else {
    }
    %c0 = arith.constant 0 : index
    %c0_1 = arith.constant 0 : index
    %3 = vector.load %arg8[%c0, %c0_1] : memref<32x128xf32, #tpu.memory_space<vmem>>, vector<32x128xf32>
    %c0_2 = arith.constant 0 : index
    %c0_3 = arith.constant 0 : index
    %4 = vector.load %arg2[%c0_2, %c0_3] : memref<32x128xbf16, #tpu.memory_space<vmem>>, vector<32x128xbf16>
    %c0_4 = arith.constant 0 : index
    %c0_5 = arith.constant 0 : index
    %5 = vector.load %arg3[%c0_4, %c0_5] : memref<128x128xbf16, #tpu.memory_space<vmem>>, vector<128x128xbf16>
    %cst = arith.constant dense<0.000000e+00> : vector<32x128xf32>
    %6 = tpu.matmul %4, %5, %cst {dimension_numbers = #tpu.dot_dimension_numbers<[1], [0], [0], [1], [0, 0, 1, 1], [], []>} : vector<32x128xbf16>, vector<128x128xbf16>, vector<32x128xf32> -> vector<32x128xf32>
    %7 = arith.addf %3, %6 : vector<32x128xf32>
    %c0_6 = arith.constant 0 : index
    %c0_7 = arith.constant 0 : index
    %8 = vector.load %arg8[%c0_6, %c0_7] : memref<32x128xf32, #tpu.memory_space<vmem>>, vector<32x128xf32>
    tpu.vector_store %arg8[%c0_6, %c0_7], %7 {strides = array<i32>} : memref<32x128xf32, #tpu.memory_space<vmem>>, vector<32x128xf32>,
    %c0_i32_8 = arith.constant 0 : i32
    %9 = arith.cmpi eq, %arg1, %c0_i32_8 : i32
    %10 = arith.extui %9 : i1 to i32
    %c0_i32_9 = arith.constant 0 : i32
    %11 = arith.cmpi ne, %10, %c0_i32_9 : i32
    scf.if %11 {
      %c0_10 = arith.constant 0 : index
      %c0_11 = arith.constant 0 : index
      %12 = vector.load %arg8[%c0_10, %c0_11] : memref<32x128xf32, #tpu.memory_space<vmem>>, vector<32x128xf32>
      %c0_12 = arith.constant 0 : index
      %c0_13 = arith.constant 0 : index
      %13 = vector.load %arg4[%c0_12, %c0_13] : memref<32x128xbf16, #tpu.memory_space<vmem>>, vector<32x128xbf16>
      %14 = arith.extf %13 : vector<32x128xbf16> to vector<32x128xf32>
      %15 = arith.addf %12, %14 : vector<32x128xf32>
      %cst_14 = arith.constant dense<0.000000e+00> : vector<32xf32>
      %16 = vector.multi_reduction <add>, %15, %cst_14 [1] : vector<32x128xf32> to vector<32xf32>
      %17 = vector.shape_cast %16 : vector<32xf32> to vector<32x1xf32>
      %cst_15 = arith.constant 1.280000e+02 : f32
      %18 = vector.broadcast %cst_15 : f32 to vector<32x1xf32>
      %19 = arith.divf %17, %18 : vector<32x1xf32>
      %20 = vector.broadcast %19 : vector<32x1xf32> to vector<32x128xf32>
      %21 = arith.subf %15, %20 : vector<32x128xf32>
      %22 = arith.mulf %21, %21 : vector<32x128xf32>
      %cst_16 = arith.constant dense<0.000000e+00> : vector<32xf32>
      %23 = vector.multi_reduction <add>, %22, %cst_16 [1] : vector<32x128xf32> to vector<32xf32>
      %24 = vector.shape_cast %23 : vector<32xf32> to vector<32x1xf32>
      %cst_17 = arith.constant 1.280000e+02 : f32
      %25 = vector.broadcast %cst_17 : f32 to vector<32x1xf32>
      %26 = arith.divf %24, %25 : vector<32x1xf32>
      %cst_18 = arith.constant 9.99999974E-6 : f32
      %27 = vector.broadcast %cst_18 : f32 to vector<32x1xf32>
      %28 = arith.addf %26, %27 : vector<32x1xf32>
      %29 = math.rsqrt %28 : vector<32x1xf32>
      %30 = vector.broadcast %29 : vector<32x1xf32> to vector<32x128xf32>
      %31 = arith.mulf %21, %30 : vector<32x128xf32>
      %c0_19 = arith.constant 0 : index
      %c0_20 = arith.constant 0 : index
      %32 = vector.load %arg5[%c0_19, %c0_20] : memref<1x128xf32, #tpu.memory_space<vmem>>, vector<1x128xf32>
      %33 = vector.broadcast %32 : vector<1x128xf32> to vector<32x128xf32>
      %34 = arith.mulf %31, %33 : vector<32x128xf32>
      %c0_21 = arith.constant 0 : index
      %c0_22 = arith.constant 0 : index
      %35 = vector.load %arg6[%c0_21, %c0_22] : memref<1x128xf32, #tpu.memory_space<vmem>>, vector<1x128xf32>
      %36 = vector.broadcast %35 : vector<1x128xf32> to vector<32x128xf32>
      %37 = arith.addf %34, %36 : vector<32x128xf32>
      %38 = arith.truncf %37 : vector<32x128xf32> to vector<32x128xbf16>
      %c0_23 = arith.constant 0 : index
      %c0_24 = arith.constant 0 : index
      %39 = vector.load %arg7[%c0_23, %c0_24] : memref<32x128xbf16, #tpu.memory_space<vmem>>, vector<32x128xbf16>
      tpu.vector_store %arg7[%c0_23, %c0_24], %38 {strides = array<i32>} : memref<32x128xbf16, #tpu.memory_space<vmem>>, vector<32x128xbf16>,
    } else {
    }
    return
  }
  func.func @transform_0(%arg0: i32, %arg1: i32) -> (i32, i32) {
    %c0_i32 = arith.constant 0 : i32
    return %arg0, %arg1 : i32, i32
  }
  func.func @transform_1(%arg0: i32, %arg1: i32) -> (i32, i32) {
    %c0_i32 = arith.constant 0 : i32
    %c0_i32_0 = arith.constant 0 : i32
    return %arg1, %c0_i32 : i32, i32
  }
  func.func @transform_2(%arg0: i32, %arg1: i32) -> (i32, i32) {
    %c0_i32 = arith.constant 0 : i32
    %c0_i32_0 = arith.constant 0 : i32
    return %arg0, %c0_i32 : i32, i32
  }
  func.func @transform_3(%arg0: i32, %arg1: i32) -> (i32, i32) {
    %c0_i32 = arith.constant 0 : i32
    %c0_i32_0 = arith.constant 0 : i32
    %c0_i32_1 = arith.constant 0 : i32
    return %c0_i32, %c0_i32_0 : i32, i32
  }
  func.func @transform_4(%arg0: i32, %arg1: i32) -> (i32, i32) {
    %c0_i32 = arith.constant 0 : i32
    %c0_i32_0 = arith.constant 0 : i32
    %c0_i32_1 = arith.constant 0 : i32
    return %c0_i32, %c0_i32_0 : i32, i32
  }
  func.func @transform_5(%arg0: i32, %arg1: i32) -> (i32, i32) {
    %c0_i32 = arith.constant 0 : i32
    %c0_i32_0 = arith.constant 0 : i32
    return %arg0, %c0_i32 : i32, i32
  }
}

module attributes {stable_mosaic.version = 11 : i64} {
  func.func @_ffn_kernel(%arg0: i32, %arg1: memref<32x128xbf16, #tpu.memory_space<vmem>>, %arg2: memref<128x512xbf16, #tpu.memory_space<vmem>>, %arg3: memref<1x512xf32, #tpu.memory_space<vmem>>, %arg4: memref<512x128xbf16, #tpu.memory_space<vmem>>, %arg5: memref<1x128xf32, #tpu.memory_space<vmem>>, %arg6: memref<1x128xf32, #tpu.memory_space<vmem>>, %arg7: memref<1x128xf32, #tpu.memory_space<vmem>>, %arg8: memref<32x128xbf16, #tpu.memory_space<vmem>>) attributes {dimension_semantics = [#tpu.dimension_semantics<parallel>], iteration_bounds = array<i64: 1>, scalar_prefetch = 0 : i64, scratch_operands = 0 : i64, tpu.core_type = #tpu.core_type<tc>, window_params = [{transform_indices = @transform_0, window_bounds = array<i64: 32, 128>}, {pipeline_mode = #tpu.pipeline_mode<synchronous>, transform_indices = @transform_1, window_bounds = array<i64: 128, 512>}, {pipeline_mode = #tpu.pipeline_mode<synchronous>, transform_indices = @transform_2, window_bounds = array<i64: 1, 512>}, {pipeline_mode = #tpu.pipeline_mode<synchronous>, transform_indices = @transform_3, window_bounds = array<i64: 512, 128>}, {pipeline_mode = #tpu.pipeline_mode<synchronous>, transform_indices = @transform_4, window_bounds = array<i64: 1, 128>}, {pipeline_mode = #tpu.pipeline_mode<synchronous>, transform_indices = @transform_5, window_bounds = array<i64: 1, 128>}, {pipeline_mode = #tpu.pipeline_mode<synchronous>, transform_indices = @transform_6, window_bounds = array<i64: 1, 128>}, {transform_indices = @transform_7, window_bounds = array<i64: 32, 128>}]} {
    %c0 = arith.constant 0 : index
    %c0_0 = arith.constant 0 : index
    %0 = vector.load %arg1[%c0, %c0_0] : memref<32x128xbf16, #tpu.memory_space<vmem>>, vector<32x128xbf16>
    %c0_1 = arith.constant 0 : index
    %c0_2 = arith.constant 0 : index
    %1 = vector.load %arg2[%c0_1, %c0_2] : memref<128x512xbf16, #tpu.memory_space<vmem>>, vector<128x512xbf16>
    %cst = arith.constant dense<0.000000e+00> : vector<32x512xf32>
    %2 = tpu.matmul %0, %1, %cst {dimension_numbers = #tpu.dot_dimension_numbers<[1], [0], [0], [1], [0, 0, 1, 1], [], []>} : vector<32x128xbf16>, vector<128x512xbf16>, vector<32x512xf32> -> vector<32x512xf32>
    %c0_3 = arith.constant 0 : index
    %c0_4 = arith.constant 0 : index
    %3 = vector.load %arg3[%c0_3, %c0_4] : memref<1x512xf32, #tpu.memory_space<vmem>>, vector<1x512xf32>
    %4 = vector.broadcast %3 : vector<1x512xf32> to vector<32x512xf32>
    %5 = arith.addf %2, %4 : vector<32x512xf32>
    %cst_5 = arith.constant 0.000000e+00 : f32
    %6 = vector.broadcast %cst_5 : f32 to vector<32x512xf32>
    %7 = arith.maximumf %5, %6 : vector<32x512xf32>
    %8 = arith.truncf %7 : vector<32x512xf32> to vector<32x512xbf16>
    %c0_6 = arith.constant 0 : index
    %c0_7 = arith.constant 0 : index
    %9 = vector.load %arg4[%c0_6, %c0_7] : memref<512x128xbf16, #tpu.memory_space<vmem>>, vector<512x128xbf16>
    %cst_8 = arith.constant dense<0.000000e+00> : vector<32x128xf32>
    %10 = tpu.matmul %8, %9, %cst_8 {dimension_numbers = #tpu.dot_dimension_numbers<[1], [0], [0], [1], [0, 0, 1, 1], [], []>} : vector<32x512xbf16>, vector<512x128xbf16>, vector<32x128xf32> -> vector<32x128xf32>
    %c0_9 = arith.constant 0 : index
    %c0_10 = arith.constant 0 : index
    %11 = vector.load %arg5[%c0_9, %c0_10] : memref<1x128xf32, #tpu.memory_space<vmem>>, vector<1x128xf32>
    %12 = vector.broadcast %11 : vector<1x128xf32> to vector<32x128xf32>
    %13 = arith.addf %10, %12 : vector<32x128xf32>
    %14 = arith.extf %0 : vector<32x128xbf16> to vector<32x128xf32>
    %15 = arith.addf %13, %14 : vector<32x128xf32>
    %cst_11 = arith.constant dense<0.000000e+00> : vector<32xf32>
    %16 = vector.multi_reduction <add>, %15, %cst_11 [1] : vector<32x128xf32> to vector<32xf32>
    %17 = vector.shape_cast %16 : vector<32xf32> to vector<32x1xf32>
    %cst_12 = arith.constant 1.280000e+02 : f32
    %18 = vector.broadcast %cst_12 : f32 to vector<32x1xf32>
    %19 = arith.divf %17, %18 : vector<32x1xf32>
    %20 = vector.broadcast %19 : vector<32x1xf32> to vector<32x128xf32>
    %21 = arith.subf %15, %20 : vector<32x128xf32>
    %22 = arith.mulf %21, %21 : vector<32x128xf32>
    %cst_13 = arith.constant dense<0.000000e+00> : vector<32xf32>
    %23 = vector.multi_reduction <add>, %22, %cst_13 [1] : vector<32x128xf32> to vector<32xf32>
    %24 = vector.shape_cast %23 : vector<32xf32> to vector<32x1xf32>
    %cst_14 = arith.constant 1.280000e+02 : f32
    %25 = vector.broadcast %cst_14 : f32 to vector<32x1xf32>
    %26 = arith.divf %24, %25 : vector<32x1xf32>
    %cst_15 = arith.constant 9.99999974E-6 : f32
    %27 = vector.broadcast %cst_15 : f32 to vector<32x1xf32>
    %28 = arith.addf %26, %27 : vector<32x1xf32>
    %29 = math.rsqrt %28 : vector<32x1xf32>
    %30 = vector.broadcast %29 : vector<32x1xf32> to vector<32x128xf32>
    %31 = arith.mulf %21, %30 : vector<32x128xf32>
    %c0_16 = arith.constant 0 : index
    %c0_17 = arith.constant 0 : index
    %32 = vector.load %arg6[%c0_16, %c0_17] : memref<1x128xf32, #tpu.memory_space<vmem>>, vector<1x128xf32>
    %33 = vector.broadcast %32 : vector<1x128xf32> to vector<32x128xf32>
    %34 = arith.mulf %31, %33 : vector<32x128xf32>
    %c0_18 = arith.constant 0 : index
    %c0_19 = arith.constant 0 : index
    %35 = vector.load %arg7[%c0_18, %c0_19] : memref<1x128xf32, #tpu.memory_space<vmem>>, vector<1x128xf32>
    %36 = vector.broadcast %35 : vector<1x128xf32> to vector<32x128xf32>
    %37 = arith.addf %34, %36 : vector<32x128xf32>
    %38 = arith.truncf %37 : vector<32x128xf32> to vector<32x128xbf16>
    %c0_20 = arith.constant 0 : index
    %c0_21 = arith.constant 0 : index
    %39 = vector.load %arg8[%c0_20, %c0_21] : memref<32x128xbf16, #tpu.memory_space<vmem>>, vector<32x128xbf16>
    tpu.vector_store %arg8[%c0_20, %c0_21], %38 {strides = array<i32>} : memref<32x128xbf16, #tpu.memory_space<vmem>>, vector<32x128xbf16>,
    return
  }
  func.func @transform_0(%arg0: i32) -> (i32, i32) {
    %c0_i32 = arith.constant 0 : i32
    %c0_i32_0 = arith.constant 0 : i32
    return %arg0, %c0_i32 : i32, i32
  }
  func.func @transform_1(%arg0: i32) -> (i32, i32) {
    %c0_i32 = arith.constant 0 : i32
    %c0_i32_0 = arith.constant 0 : i32
    %c0_i32_1 = arith.constant 0 : i32
    return %c0_i32, %c0_i32_0 : i32, i32
  }
  func.func @transform_2(%arg0: i32) -> (i32, i32) {
    %c0_i32 = arith.constant 0 : i32
    %c0_i32_0 = arith.constant 0 : i32
    %c0_i32_1 = arith.constant 0 : i32
    return %c0_i32, %c0_i32_0 : i32, i32
  }
  func.func @transform_3(%arg0: i32) -> (i32, i32) {
    %c0_i32 = arith.constant 0 : i32
    %c0_i32_0 = arith.constant 0 : i32
    %c0_i32_1 = arith.constant 0 : i32
    return %c0_i32, %c0_i32_0 : i32, i32
  }
  func.func @transform_4(%arg0: i32) -> (i32, i32) {
    %c0_i32 = arith.constant 0 : i32
    %c0_i32_0 = arith.constant 0 : i32
    %c0_i32_1 = arith.constant 0 : i32
    return %c0_i32, %c0_i32_0 : i32, i32
  }
  func.func @transform_5(%arg0: i32) -> (i32, i32) {
    %c0_i32 = arith.constant 0 : i32
    %c0_i32_0 = arith.constant 0 : i32
    %c0_i32_1 = arith.constant 0 : i32
    return %c0_i32, %c0_i32_0 : i32, i32
  }
  func.func @transform_6(%arg0: i32) -> (i32, i32) {
    %c0_i32 = arith.constant 0 : i32
    %c0_i32_0 = arith.constant 0 : i32
    %c0_i32_1 = arith.constant 0 : i32
    return %c0_i32, %c0_i32_0 : i32, i32
  }
  func.func @transform_7(%arg0: i32) -> (i32, i32) {
    %c0_i32 = arith.constant 0 : i32
    %c0_i32_0 = arith.constant 0 : i32
    return %arg0, %c0_i32 : i32, i32
  }
}

module attributes {stable_mosaic.version = 11 : i64} {
  func.func @_mm_kernel(%arg0: i32, %arg1: i32, %arg2: i32, %arg3: memref<32x128xbf16, #tpu.memory_space<vmem>>, %arg4: memref<256x128xbf16, #tpu.memory_space<vmem>>, %arg5: memref<1x256xf32, #tpu.memory_space<vmem>>, %arg6: memref<32x256xf32, #tpu.memory_space<vmem>>) attributes {dimension_semantics = [#tpu.dimension_semantics<parallel>, #tpu.dimension_semantics<parallel>, #tpu.dimension_semantics<arbitrary>], iteration_bounds = array<i64: 1, 1, 1>, scalar_prefetch = 0 : i64, scratch_operands = 0 : i64, tpu.core_type = #tpu.core_type<tc>, window_params = [{transform_indices = @transform_0, window_bounds = array<i64: 32, 128>}, {transform_indices = @transform_1, window_bounds = array<i64: 256, 128>}, {transform_indices = @transform_2, window_bounds = array<i64: 1, 256>}, {transform_indices = @transform_3, window_bounds = array<i64: 32, 256>}]} {
    %c0_i32 = arith.constant 0 : i32
    %0 = arith.cmpi eq, %arg2, %c0_i32 : i32
    %1 = arith.extui %0 : i1 to i32
    %c0_i32_0 = arith.constant 0 : i32
    %2 = arith.cmpi ne, %1, %c0_i32_0 : i32
    scf.if %2 {
      %cst_10 = arith.constant 0.000000e+00 : f32
      %12 = vector.broadcast %cst_10 : f32 to vector<32x256xf32>
      %c0_11 = arith.constant 0 : index
      %c0_12 = arith.constant 0 : index
      %13 = vector.load %arg6[%c0_11, %c0_12] : memref<32x256xf32, #tpu.memory_space<vmem>>, vector<32x256xf32>
      tpu.vector_store %arg6[%c0_11, %c0_12], %12 {strides = array<i32>} : memref<32x256xf32, #tpu.memory_space<vmem>>, vector<32x256xf32>,
    } else {
    }
    %c0 = arith.constant 0 : index
    %c0_1 = arith.constant 0 : index
    %3 = vector.load %arg6[%c0, %c0_1] : memref<32x256xf32, #tpu.memory_space<vmem>>, vector<32x256xf32>
    %c0_2 = arith.constant 0 : index
    %c0_3 = arith.constant 0 : index
    %4 = vector.load %arg3[%c0_2, %c0_3] : memref<32x128xbf16, #tpu.memory_space<vmem>>, vector<32x128xbf16>
    %c0_4 = arith.constant 0 : index
    %c0_5 = arith.constant 0 : index
    %5 = vector.load %arg4[%c0_4, %c0_5] : memref<256x128xbf16, #tpu.memory_space<vmem>>, vector<256x128xbf16>
    %cst = arith.constant dense<0.000000e+00> : vector<32x256xf32>
    %6 = tpu.matmul %4, %5, %cst {dimension_numbers = #tpu.dot_dimension_numbers<[1], [1], [0], [0], [0, 0, 1, 0], [], []>} : vector<32x128xbf16>, vector<256x128xbf16>, vector<32x256xf32> -> vector<32x256xf32>
    %7 = arith.addf %3, %6 : vector<32x256xf32>
    %c0_6 = arith.constant 0 : index
    %c0_7 = arith.constant 0 : index
    %8 = vector.load %arg6[%c0_6, %c0_7] : memref<32x256xf32, #tpu.memory_space<vmem>>, vector<32x256xf32>
    tpu.vector_store %arg6[%c0_6, %c0_7], %7 {strides = array<i32>} : memref<32x256xf32, #tpu.memory_space<vmem>>, vector<32x256xf32>,
    %c0_i32_8 = arith.constant 0 : i32
    %9 = arith.cmpi eq, %arg2, %c0_i32_8 : i32
    %10 = arith.extui %9 : i1 to i32
    %c0_i32_9 = arith.constant 0 : i32
    %11 = arith.cmpi ne, %10, %c0_i32_9 : i32
    scf.if %11 {
      %c0_10 = arith.constant 0 : index
      %c0_11 = arith.constant 0 : index
      %12 = vector.load %arg6[%c0_10, %c0_11] : memref<32x256xf32, #tpu.memory_space<vmem>>, vector<32x256xf32>
      %c0_12 = arith.constant 0 : index
      %c0_13 = arith.constant 0 : index
      %13 = vector.load %arg5[%c0_12, %c0_13] : memref<1x256xf32, #tpu.memory_space<vmem>>, vector<1x256xf32>
      %14 = vector.broadcast %13 : vector<1x256xf32> to vector<32x256xf32>
      %15 = arith.addf %12, %14 : vector<32x256xf32>
      %c0_14 = arith.constant 0 : index
      %c0_15 = arith.constant 0 : index
      %16 = vector.load %arg6[%c0_14, %c0_15] : memref<32x256xf32, #tpu.memory_space<vmem>>, vector<32x256xf32>
      tpu.vector_store %arg6[%c0_14, %c0_15], %15 {strides = array<i32>} : memref<32x256xf32, #tpu.memory_space<vmem>>, vector<32x256xf32>,
    } else {
    }
    return
  }
  func.func @transform_0(%arg0: i32, %arg1: i32, %arg2: i32) -> (i32, i32) {
    %c0_i32 = arith.constant 0 : i32
    return %arg0, %arg2 : i32, i32
  }
  func.func @transform_1(%arg0: i32, %arg1: i32, %arg2: i32) -> (i32, i32) {
    %c0_i32 = arith.constant 0 : i32
    return %arg1, %arg2 : i32, i32
  }
  func.func @transform_2(%arg0: i32, %arg1: i32, %arg2: i32) -> (i32, i32) {
    %c0_i32 = arith.constant 0 : i32
    %c0_i32_0 = arith.constant 0 : i32
    return %c0_i32, %arg1 : i32, i32
  }
  func.func @transform_3(%arg0: i32, %arg1: i32, %arg2: i32) -> (i32, i32) {
    %c0_i32 = arith.constant 0 : i32
    return %arg0, %arg1 : i32, i32
  }
}

</mosaic_0001>

<bundles_post_ra>
// kernel: transformer_xl_forward.12
= control target key start
LH: loop header
LB: loop body
LE: loop exit
PB: predicated region body
PF: predicated region fallthrough
CT: control target
= control target key end

     0   :  { %s312_s1 = inlined_call_operand.vmem [shape: bf16[128,128], index: 1, kind: input, shape index: {}]   ;;  %s313_s0 = inlined_call_operand.vmem [shape: bf16[32,128], index: 0, kind: input, shape index: {}]   ;;  %s314_s2 = inlined_call_operand.vmem [shape: bf16[32,128], index: 2, kind: output, shape index: {}]  }
   0x1   :  { %v251_v0 = vld [vmem:[%s312_s1] sm:$0xff]   ;;  %v252_v1 = vld [vmem:[%s312_s1 + $0x8] sm:$0xff]   ;;  %v253_v2 = vld [vmem:[%s312_s1 + $0x10] sm:$0xff]  }
   0x2   :  { %231 = vmatprep.subr.bf16.mxu0 %v251_v0  ;;  %v254_v3 = vld [vmem:[%s312_s1 + $0x18] sm:$0xff]   ;;  %v259_v4 = vld [vmem:[%s313_s0] sm:$0xff]   ;;  %v256_v6 = vld [vmem:[%s312_s1 + $0x28] sm:$0xff]  }
   0x3   :  { %232 = vmatpush3.bf16.msra.mxu0 %v251_v0  ;;  %247 = vmatprep.mubr.bf16.mxu0 %v259_v4  ;;  %v255_v5 = vld [vmem:[%s312_s1 + $0x20] sm:$0xff]   ;;  %v257_v7 = vld [vmem:[%s312_s1 + $0x30] sm:$0xff]   ;;  %v258_v8 = vld [vmem:[%s312_s1 + $0x38] sm:$0xff]  }
   0x4   :  { %233 = vmatprep.subr.bf16.mxu0 %v252_v1  ;;  %v260_v9 = vld [vmem:[%s313_s0 + $0x8] sm:$0xff]  }
   0x7   :  { %234 = vmatpush3.bf16.msra.mxu0 %v252_v1 }
   0x8   :  { %235 = vmatprep.subr.bf16.mxu0 %v253_v2 }
   0xb   :  { %236 = vmatpush3.bf16.msra.mxu0 %v253_v2 }
   0xc   :  { %237 = vmatprep.subr.bf16.mxu0 %v254_v3 }
   0xf   :  { %238 = vmatpush3.bf16.msra.mxu0 %v254_v3 }
  0x10   :  { %239 = vmatprep.subr.bf16.mxu0 %v255_v5 }
  0x13   :  { %240 = vmatpush3.bf16.msra.mxu0 %v255_v5 }
  0x14   :  { %241 = vmatprep.subr.bf16.mxu0 %v256_v6 }
  0x17   :  { %242 = vmatpush3.bf16.msra.mxu0 %v256_v6 }
  0x18   :  { %243 = vmatprep.subr.bf16.mxu0 %v257_v7 }
  0x1b   :  { %244 = vmatpush3.bf16.msra.mxu0 %v257_v7 }
  0x1c   :  { %245 = vmatprep.subr.bf16.mxu0 %v258_v8 }
  0x1f   :  { %246 = vmatpush3.bf16.msra.mxu0 %v258_v8 }
  0x22   :  { %248 = vmatmul.mubr.bf16.vlgmr.msra.gmra.mrb[0].mxu0 %v260_v9 }
  0xf5   :  { %v249_v10 = vpop.f32.mrb[0].mxu0 }
  0xf6   :  { %v138_v11 = vpop.f32.mrb[1].mxu0 }
  0xf7   :  { %v250_v12 = vpop.f32.mrb[2].mxu0 }
  0xf8   :  { %v218_v13 = vpack.c.bf16 %v250_v12, %v249_v10  ;;  %v141_v14 = vpop.f32.mrb[3].mxu0 }
  0xf9   :  { %v213_v15 = vpack.c.bf16 %v141_v14, %v138_v11 }
  0xfa   :  { %220 = vst [vmem:[%s314_s2 + $0x8] sm:$0xff] %v218_v13  }
  0xfb   :  { %214 = vst [vmem:[%s314_s2] sm:$0xff] %v213_v15  }

// kernel: transformer_xl_forward.11
= control target key start
LH: loop header
LB: loop body
LE: loop exit
PB: predicated region body
PF: predicated region fallthrough
CT: control target
= control target key end

     0   :  { %v516_v1 = vmov 0   ;;  %s634_s1 = inlined_call_operand.vmem [shape: bf16[128,384], index: 1, kind: input, shape index: {}]   ;;  %s635_s0 = inlined_call_operand.vmem [shape: bf16[32,128], index: 0, kind: input, shape index: {}]   ;;  %s636_s2 = inlined_call_operand.vmem [shape: bf16[32,384], index: 2, kind: output, shape index: {}]  }
   0x1   :  { %v482_v0 = vld [vmem:[%s634_s1 + $0x4] ss:$12 sps:$4 sm:$0xff]   ;;  %248 = vmatprep.mubr.bf16.mxu0 %v516_v1  ;;  %v484_v2 = vld [vmem:[%s634_s1] ss:$12 sps:$4 sm:$0xff]   ;;  %v485_v3 = vld [vmem:[%s634_s1 + $0x1c] ss:$12 sps:$4 sm:$0xff]  }
   0x2   :  { %216 = vmatprep.subr.bf16.mxu0 %v482_v0  ;;  %v487_v4 = vld [vmem:[%s634_s1 + $0x18] ss:$12 sps:$4 sm:$0xff]   ;;  %v488_v5 = vld [vmem:[%s634_s1 + $0x8] ss:$12 sps:$4 sm:$0xff]   ;;  %v492_v7 = vld [vmem:[%s634_s1 + $0x20] ss:$12 sps:$4 sm:$0xff]  }
   0x3   :  { %217 = vmatpush1.bf16.msra.mxu0 %v484_v2  ;;  %v489_v6 = vld [vmem:[%s634_s1 + $0x34] ss:$12 sps:$4 sm:$0xff]   ;;  %461 = vmatprep.subr.bf16.mxu1 %v488_v5  ;;  %v491_v8 = vld [vmem:[%s634_s1 + $0x30] ss:$12 sps:$4 sm:$0xff]   ;;  %v493_v9 = vld [vmem:[%s634_s1 + $0x4c] ss:$12 sps:$4 sm:$0xff]  }
   0x4   :  { %218 = vmatprep.subr.bf16.mxu0 %v485_v3  ;;  %462 = vmatpush3.bf16.msra.mxu1 %v488_v5  ;;  %v496_v10 = vld [vmem:[%s634_s1 + $0x38] ss:$12 sps:$4 sm:$0xff]   ;;  %v495_v11 = vld [vmem:[%s634_s1 + $0x48] ss:$12 sps:$4 sm:$0xff]   ;;  %v500_v12 = vld [vmem:[%s634_s1 + $0x50] ss:$12 sps:$4 sm:$0xff]  }
   0x5   :  { %463 = vmatprep.subr.bf16.mxu1 %v492_v7  ;;  %v497_v13 = vld [vmem:[%s634_s1 + $0x64] ss:$12 sps:$4 sm:$0xff]   ;;  %v499_v14 = vld [vmem:[%s634_s1 + $0x60] ss:$12 sps:$4 sm:$0xff]   ;;  %v504_v15 = vld [vmem:[%s634_s1 + $0x68] ss:$12 sps:$4 sm:$0xff]  }
   0x6   :  { %v501_v16 = vld [vmem:[%s634_s1 + $0x7c] ss:$12 sps:$4 sm:$0xff]   ;;  %v503_v17 = vld [vmem:[%s634_s1 + $0x78] ss:$12 sps:$4 sm:$0xff]   ;;  %v508_v19 = vld [vmem:[%s634_s1 + $0x80] ss:$12 sps:$4 sm:$0xff]  }
   0x7   :  { %219 = vmatpush1.bf16.msra.mxu0 %v487_v4  ;;  %v513_v18 = vld [vmem:[%s635_s0] sm:$0xff]   ;;  %v507_v21 = vld [vmem:[%s634_s1 + $0x90] ss:$12 sps:$4 sm:$0xff]   ;;  %v509_v23 = vld [vmem:[%s634_s1 + $0xac] ss:$12 sps:$4 sm:$0xff]  }
   0x8   :  { %220 = vmatprep.subr.bf16.mxu0 %v489_v6  ;;  %464 = vmatpush3.bf16.msra.mxu1 %v492_v7  ;;  %v505_v20 = vld [vmem:[%s634_s1 + $0x94] ss:$12 sps:$4 sm:$0xff]   ;;  %v512_v22 = vld [vmem:[%s634_s1 + $0x98] ss:$12 sps:$4 sm:$0xff]   ;;  %v514_v25 = vld [vmem:[%s634_s1 + $0xb0] ss:$12 sps:$4 sm:$0xff]  }
   0x9   :  { %465 = vmatprep.subr.bf16.mxu1 %v496_v10  ;;  %477 = vmatprep.mubr.bf16.mxu1 %v513_v18  ;;  %v511_v24 = vld [vmem:[%s634_s1 + $0xa8] ss:$12 sps:$4 sm:$0xff]  }
   0xa   :  { %v515_v26 = vld [vmem:[%s635_s0 + $0x8] sm:$0xff]  }
   0xb   :  { %221 = vmatpush1.bf16.msra.mxu0 %v491_v8 }
   0xc   :  { %222 = vmatprep.subr.bf16.mxu0 %v493_v9  ;;  %466 = vmatpush3.bf16.msra.mxu1 %v496_v10 }
   0xd   :  { %467 = vmatprep.subr.bf16.mxu1 %v500_v12 }
   0xf   :  { %223 = vmatpush1.bf16.msra.mxu0 %v495_v11 }
  0x10   :  { %224 = vmatprep.subr.bf16.mxu0 %v497_v13  ;;  %468 = vmatpush3.bf16.msra.mxu1 %v500_v12 }
  0x11   :  { %469 = vmatprep.subr.bf16.mxu1 %v504_v15 }
  0x13   :  { %225 = vmatpush1.bf16.msra.mxu0 %v499_v14 }
  0x14   :  { %226 = vmatprep.subr.bf16.mxu0 %v501_v16  ;;  %470 = vmatpush3.bf16.msra.mxu1 %v504_v15 }
  0x15   :  { %471 = vmatprep.subr.bf16.mxu1 %v508_v19 }
  0x17   :  { %227 = vmatpush1.bf16.msra.mxu0 %v503_v17 }
  0x18   :  { %228 = vmatprep.subr.bf16.mxu0 %v505_v20  ;;  %472 = vmatpush3.bf16.msra.mxu1 %v508_v19 }
  0x19   :  { %473 = vmatprep.subr.bf16.mxu1 %v512_v22 }
  0x1b   :  { %229 = vmatpush1.bf16.msra.mxu0 %v507_v21 }
  0x1c   :  { %230 = vmatprep.subr.bf16.mxu0 %v509_v23  ;;  %474 = vmatpush3.bf16.msra.mxu1 %v512_v22 }
  0x1d   :  { %475 = vmatprep.subr.bf16.mxu1 %v514_v25 }
  0x1f   :  { %231 = vmatpush1.bf16.msra.mxu0 %v511_v24 }
  0x20   :  { %476 = vmatpush3.bf16.msra.mxu1 %v514_v25 }
  0x22   :  { %249 = vmatmul.mubr.bf16.vlgmr.msra.gmra.mrb[0].mxu0 %v513_v18 }
  0x23   :  { %258 = vmatprep.mubr.bf16.mxu0 %v516_v1  ;;  %478 = vmatmul.mubr.bf16.vlgmr.msra.gmra.mrb[0].mxu1 %v515_v26 }
  0x2a   :  { %259 = vmatmul.mubr.bf16.gmra.mrb[4].mxu0 %v515_v26 }
  0xf5   :  { %v250_v27 = vpop.f32.mrb[0].mxu0 }
  0xf6   :  { %v252_v28 = vpop.f32.mrb[1].mxu0  ;;  %v479_v32 = vpop.f32.mrb[0].mxu1 }
  0xf7   :  { %v443_v29 = vpack.c.bf16 %v252_v28, %v250_v27  ;;  %v254_v30 = vpop.f32.mrb[2].mxu0  ;;  %v448_v34 = vpack.c.bf16 %v479_v32, %v479_v32  ;;  %v303_v35 = vpop.f32.mrb[1].mxu1 }
  0xf8   :  { %v256_v31 = vpop.f32.mrb[3].mxu0  ;;  %v444_v36 = vpack.c.bf16 %v303_v35, %v303_v35  ;;  %v480_v37 = vpop.f32.mrb[2].mxu1 }
  0xf9   :  { %397 = vst [vmem:[%s636_s2] sm:$0xff] %v443_v29  ;;  %v445_v33 = vpack.c.bf16 %v256_v31, %v254_v30  ;;  %402 = vst [vmem:[%s636_s2 + $0x20] sm:$0xf] %v448_v34  ;;  %v450_v38 = vpack.c.bf16 %v480_v37, %v480_v37  ;;  %v306_v39 = vpop.f32.mrb[3].mxu1 }
  0xfa   :  { %398 = vst [vmem:[%s636_s2 + $0x8] sm:$0xf] %v444_v36  ;;  %v446_v40 = vpack.c.bf16 %v306_v39, %v306_v39 }
  0xfb   :  { %399 = vst [vmem:[%s636_s2 + $0xc] sm:$0xff] %v445_v33  ;;  %404 = vst [vmem:[%s636_s2 + $0x2c] sm:$0xf] %v450_v38 }
  0xfc   :  { %400 = vst [vmem:[%s636_s2 + $0x14] sm:$0xf] %v446_v40 }
  0xfd   :  { %v260_v41 = vpop.f32.mrb[4].mxu0 }
  0xfe   :  { %v262_v42 = vpop.f32.mrb[5].mxu0 }
  0xff   :  { %v447_v43 = vpack.c.bf16 %v262_v42, %v260_v41  ;;  %v264_v44 = vpop.f32.mrb[6].mxu0 }
 0x100   :  { %v266_v45 = vpop.f32.mrb[7].mxu0 }
 0x101   :  { %401 = vst [vmem:[%s636_s2 + $0x18] sm:$0xff] %v447_v43  ;;  %v449_v46 = vpack.c.bf16 %v266_v45, %v264_v44 }
 0x103   :  { %403 = vst [vmem:[%s636_s2 + $0x24] sm:$0xff] %v449_v46 }

// kernel: transformer_xl_forward.14
= control target key start
LH: loop header
LB: loop body
LE: loop exit
PB: predicated region body
PF: predicated region fallthrough
CT: control target
= control target key end

     0   :  { %s446_s1 = inlined_call_operand.vmem [shape: bf16[128,128], index: 1, kind: input, shape index: {}]   ;;  %s447_s0 = inlined_call_operand.vmem [shape: bf16[32,128], index: 0, kind: input, shape index: {}]   ;;  %s448_s2 = inlined_call_operand.vmem [shape: bf16[32,128], index: 2, kind: input, shape index: {}]   ;;  %s449_s3 = inlined_call_operand.vmem [shape: f32[1,128], index: 3, kind: input, shape index: {}]   ;;  %s450_s4 = inlined_call_operand.vmem [shape: f32[1,128], index: 4, kind: input, shape index: {}]   ;;  %s451_s5 = inlined_call_operand.vmem [shape: bf16[32,128], index: 5, kind: output, shape index: {}]  }
   0x1   :  { %v350_v0 = vld [vmem:[%s446_s1] sm:$0xff]   ;;  %v351_v1 = vld [vmem:[%s446_s1 + $0x8] sm:$0xff]   ;;  %v352_v2 = vld [vmem:[%s446_s1 + $0x10] sm:$0xff]  }
   0x2   :  { %330 = vmatprep.subr.bf16.mxu0 %v350_v0  ;;  %v353_v3 = vld [vmem:[%s446_s1 + $0x18] sm:$0xff]   ;;  %v358_v4 = vld [vmem:[%s447_s0] sm:$0xff]   ;;  %v355_v6 = vld [vmem:[%s446_s1 + $0x28] sm:$0xff]  }
   0x3   :  { %331 = vmatpush3.bf16.msra.mxu0 %v350_v0  ;;  %346 = vmatprep.mubr.bf16.mxu0 %v358_v4  ;;  %v354_v5 = vld [vmem:[%s446_s1 + $0x20] sm:$0xff]   ;;  %v356_v7 = vld [vmem:[%s446_s1 + $0x30] sm:$0xff]   ;;  %v357_v8 = vld [vmem:[%s446_s1 + $0x38] sm:$0xff]  }
   0x4   :  { %332 = vmatprep.subr.bf16.mxu0 %v351_v1  ;;  %v359_v9 = vld [vmem:[%s447_s0 + $0x8] sm:$0xff]   ;;  %v301_v11 = vld [vmem:[%s448_s2] sm:$0xff]  }
   0x5   :  { %v318_v10 = vld [vmem:[%s448_s2 + $0x8] sm:$0xff]   ;;  %v302_v13 = vunpack.c.l.bf16 %v301_v11  ;;  %v303_v20 = vunpack.c.h.bf16 %v301_v11  ;;  %v290_v54 = vld [vmem:[%s449_s3] ss:$0 sm:$0xff] }
   0x6   :  { %v306_v12 = vunpack.c.l.bf16 %v318_v10  ;;  %v307_v17 = vunpack.c.h.bf16 %v318_v10  ;;  %v291_v59 = vld [vmem:[%s450_s4] ss:$0 sm:$0xff] }
   0x7   :  { %333 = vmatpush3.bf16.msra.mxu0 %v351_v1 }
   0x8   :  { %334 = vmatprep.subr.bf16.mxu0 %v352_v2 }
   0xb   :  { %335 = vmatpush3.bf16.msra.mxu0 %v352_v2 }
   0xc   :  { %336 = vmatprep.subr.bf16.mxu0 %v353_v3 }
   0xf   :  { %337 = vmatpush3.bf16.msra.mxu0 %v353_v3 }
  0x10   :  { %338 = vmatprep.subr.bf16.mxu0 %v354_v5 }
  0x13   :  { %339 = vmatpush3.bf16.msra.mxu0 %v354_v5 }
  0x14   :  { %340 = vmatprep.subr.bf16.mxu0 %v355_v6 }
  0x17   :  { %341 = vmatpush3.bf16.msra.mxu0 %v355_v6 }
  0x18   :  { %342 = vmatprep.subr.bf16.mxu0 %v356_v7 }
  0x1b   :  { %343 = vmatpush3.bf16.msra.mxu0 %v356_v7 }
  0x1c   :  { %344 = vmatprep.subr.bf16.mxu0 %v357_v8 }
  0x1f   :  { %345 = vmatpush3.bf16.msra.mxu0 %v357_v8 }
  0x22   :  { %347 = vmatmul.mubr.bf16.vlgmr.msra.gmra.mrb[0].mxu0 %v359_v9 }
  0xf5   :  { %v348_v14 = vpop.f32.mrb[0].mxu0 }
  0xf6   :  { %v187_v15 = vadd.f32 %v348_v14, %v306_v12  ;;  %v147_v16 = vpop.f32.mrb[1].mxu0 }
  0xf7   :  { %v185_v18 = vadd.f32 %v302_v13, %v147_v16  ;;  %v349_v19 = vpop.f32.mrb[2].mxu0 }
  0xf8   :  { %193 = vadd.xlane.f32.xlu1 %v187_v15  ;;  %v150_v21 = vpop.f32.mrb[3].mxu0  ;;  %v188_v22 = vadd.f32 %v349_v19, %v307_v17 }
  0xf9   :  { %189 = vadd.xlane.f32.xlu0 %v185_v18  ;;  %v186_v23 = vadd.f32 %v303_v20, %v150_v21 }
  0xfc   :  { %195 = vadd.xlane.f32.xlu1 %v188_v22 }
  0xfd   :  { %191 = vadd.xlane.f32.xlu0 %v186_v23 }
 0x185   :  { %v194_v24 = vpop.xlane.xlu1 %193 }
 0x186   :  { %v190_v25 = vpop.xlane.xlu0 %189  ;;  %v200_v26 = vmul.f32 0.0078125, %v194_v24 }
 0x187   :  { %v198_v27 = vmul.f32 0.0078125, %v190_v25 }
 0x188   :  { %v204_v31 = vsub.f32 %v187_v15, %v200_v26 }
 0x189   :  { %v202_v28 = vsub.f32 %v185_v18, %v198_v27  ;;  %v196_v29 = vpop.xlane.xlu1 %195 }
 0x18a   :  { %v192_v30 = vpop.xlane.xlu0 %191  ;;  %v201_v32 = vmul.f32 0.0078125, %v196_v29  ;;  %v208_v37 = vmul.f32 %v204_v31, %v204_v31 }
 0x18b   :  { %v199_v33 = vmul.f32 0.0078125, %v192_v30  ;;  %v206_v34 = vmul.f32 %v202_v28, %v202_v28 }
 0x18c   :  { %v205_v36 = vsub.f32 %v188_v22, %v201_v32 }
 0x18d   :  { %v203_v35 = vsub.f32 %v186_v23, %v199_v33  ;;  %210 = vadd.xlane.f32.xlu0 %v206_v34 }
 0x18e   :  { %v209_v39 = vmul.f32 %v205_v36, %v205_v36 }
 0x18f   :  { %v207_v38 = vmul.f32 %v203_v35, %v203_v35 }
 0x191   :  { %214 = vadd.xlane.f32.xlu0 %v208_v37  ;;  %212 = vadd.xlane.f32.xlu1 %v207_v38 }
 0x195   :  { %216 = vadd.xlane.f32.xlu1 %v209_v39 }
 0x21a   :  { %v211_v40 = vpop.xlane.xlu0 %210 }
 0x21b   :  { %v218_v41 = vmul.f32 0.0078125, %v211_v40 }
 0x21d   :  { %v222_v42 = vadd.f32 1e-05, %v218_v41 }
 0x21e   :  { %v213_v43 = vpop.xlane.xlu1 %212  ;;  %v215_v44 = vpop.xlane.xlu0 %214 }
 0x21f   :  { %360 = vrsqrt.f32 %v222_v42  ;;  %v219_v45 = vmul.f32 0.0078125, %v213_v43  ;;  %v220_v46 = vmul.f32 0.0078125, %v215_v44 }
 0x221   :  { %v223_v47 = vadd.f32 1e-05, %v219_v45  ;;  %v224_v48 = vadd.f32 1e-05, %v220_v46 }
 0x222   :  { %v217_v49 = vpop.xlane.xlu1 %216 }
 0x223   :  { %362 = vrsqrt.f32 %v223_v47  ;;  %v221_v50 = vmul.f32 0.0078125, %v217_v49 }
 0x224   :  { %364 = vrsqrt.f32 %v224_v48 }
 0x225   :  { %v225_v51 = vadd.f32 1e-05, %v221_v50 }
 0x227   :  { %366 = vrsqrt.f32 %v225_v51 }
 0x229   :  { %v361_v52 = vpop.eup %360 }
 0x22a   :  { %v230_v53 = vmul.f32 %v361_v52, %v202_v28 }
 0x22c   :  { %v241_v57 = vmul.f32 %v290_v54, %v230_v53 }
 0x22d   :  { %v363_v55 = vpop.eup %362 }
 0x22e   :  { %v365_v56 = vpop.eup %364  ;;  %v231_v58 = vmul.f32 %v363_v55, %v203_v35  ;;  %v252_v63 = vadd.f32 %v291_v59, %v241_v57 }
 0x22f   :  { %v232_v60 = vmul.f32 %v365_v56, %v204_v31 }
 0x230   :  { %v242_v61 = vmul.f32 %v290_v54, %v231_v58 }
 0x231   :  { %v367_v62 = vpop.eup %366  ;;  %v243_v1 = vmul.f32 %v290_v54, %v232_v60 }
 0x232   :  { %v253_v0 = vadd.f32 %v291_v59, %v242_v61  ;;  %v233_v2 = vmul.f32 %v367_v62, %v205_v36 }
 0x233   :  { %v254_v5 = vadd.f32 %v291_v59, %v243_v1 }
 0x234   :  { %v311_v3 = vpack.c.bf16 %v253_v0, %v252_v63  ;;  %v244_v4 = vmul.f32 %v290_v54, %v233_v2 }
 0x236   :  { %312 = vst [vmem:[%s451_s5] sm:$0xff] %v311_v3   ;;  %v255_v6 = vadd.f32 %v291_v59, %v244_v4 }
 0x238   :  { %v316_v7 = vpack.c.bf16 %v255_v6, %v254_v5 }
 0x23a   :  { %319 = vst [vmem:[%s451_s5 + $0x8] sm:$0xff] %v316_v7  }

// kernel: transformer_xl_forward.13
= control target key start
LH: loop header
LB: loop body
LE: loop exit
PB: predicated region body
PF: predicated region fallthrough
CT: control target
= control target key end

     0   :  { %s1998_s21 = smov 0   ;;  %s2000_s22 = smov 0   ;;  %s2426_s0 = inlined_call_operand.vmem [shape: bf16[2,16,384], index: 0, kind: input, shape index: {}, may-alias: {0,1,2}]   ;;  %s2427_s1 = inlined_call_operand.vmem [shape: bf16[2,16,384], index: 1, kind: input, shape index: {}, may-alias: {0,1,2}]   ;;  %s2428_s2 = inlined_call_operand.vmem [shape: bf16[2,16,384], index: 2, kind: input, shape index: {}, may-alias: {0,1,2}]   ;;  %s2429_s3 = inlined_call_operand.vmem [shape: bf16[32,128], index: 3, kind: input, shape index: {}]   ;;  %s2430_s4 = inlined_call_operand.vmem [shape: f32[1,128], index: 4, kind: input, shape index: {}]   ;;  %s2431_s5 = inlined_call_operand.vmem [shape: f32[1,128], index: 5, kind: input, shape index: {}]   ;;  %s2432_s6 = inlined_call_operand.vmem [shape: bf16[2,16,128], index: 6, kind: output, shape index: {}]  }
   0x1   :  { %s2002_s23 = smov 0   ;;  %s2004_s24 = smov 0  }
   0x2   :  { %s2006_s25 = smov 0  }
   0x3 LB: > { %s28_s26 = sadd.s32 1, %s1948_s24  ;;  %p44_p1 = scmp.ne.s32.totalorder %s1940_s22, %s1936_s21  ;;  %s1952_s25 = sphi %s2006_s25, %s16_s25   ;;  %s1948_s24 = sphi %s2004_s24, %s2449_s24   ;;  %s1944_s23 = sphi %s2002_s23, %s2448_s23   ;;  %s1940_s22 = sphi %s2000_s22, %s2447_s22   ;;  %s1936_s21 = sphi %s1998_s21, %s2446_s21  }
   0x4   : > { %p30_p0 = scmp.ge.s32.totalorder %s28_s26, 2  ;;  %p45_p2 = scmp.eq.s32.totalorder %s1952_s25, 0 }
   0x5   : > { %s37_s29 = sadd.s32 1, %s1940_s22  ;;  %p1662_p5 = scmp.ge.s32.totalorder %s1952_s25, 2 }
   0x6   : > { %s2451_s26 = smov (%p30_p0, %s28_s26), 0  ;;  %p2029_p3 = por %p45_p2, %p44_p1 }
   0x7   : > { %s32_s28 = ssub.s32 %s1948_s24, %s2451_s26  ;;  %222 = sbr.rel (%p1662_p5) target bundleno = 35 (0x23), region = 28 }
   0x8   : > { %p35_p4 = scmp.eq.s32.totalorder %s32_s28, 0 }
   0xa   : > { %s2037_s30 = scalar_select %p35_p4, %s1940_s22, %s37_s29  }
   0xe   : > { %225 = sbr.rel (!%p2029_p3) target bundleno = 21 (0x15), region = 32  ;;  %s227_s7 = sand.u32 (%p2029_p3), 1, %s1940_s22  }
   0xf   : > { %s1828_s8 = smul.u32 (%p2029_p3), 24, %s1948_s24  ;;  %s1663_s9 = sshll.u32 (%p2029_p3), %s227_s7, 3 }
  0x10   : > { %s229_s13 = scalar_lea.vmem (%p2029_p3), [#allocation2], %s1663_s9 }
  0x11   : > { %s235_s12 = scalar_lea.vmem (%p2029_p3), %s2426_s0, %s1828_s8 }
  0x12   : > { %v251_v0 = vld [vmem:[%s235_s12] sm:$0xf] (%p2029_p3)  ;;  %v253_v1 = vld [vmem:[%s235_s12 + $0xc] sm:$0xf] (%p2029_p3) }
  0x13   : > { %252 = vst [vmem:[%s229_s13] sm:$0xf] (%p2029_p3), %v251_v0  ;;  %254 = vst [vmem:[%s229_s13 + $0x4] sm:$0xf] (%p2029_p3), %v253_v1 }
  0x15 PF: > { %281 = sbr.rel (!%p2029_p3) target bundleno = 28 (0x1c), region = 73  ;;  %s283_s14 = sand.u32 (%p2029_p3), 1, %s1940_s22  }
  0x16   : > { %s1666_s15 = smul.u32 (%p2029_p3), 24, %s1948_s24  ;;  %s1665_s16 = sshll.u32 (%p2029_p3), %s283_s14, 3 }
  0x17   : > { %s285_s20 = scalar_lea.vmem (%p2029_p3), [#allocation3], %s1665_s16 }
  0x18   : > { %s1570_s19 = scalar_lea.vmem (%p2029_p3), %s2427_s1, %s1666_s15 }
  0x19   : > { %v1667_v2 = vld [vmem:[%s1570_s19 + $0x4] sm:$0xf] (%p2029_p3)  ;;  %v1668_v3 = vld [vmem:[%s1570_s19 + $0x10] sm:$0xf] (%p2029_p3) }
  0x1a   : > { %306 = vst [vmem:[%s285_s20] sm:$0xf] (%p2029_p3), %v1667_v2  ;;  %308 = vst [vmem:[%s285_s20 + $0x4] sm:$0xf] (%p2029_p3), %v1668_v3 }
  0x1c PF: > { %335 = sbr.rel (!%p2029_p3) target bundleno = 35 (0x23), region = 114  ;;  %s337_s28 = sand.u32 (%p2029_p3), 1, %s1940_s22  }
  0x1d   : > { %s1670_s29 = smul.u32 (%p2029_p3), 24, %s1948_s24  ;;  %s1669_s7 = sshll.u32 (%p2029_p3), %s337_s28, 3 }
  0x1e   : > { %s339_s11 = scalar_lea.vmem (%p2029_p3), [#allocation4], %s1669_s7 }
  0x1f   : > { %s1576_s10 = scalar_lea.vmem (%p2029_p3), %s2428_s2, %s1670_s29 }
  0x20   : > { %v1671_v4 = vld [vmem:[%s1576_s10 + $0x8] sm:$0xf] (%p2029_p3)  ;;  %v1672_v5 = vld [vmem:[%s1576_s10 + $0x14] sm:$0xf] (%p2029_p3) }
  0x21   : > { %360 = vst [vmem:[%s339_s11] sm:$0xf] (%p2029_p3), %v1671_v4  ;;  %362 = vst [vmem:[%s339_s11 + $0x4] sm:$0xf] (%p2029_p3), %v1672_v5 }
  0x23 PF: > { %p1673_p6 = scmp.ge.s32.totalorder %s1952_s25, 1  ;;  %p388_p7 = scmp.lt.s32.totalorder %s1952_s25, 3 }
  0x25   : > { %p389_p8 = pnand %p1673_p6, %p388_p7 }
  0x26   : > { %v2066_v6 = vld [vmem:[%s2429_s3] sm:$0xff] (!%p389_p8)   ;;  %v1954_v7 = vmov (!%p389_p8), 0.0   ;;  %vm535_vm0 = vcmask (!%p389_p8), 261120   ;;  %s395_s13 = sand.u32 (!%p389_p8), 1, %s1936_s21   ;;  %vm1955_vm1 = vmmov (!%p389_p8), 0   ;;  %v2081_v9 = vld [vmem:[%s2429_s3 + $0x8] sm:$0xff] (!%p389_p8)   ;;  %v495_v28 = vlaneseq (!%p389_p8) }
  0x27   : > { %392 = sbr.rel (%p389_p8) target bundleno = 3183 (0xc6f), region = 155  ;;  %1748 = vmatprep.subr.bf16.mxu0 (!%p389_p8), %v1954_v7  ;;  %1756 = vmatprep.subr.bf16.mxu1 (!%p389_p8), %v1954_v7  ;;  %v540_v8 = vsel (!%p389_p8), %vm535_vm0, %v2066_v6, 0  ;;  %s2075_s14 = sshll.u32 (!%p389_p8), %s395_s13, 3  ;;  %v1680_v13 = vld [vmem:[%s2431_s5] ss:$0 sm:$0xff] (!%p389_p8)  ;;  %v543_v14 = vsel (!%p389_p8), %vm535_vm0, %v2081_v9, 0 }
  0x28   : > { %1749 = vmatpush3.bf16.xpose.msra.mxu0 (!%p389_p8), %v540_v8  ;;  %1752 = vmatprep.mubr.msk.bf16.mxu0 (!%p389_p8), %vm1955_vm1, %v1954_v7  ;;  %s397_s21 = scalar_lea.vmem (!%p389_p8), [#allocation2], %s2075_s14  ;;  %v1679_v18 = vld [vmem:[%s2430_s4] ss:$0 sm:$0xff] (!%p389_p8)  ;;  %s404_s28 = scalar_lea.vmem (!%p389_p8), [#allocation3], %s2075_s14  ;;  %v2116_v29 = vshrl.u32 (!%p389_p8), %v495_v28, 7  ;;  %vm594_vm2 = vcmask (!%p389_p8), 252928  }
  0x29   : > { %1750 = vmatprep.subr.bf16.mxu0 (!%p389_p8), %v1954_v7  ;;  %1758 = vmatprep.mubr.msk.bf16.mxu1 (!%p389_p8), %vm1955_vm1, %v1954_v7  ;;  %v1717_v10 = vld [vmem:[%s397_s21] sm:$0xff] (!%p389_p8)   ;;  %v2102_v19 = vld [vmem:[%s404_s28] sm:$0xff] (!%p389_p8)   ;;  %s1956_s29 = smov (!%p389_p8), 127   ;;  %s1957_s7 = smov (!%p389_p8), 126   ;;  %vm611_vm5 = vcmask (!%p389_p8), 244736   ;;  %vm628_vm8 = vcmask (!%p389_p8), 228352  }
  0x2a   : > { %v1718_v11 = vunpack.c.l.bf16 (!%p389_p8), %v1717_v10  ;;  %v1719_v12 = vunpack.c.h.bf16 (!%p389_p8), %v1717_v10  ;;  %v663_v20 = vsel (!%p389_p8), %vm535_vm0, %v2102_v19, 0  ;;  %v507_v30 = vsub.s32 (!%p389_p8), 15, %v2116_v29  ;;  %s1958_s8 = smov (!%p389_p8), 96   ;;  %s1959_s9 = smov (!%p389_p8), 124  }
  0x2b   : > { %1757 = vmatpush3.bf16.xpose.msra.mxu1 (!%p389_p8), %v663_v20  ;;  %v2120_v31 = vadd.s32 (!%p389_p8), 8, %v2116_v29  ;;  %s1960_s10 = smov (!%p389_p8), 120   ;;  %vm710_vm12 = vcmask (!%p389_p8), 130048   ;;  %vm645_vm13 = vcmask (!%p389_p8), 195584   ;;  %s411_s11 = scalar_lea.vmem (!%p389_p8), [#allocation4], %s2075_s14  ;;  %vm792_vm15 = vcmask (!%p389_p8), 257024  }
  0x2c   : > { %v483_v15 = vadd.f32 (!%p389_p8), %v1718_v11, %v1680_v13  ;;  %v484_v16 = vadd.f32 (!%p389_p8), %v1719_v12, %v1680_v13  ;;  %v473_v21 = vadd.f32 (!%p389_p8), %v1718_v11, %v1679_v18  ;;  %v474_v22 = vadd.f32 (!%p389_p8), %v1719_v12, %v1679_v18  ;;  %1762 = vmatprep.subr.bf16.mxu1 (!%p389_p8), %v1954_v7  ;;  %s1961_s27 = smov (!%p389_p8), 64   ;;  %p452_p9 = scmp.lt.s32.totalorder (!%p389_p8), %s1944_s23, 1 }
  0x2d   : > { %v509_v32 = vand.u32 (!%p389_p8), 1, %v507_v30  ;;  %v508_v33 = vsub.s32 (!%p389_p8), 15, %v2120_v31  ;;  %v513_v45 = vand.u32 (!%p389_p8), 2, %v507_v30  ;;  %v517_v61 = vand.u32 (!%p389_p8), 4, %v507_v30 }
  0x2e   : > { %v2092_v17 = vpack.c.bf16 %v484_v16, %v483_v15  ;;  %v2108_v25 = vpack.c.bf16 %v474_v22, %v473_v21  ;;  %v2184_v12 = vand.u32 127, %v495_v28  ;;  %s2453_s23 = smov (!%p452_p9, %s1944_s23), 1 }
  0x2f   : > { %vm2123_vm3 = vcmp.ne.s32.totalorder %v509_v32, 0  ;;  %v510_v35 = vand.u32 1, %v508_v33  ;;  %vm2143_vm6 = vcmp.ne.s32.totalorder %v513_v45, 0  ;;  %v514_v49 = vand.u32 2, %v508_v33  ;;  %s1707_s12 = sshll.u32 %s2453_s23, 3  ;;  %s1962_s23 = smov 32  }
  0x30   : > { %1751 = vmatpush3.bf16.xpose.msra.mxu0 %v543_v14  ;;  %vm2165_vm9 = vcmp.ne.s32.totalorder %v517_v61, 0  ;;  %v518_v3 = vand.u32 4, %v508_v33  ;;  %vm504_vm11 = vcmp.gt.s32.totalorder %v2184_v12, %v2120_v31  ;;  %vm503_vm14 = vcmp.gt.s32.totalorder %v2184_v12, %v2116_v29  ;;  %s2258_s15 = scalar_lea.vmem %s2432_s6, %s1707_s12 }
  0x31   : > { %1768 = vmatprep.subr.bf16.mxu0 %v1954_v7  ;;  %vm2131_vm4 = vcmp.ne.s32.totalorder %v510_v35, 0  ;;  %vm2151_vm7 = vcmp.ne.s32.totalorder %v514_v49, 0 }
  0x32   : > { %1759 = vmatmul.mubr.msk.bf16.vlgmr.msra.gmra.mrb[0].mxu1 %vm535_vm0, %v2108_v25  ;;  %vm2177_vm10 = vcmp.ne.s32.totalorder %v518_v3, 0 }
  0x33   : > { %1764 = vmatprep.mubr.msk.bf16.mxu1 %vm1955_vm1, %v1954_v7 }
  0x37   : > { %1753 = vmatmul.mubr.msk.bf16.vlgmr.msra.gmra.mrb[0].mxu0 %vm535_vm0, %v2092_v17 }
  0x38   : > { %1772 = vmatprep.mubr.msk.bf16.mxu0 %vm1955_vm1, %v1954_v7 }
 0x105   : > { %v699_v43 = vpop.f32.mrb[0].mxu1 }
 0x106   : > { %v1760_v44 = vpop.f32.mrb[1].mxu1 }
 0x107   : > { %v702_v46 = vpop.f32.mrb[2].mxu1 }
 0x108   : > { %v1761_v47 = vpop.f32.mrb[3].mxu1 }
 0x10a   : > { %v579_v23 = vpop.f32.mrb[0].mxu0 }
 0x10b   : > { %588 = vrot.lane.b32.xlu0 %v579_v23, %s1956_s29  ;;  %v1754_v24 = vpop.f32.mrb[1].mxu0 }
 0x10c   : > { %v582_v26 = vpop.f32.mrb[2].mxu0 }
 0x10d   : > { %v1755_v27 = vpop.f32.mrb[3].mxu0 }
 0x10f   : > { %590 = vrot.lane.b32.xlu0 %v582_v26, %s1956_s29 }
 0x17d   : > { %v589_v36 = vpop.permute.xlu0 %588 }
 0x17e   : > { %v595_v37 = vsel %vm594_vm2, %v589_v36, 0.0 }
 0x17f   : > { %v601_v38 = vsel %vm2123_vm3, %v595_v37, %v579_v23 }
 0x180   : > { %605 = vrot.lane.b32.xlu1 %v601_v38, %s1957_s7 }
 0x181   : > { %v591_v40 = vpop.permute.xlu0 %590 }
 0x182   : > { %v596_v41 = vsel %vm594_vm2, %v591_v40, 0.0 }
 0x183   : > { %v602_v42 = vsel %vm2131_vm4, %v596_v41, %v582_v26 }
 0x184   : > { %607 = vrot.lane.b32.xlu0 %v602_v42, %s1957_s7  ;;  %798 = vrot.lane.b32.xlu1 %v2066_v6, %s1958_s8 }
 0x188   : > { %800 = vrot.lane.b32.xlu0 %v2081_v9, %s1958_s8 }
 0x1f2   : > { %v606_v50 = vpop.permute.xlu1 %605 }
 0x1f3   : > { %v612_v51 = vsel %vm611_vm5, %v606_v50, 0.0 }
 0x1f4   : > { %v618_v52 = vsel %vm2143_vm6, %v612_v51, %v601_v38 }
 0x1f5   : > { %622 = vrot.lane.b32.xlu1 %v618_v52, %s1959_s9 }
 0x1f6   : > { %v608_v54 = vpop.permute.xlu0 %607  ;;  %v799_v55 = vpop.permute.xlu1 %798 }
 0x1f7   : > { %v613_v56 = vsel %vm611_vm5, %v608_v54, 0.0  ;;  %v806_v57 = vsel %vm535_vm0, %v799_v55, 0 }
 0x1f8   : > { %v619_v58 = vsel %vm2151_vm7, %v613_v56, %v602_v42  ;;  %1769 = vmatpush3.bf16.xpose.msra.mxu0 %v806_v57 }
 0x1f9   : > { %796 = vrot.lane.b32.xlu1 %v2092_v17, %s1958_s8  ;;  %624 = vrot.lane.b32.xlu0 %v619_v58, %s1959_s9 }
 0x1fa   : > { %v801_v59 = vpop.permute.xlu0 %800  ;;  %1770 = vmatprep.subr.bf16.mxu0 %v1954_v7 }
 0x1fb   : > { %v809_v60 = vsel %vm535_vm0, %v801_v59, 0 }
 0x200   : > { %1771 = vmatpush3.bf16.xpose.msra.mxu0 %v809_v60 }
 0x201   : > { %1788 = vmatprep.subr.bf16.mxu0 %v1954_v7 }
 0x267   : > { %v623_v63 = vpop.permute.xlu1 %622 }
 0x268   : > { %v629_v0 = vsel %vm628_vm8, %v623_v63, 0.0 }
 0x269   : > { %v635_v1 = vsel %vm2165_vm9, %v629_v0, %v618_v52 }
 0x26a   : > { %639 = vrot.lane.b32.xlu1 %v635_v1, %s1960_s10 }
 0x26b   : > { %v797_v2 = vpop.permute.xlu1 %796  ;;  %v625_v4 = vpop.permute.xlu0 %624 }
 0x26c   : > { %1773 = vmatmul.mubr.msk.bf16.vlgmr.msra.gmra.mrb[4].mxu0 %vm535_vm0, %v797_v2  ;;  %v630_v5 = vsel %vm628_vm8, %v625_v4, 0.0 }
 0x26d   : > { %1792 = vmatprep.mubr.msk.bf16.mxu0 %vm1955_vm1, %v1954_v7  ;;  %v636_v10 = vsel %vm2177_vm10, %v630_v5, %v619_v58 }
 0x26e   : > { %v703_v11 = vadd.f32 %v702_v46, %v636_v10 }
 0x270   : > { %v707_v13 = vmul.f32 2.9802322e-08, %v703_v11 }
 0x272   : > { %v709_v14 = vsel %vm504_vm11, -1e+30, %v707_v13 }
 0x273   : > { %v714_v15 = vsel %vm710_vm12, %v709_v14, -inf }
 0x28e   : > { %715 = vmax.xlane.f32.xlu1 %v714_v15 }
 0x29f   : > { %903 = vrot.lane.b32.xlu1 %v2102_v19, %s1958_s8 }
 0x2dc   : > { %v640_v16 = vpop.permute.xlu1 %639 }
 0x2dd   : > { %v646_v18 = vsel %vm645_vm13, %v640_v16, 0.0 }
 0x2de   : > { %v700_v20 = vadd.f32 %v699_v43, %v646_v18  ;;  %v2206_v43 = vld [vmem:[%s411_s11] sm:$0xff]  }
 0x2df   : > { %1763 = vmatpush3.bf16.msra.mxu1 %v2206_v43 }
 0x2e0   : > { %v706_v21 = vmul.f32 2.9802322e-08, %v700_v20  ;;  %1776 = vmatprep.subr.bf16.mxu1 %v1954_v7 }
 0x2e2   : > { %v708_v22 = vsel %vm503_vm14, -1e+30, %v706_v21 }
 0x2e3   : > { %v711_v23 = vsel %vm710_vm12, %v708_v22, -inf }
 0x2e4   : > { %712 = vmax.xlane.f32.xlu0 %v711_v23 }
 0x31b   : > { %v716_v30 = vpop.xlane.xlu1 %715 }
 0x31c   : > { %v718_v32 = vsub.f32 %v709_v14, %v716_v30 }
 0x31e   : > { %v721_v36 = vmul.f32 1.442695, %v718_v32 }
 0x31f   : > { %v904_v44 = vpop.permute.xlu1 %903 }
 0x320   : > { %v909_v0 = vsel %vm535_vm0, %v904_v44, 0 }
 0x33f   : > { %v845_v24 = vpop.f32.mrb[4].mxu0 }
 0x340   : > { %v1774_v26 = vpop.f32.mrb[5].mxu0  ;;  %854 = vrot.lane.b32.xlu1 %v845_v24, %s1956_s29 }
 0x341   : > { %v848_v27 = vpop.f32.mrb[6].mxu0 }
 0x342   : > { %v1775_v28 = vpop.f32.mrb[7].mxu0 }
 0x344   : > { %856 = vrot.lane.b32.xlu1 %v848_v27, %s1956_s29 }
 0x348   : > { %1043 = vrot.lane.b32.xlu1 %v2066_v6, %s1961_s27 }
 0x371   : > { %v713_v33 = vpop.xlane.xlu0 %712 }
 0x372   : > { %v717_v35 = vsub.f32 %v708_v22, %v713_v33 }
 0x374   : > { %v719_v37 = vmul.f32 1.442695, %v717_v35 }
 0x376   : > { %1882 = vpow2.f32 %v719_v37 }
 0x377   : > { %1884 = vpow2.f32 %v721_v36 }
 0x380   : > { %v1883_v38 = vpop.eup %1882 }
 0x381   : > { %v723_v40 = vsel %vm710_vm12, %v1883_v38, 0.0  ;;  %v1885_v41 = vpop.eup %1884 }
 0x382   : > { %724 = vadd.xlane.f32.xlu0 %v723_v40  ;;  %v726_v42 = vsel %vm710_vm12, %v1885_v41, 0.0 }
 0x386   : > { %727 = vadd.xlane.f32.xlu0 %v726_v42 }
 0x39c   : > { %901 = vrot.lane.b32.xlu0 %v2108_v25, %s1958_s8 }
 0x3b2   : > { %v855_v45 = vpop.permute.xlu1 %854 }
 0x3b3   : > { %v860_v46 = vsel %vm594_vm2, %v855_v45, 0.0 }
 0x3b4   : > { %v862_v47 = vsel %vm2123_vm3, %v860_v46, %v845_v24 }
 0x3b5   : > { %866 = vrot.lane.b32.xlu0 %v862_v47, %s1957_s7 }
 0x3b6   : > { %v857_v49 = vpop.permute.xlu1 %856 }
 0x3b7   : > { %v861_v50 = vsel %vm594_vm2, %v857_v49, 0.0 }
 0x3b8   : > { %v863_v51 = vsel %vm2131_vm4, %v861_v50, %v848_v27 }
 0x3b9   : > { %868 = vrot.lane.b32.xlu0 %v863_v51, %s1957_s7 }
 0x3ba   : > { %v1044_v54 = vpop.permute.xlu1 %1043 }
 0x3bb   : > { %v1051_v55 = vsel %vm535_vm0, %v1044_v54, 0 }
 0x3bc   : > { %1789 = vmatpush3.bf16.xpose.msra.mxu0 %v1051_v55 }
 0x3bd   : > { %1045 = vrot.lane.b32.xlu0 %v2081_v9, %s1961_s27  ;;  %1790 = vmatprep.subr.bf16.mxu0 %v1954_v7 }
 0x40f   : > { %v725_v52 = vpop.xlane.xlu0 %724 }
 0x410   : > { %1886 = vrcp.f32 %v725_v52 }
 0x413   : > { %v728_v56 = vpop.xlane.xlu0 %727 }
 0x414   : > { %1888 = vrcp.f32 %v728_v56 }
 0x417   : > { %v902_v63 = vpop.permute.xlu0 %901 }
 0x41a   : > { %v1887_v57 = vpop.eup %1886 }
 0x41b   : > { %v731_v59 = vmul.f32 %v1887_v57, %v1883_v38 }
 0x41e   : > { %v1889_v58 = vpop.eup %1888 }
 0x41f   : > { %v732_v60 = vmul.f32 %v1889_v58, %v1885_v41 }
 0x421   : > { %v733_v61 = vpack.c.bf16 %v732_v60, %v731_v59 }
 0x423   : > { %1765 = vmatmul.mubr.msk.bf16.vlgmr.msra.gmra.mrb[4].mxu1 %vm710_vm12, %v733_v61 }
 0x424   : > { %1777 = vmatpush3.bf16.xpose.msra.mxu1 %v909_v0  ;;  %1778 = vmatprep.mubr.msk.bf16.mxu1 %vm1955_vm1, %v1954_v7 }
 0x425   : > { %1782 = vmatprep.subr.bf16.mxu1 %v1954_v7 }
 0x427   : > { %v867_v1 = vpop.permute.xlu0 %866 }
 0x428   : > { %v872_v2 = vsel %vm611_vm5, %v867_v1, 0.0 }
 0x429   : > { %v874_v3 = vsel %vm2143_vm6, %v872_v2, %v862_v47 }
 0x42a   : > { %878 = vrot.lane.b32.xlu1 %v874_v3, %s1959_s9 }
 0x42b   : > { %1779 = vmatmul.mubr.msk.bf16.vlgmr.msra.gmra.mrb[8].mxu1 %vm535_vm0, %v902_v63  ;;  %v869_v4 = vpop.permute.xlu0 %868 }
 0x42c   : > { %v873_v5 = vsel %vm611_vm5, %v869_v4, 0.0  ;;  %1784 = vmatprep.mubr.msk.bf16.mxu1 %vm1955_vm1, %v1954_v7 }
 0x42d   : > { %v875_v10 = vsel %vm2151_vm7, %v873_v5, %v863_v51 }
 0x42e   : > { %1041 = vrot.lane.b32.xlu1 %v2092_v17, %s1961_s27  ;;  %880 = vrot.lane.b32.xlu0 %v875_v10, %s1959_s9 }
 0x42f   : > { %v1046_v11 = vpop.permute.xlu0 %1045 }
 0x430   : > { %v1054_v13 = vsel %vm535_vm0, %v1046_v11, 0 }
 0x431   : > { %1791 = vmatpush3.bf16.xpose.msra.mxu0 %v1054_v13 }
 0x432   : > { %1808 = vmatprep.subr.bf16.mxu0 %v1954_v7 }
 0x49c   : > { %v879_v14 = vpop.permute.xlu1 %878 }
 0x49d   : > { %v884_v15 = vsel %vm628_vm8, %v879_v14, 0.0 }
 0x49e   : > { %v886_v16 = vsel %vm2165_vm9, %v884_v15, %v874_v3 }
 0x49f   : > { %890 = vrot.lane.b32.xlu1 %v886_v16, %s1960_s10 }
 0x4a0   : > { %v1042_v18 = vpop.permute.xlu1 %1041  ;;  %v881_v27 = vpop.permute.xlu0 %880 }
 0x4a1   : > { %1793 = vmatmul.mubr.msk.bf16.vlgmr.msra.gmra.mrb[8].mxu0 %vm535_vm0, %v1042_v18  ;;  %v885_v28 = vsel %vm628_vm8, %v881_v27, 0.0 }
 0x4a2   : > { %1812 = vmatprep.mubr.msk.bf16.mxu0 %vm1955_vm1, %v1954_v7  ;;  %v887_v33 = vsel %vm2177_vm10, %v885_v28, %v875_v10 }
 0x4f6   : > { %v777_v20 = vpop.f32.mrb[4].mxu1 }
 0x4f7   : > { %v1708_v21 = vpack.c.bf16 %v777_v20, %v777_v20  ;;  %v1766_v22 = vpop.f32.mrb[5].mxu1 }
 0x4f8   : > { %v780_v23 = vpop.f32.mrb[6].mxu1 }
 0x4f9   : > { %793 = vst.msk [vmem:[%s2258_s15] sm:$0xf] %vm792_vm15, %v1708_v21  ;;  %v1709_v24 = vpack.c.bf16 %v780_v23, %v780_v23  ;;  %v1767_v26 = vpop.f32.mrb[7].mxu1 }
 0x4fb   : > { %794 = vst.msk [vmem:[%s2258_s15 + $0x4] sm:$0xf] %vm792_vm15, %v1709_v24 }
 0x4fe   : > { %v945_v30 = vpop.f32.mrb[8].mxu1 }
 0x4ff   : > { %v1780_v32 = vpop.f32.mrb[9].mxu1 }
 0x500   : > { %v948_v35 = vpop.f32.mrb[10].mxu1 }
 0x501   : > { %v949_v36 = vadd.f32 %v948_v35, %v887_v33  ;;  %v1781_v37 = vpop.f32.mrb[11].mxu1 }
 0x503   : > { %v953_v38 = vmul.f32 2.9802322e-08, %v949_v36 }
 0x505   : > { %v955_v40 = vsel %vm504_vm11, -1e+30, %v953_v38 }
 0x506   : > { %v959_v41 = vsel %vm710_vm12, %v955_v40, -inf }
 0x507   : > { %960 = vmax.xlane.f32.xlu1 %v959_v41 }
 0x511   : > { %v891_v42 = vpop.permute.xlu1 %890 }
 0x512   : > { %v896_v44 = vsel %vm645_vm13, %v891_v42, 0.0 }
 0x513   : > { %v946_v45 = vadd.f32 %v945_v30, %v896_v44 }
 0x515   : > { %v952_v46 = vmul.f32 2.9802322e-08, %v946_v45 }
 0x517   : > { %v954_v47 = vsel %vm503_vm14, -1e+30, %v952_v46 }
 0x518   : > { %v956_v49 = vsel %vm710_vm12, %v954_v47, -inf  ;;  %979 = vrot.lane.b32.xlu1 %v2206_v43, %s1958_s8 }
 0x519   : > { %957 = vmax.xlane.f32.xlu0 %v956_v49 }
 0x51c   : > { %1145 = vrot.lane.b32.xlu1 %v2108_v25, %s1961_s27 }
 0x574   : > { %v1090_v50 = vpop.f32.mrb[8].mxu0 }
 0x575   : > { %v1794_v51 = vpop.f32.mrb[9].mxu0  ;;  %1099 = vrot.lane.b32.xlu1 %v1090_v50, %s1956_s29 }
 0x576   : > { %v1093_v52 = vpop.f32.mrb[10].mxu0 }
 0x577   : > { %v1795_v54 = vpop.f32.mrb[11].mxu0 }
 0x594   : > { %v961_v55 = vpop.xlane.xlu1 %960 }
 0x595   : > { %v963_v57 = vsub.f32 %v955_v40, %v961_v55 }
 0x597   : > { %v966_v60 = vmul.f32 1.442695, %v963_v57 }
 0x598   : > { %v980_v56 = vpop.permute.xlu1 %979 }
 0x599   : > { %1783 = vmatpush3.bf16.msra.mxu1 %v980_v56 }
 0x59a   : > { %1796 = vmatprep.subr.bf16.mxu1 %v1954_v7 }
 0x59c   : > { %v1146_v3 = vpop.permute.xlu1 %1145 }
 0x5a6   : > { %v958_v58 = vpop.xlane.xlu0 %957 }
 0x5a7   : > { %v962_v59 = vsub.f32 %v954_v47, %v958_v58 }
 0x5a9   : > { %v964_v61 = vmul.f32 1.442695, %v962_v59 }
 0x5ab   : > { %1890 = vpow2.f32 %v964_v61 }
 0x5ac   : > { %1892 = vpow2.f32 %v966_v60 }
 0x5b5   : > { %v1891_v63 = vpop.eup %1890 }
 0x5b6   : > { %v968_v0 = vsel %vm710_vm12, %v1891_v63, 0.0  ;;  %v1893_v1 = vpop.eup %1892 }
 0x5b7   : > { %969 = vadd.xlane.f32.xlu0 %v968_v0  ;;  %v971_v2 = vsel %vm710_vm12, %v1893_v1, 0.0 }
 0x5bb   : > { %972 = vadd.xlane.f32.xlu0 %v971_v2 }
 0x5d1   : > { %1147 = vrot.lane.b32.xlu0 %v2102_v19, %s1961_s27 }
 0x5d5   : > { %1101 = vrot.lane.b32.xlu0 %v1093_v52, %s1956_s29 }
 0x5d9   : > { %1287 = vrot.lane.b32.xlu0 %v2066_v6, %s1962_s23 }
 0x5e7   : > { %v1100_v4 = vpop.permute.xlu1 %1099 }
 0x5e8   : > { %v1105_v5 = vsel %vm594_vm2, %v1100_v4, 0.0 }
 0x5e9   : > { %v1107_v10 = vsel %vm2123_vm3, %v1105_v5, %v1090_v50 }
 0x5ea   : > { %1111 = vrot.lane.b32.xlu1 %v1107_v10, %s1957_s7 }
 0x644   : > { %v970_v11 = vpop.xlane.xlu0 %969 }
 0x645   : > { %1894 = vrcp.f32 %v970_v11 }
 0x648   : > { %v973_v13 = vpop.xlane.xlu0 %972 }
 0x649   : > { %1896 = vrcp.f32 %v973_v13 }
 0x64c   : > { %v1148_v14 = vpop.permute.xlu0 %1147 }
 0x64d   : > { %v1153_v26 = vsel %vm535_vm0, %v1148_v14, 0 }
 0x64f   : > { %v1895_v16 = vpop.eup %1894 }
 0x650   : > { %v1102_v15 = vpop.permute.xlu0 %1101  ;;  %v976_v21 = vmul.f32 %v1895_v16, %v1891_v63 }
 0x651   : > { %v1106_v18 = vsel %vm594_vm2, %v1102_v15, 0.0 }
 0x652   : > { %v1108_v6 = vsel %vm2131_vm4, %v1106_v18, %v1093_v52 }
 0x653   : > { %v1897_v20 = vpop.eup %1896  ;;  %1113 = vrot.lane.b32.xlu1 %v1108_v6, %s1957_s7 }
 0x654   : > { %v977_v22 = vmul.f32 %v1897_v20, %v1893_v1  ;;  %v1288_v23 = vpop.permute.xlu0 %1287 }
 0x655   : > { %v1295_v24 = vsel %vm535_vm0, %v1288_v23, 0 }
 0x656   : > { %v978_v27 = vpack.c.bf16 %v977_v22, %v976_v21  ;;  %1809 = vmatpush3.bf16.xpose.msra.mxu0 %v1295_v24 }
 0x657   : > { %1289 = vrot.lane.b32.xlu1 %v2081_v9, %s1962_s23  ;;  %1810 = vmatprep.subr.bf16.mxu0 %v1954_v7 }
 0x658   : > { %1785 = vmatmul.mubr.msk.bf16.vlgmr.msra.gmra.mrb[12].mxu1 %vm710_vm12, %v978_v27 }
 0x659   : > { %1797 = vmatpush3.bf16.xpose.msra.mxu1 %v1153_v26  ;;  %1798 = vmatprep.mubr.msk.bf16.mxu1 %vm1955_vm1, %v1954_v7 }
 0x65a   : > { %1802 = vmatprep.subr.bf16.mxu1 %v1954_v7 }
 0x65c   : > { %v1112_v28 = vpop.permute.xlu1 %1111 }
 0x65d   : > { %v1117_v30 = vsel %vm611_vm5, %v1112_v28, 0.0 }
 0x65e   : > { %v1119_v32 = vsel %vm2143_vm6, %v1117_v30, %v1107_v10 }
 0x65f   : > { %1123 = vrot.lane.b32.xlu0 %v1119_v32, %s1959_s9 }
 0x660   : > { %1799 = vmatmul.mubr.msk.bf16.vlgmr.msra.gmra.mrb[16].mxu1 %vm535_vm0, %v1146_v3 }
 0x661   : > { %1804 = vmatprep.mubr.msk.bf16.mxu1 %vm1955_vm1, %v1954_v7 }
 0x663   : > { %1285 = vrot.lane.b32.xlu0 %v2092_v17, %s1962_s23 }
 0x6c5   : > { %v1114_v9 = vpop.permute.xlu1 %1113 }
 0x6c6   : > { %v1118_v33 = vsel %vm611_vm5, %v1114_v9, 0.0 }
 0x6c7   : > { %v1120_v35 = vsel %vm2151_vm7, %v1118_v33, %v1108_v6 }
 0x6c8   : > { %1125 = vrot.lane.b32.xlu1 %v1120_v35, %s1959_s9 }
 0x6c9   : > { %v1290_v36 = vpop.permute.xlu1 %1289 }
 0x6ca   : > { %v1298_v37 = vsel %vm535_vm0, %v1290_v36, 0 }
 0x6cb   : > { %1811 = vmatpush3.bf16.xpose.msra.mxu0 %v1298_v37 }
 0x6d1   : > { %v1124_v38 = vpop.permute.xlu0 %1123 }
 0x6d2   : > { %v1129_v40 = vsel %vm628_vm8, %v1124_v38, 0.0 }
 0x6d3   : > { %v1131_v41 = vsel %vm2165_vm9, %v1129_v40, %v1119_v32 }
 0x6d4   : > { %1135 = vrot.lane.b32.xlu0 %v1131_v41, %s1960_s10 }
 0x6d5   : > { %v1286_v17 = vpop.permute.xlu0 %1285 }
 0x6d6   : > { %1813 = vmatmul.mubr.msk.bf16.vlgmr.msra.gmra.mrb[12].mxu0 %vm535_vm0, %v1286_v17 }
 0x72b   : > { %v2323_v42 = vpop.f32.mrb[12].mxu1 }
 0x72c   : > { %v1786_v44 = vpop.f32.mrb[13].mxu1 }
 0x72d   : > { %v2325_v45 = vpop.f32.mrb[14].mxu1 }
 0x72e   : > { %v1787_v46 = vpop.f32.mrb[15].mxu1  ;;  %v1711_v29 = vpack.c.bf16 %v2325_v45, %v2325_v45 }
 0x733   : > { %v1189_v47 = vpop.f32.mrb[16].mxu1 }
 0x734   : > { %v1800_v49 = vpop.f32.mrb[17].mxu1 }
 0x735   : > { %v1192_v50 = vpop.f32.mrb[18].mxu1 }
 0x736   : > { %v1801_v51 = vpop.f32.mrb[19].mxu1 }
 0x73a   : > { %v1126_v52 = vpop.permute.xlu1 %1125 }
 0x73b   : > { %v1130_v54 = vsel %vm628_vm8, %v1126_v52, 0.0 }
 0x73c   : > { %v1132_v55 = vsel %vm2177_vm10, %v1130_v54, %v1120_v35 }
 0x73d   : > { %v1193_v56 = vadd.f32 %v1192_v50, %v1132_v55 }
 0x73f   : > { %v1197_v57 = vmul.f32 2.9802322e-08, %v1193_v56 }
 0x741   : > { %v1199_v58 = vsel %vm504_vm11, -1e+30, %v1197_v57 }
 0x742   : > { %v1203_v59 = vsel %vm710_vm12, %v1199_v58, -inf }
 0x743   : > { %1204 = vmax.xlane.f32.xlu0 %v1203_v59 }
 0x746   : > { %v1136_v60 = vpop.permute.xlu0 %1135 }
 0x747   : > { %v1141_v61 = vsel %vm645_vm13, %v1136_v60, 0.0 }
 0x748   : > { %v1190_v63 = vadd.f32 %v1189_v47, %v1141_v61 }
 0x74a   : > { %v1196_v0 = vmul.f32 2.9802322e-08, %v1190_v63 }
 0x74c   : > { %v1198_v1 = vsel %vm503_vm14, -1e+30, %v1196_v0 }
 0x74d   : > { %v1200_v2 = vsel %vm710_vm12, %v1198_v1, -inf }
 0x74e   : > { %1201 = vmax.xlane.f32.xlu1 %v1200_v2 }
 0x7a9   : > { %v1334_v3 = vpop.f32.mrb[12].mxu0 }
 0x7aa   : > { %v1814_v4 = vpop.f32.mrb[13].mxu0 }
 0x7ab   : > { %v1337_v5 = vpop.f32.mrb[14].mxu0 }
 0x7ac   : > { %v1815_v10 = vpop.f32.mrb[15].mxu0 }
 0x7d0   : > { %v1205_v11 = vpop.xlane.xlu0 %1204 }
 0x7d1   : > { %v1207_v13 = vsub.f32 %v1199_v58, %v1205_v11 }
 0x7d3   : > { %v1210_v14 = vmul.f32 1.442695, %v1207_v13 }
 0x7d5   : > { %1898 = vpow2.f32 %v1210_v14 }
 0x7db   : > { %v1202_v15 = vpop.xlane.xlu1 %1201 }
 0x7dc   : > { %v1206_v16 = vsub.f32 %v1198_v1, %v1202_v15  ;;  %v1710_v15 = vpack.c.bf16 %v2323_v42, %v2323_v42 }
 0x7de   : > { %v1208_v18 = vmul.f32 1.442695, %v1206_v16 }
 0x7df   : > { %v1899_v6 = vpop.eup %1898 }
 0x7e0   : > { %1900 = vpow2.f32 %v1208_v18  ;;  %v1215_v20 = vsel %vm710_vm12, %v1899_v6, 0.0 }
 0x7e1   : > { %1216 = vadd.xlane.f32.xlu1 %v1215_v20 }
 0x7ea   : > { %v1901_v21 = vpop.eup %1900 }
 0x7eb   : > { %v1212_v22 = vsel %vm710_vm12, %v1901_v21, 0.0 }
 0x7ec   : > { %1213 = vadd.xlane.f32.xlu0 %v1212_v22 }
 0x7f2   : > { %1391 = vrot.lane.b32.xlu1 %v2102_v19, %s1962_s23 }
 0x7f6   : > { %1389 = vrot.lane.b32.xlu1 %v2108_v25, %s1962_s23 }
 0x7fa   : > { %1345 = vrot.lane.b32.xlu1 %v1337_v5, %s1956_s29 }
 0x802   : > { %1223 = vrot.lane.b32.xlu0 %v2206_v43, %s1961_s27 }
 0x806   : > { %1343 = vrot.lane.b32.xlu0 %v1334_v3, %s1956_s29 }
 0x86e   : > { %v1217_v23 = vpop.xlane.xlu1 %1216 }
 0x86f   : > { %1902 = vrcp.f32 %v1217_v23 }
 0x872   : > { %v1392_v24 = vpop.permute.xlu1 %1391 }
 0x873   : > { %v1397_v39 = vsel %vm535_vm0, %v1392_v24, 0 }
 0x876   : > { %v1390_v26 = vpop.permute.xlu1 %1389 }
 0x879   : > { %v1214_v27 = vpop.xlane.xlu0 %1213  ;;  %v1903_v9 = vpop.eup %1902 }
 0x87a   : > { %1904 = vrcp.f32 %v1214_v27  ;;  %v1346_v28 = vpop.permute.xlu1 %1345  ;;  %v1221_v37 = vmul.f32 %v1903_v9, %v1899_v6 }
 0x87b   : > { %v1350_v30 = vsel %vm594_vm2, %v1346_v28, 0.0 }
 0x87c   : > { %v1352_v19 = vsel %vm2131_vm4, %v1350_v30, %v1337_v5 }
 0x87d   : > { %1357 = vrot.lane.b32.xlu1 %v1352_v19, %s1957_s7  ;;  %v1224_v25 = vpop.permute.xlu0 %1223 }
 0x87e   : > { %1803 = vmatpush3.bf16.msra.mxu1 %v1224_v25 }
 0x87f   : > { %1816 = vmatprep.subr.bf16.mxu1 %v1954_v7 }
 0x881   : > { %v1344_v32 = vpop.permute.xlu0 %1343 }
 0x882   : > { %v1349_v33 = vsel %vm594_vm2, %v1344_v32, 0.0  ;;  %vm1526_vm2 = vcmask 1044224  }
 0x883   : > { %v1351_v35 = vsel %vm2123_vm3, %v1349_v33, %v1334_v3 }
 0x884   : > { %v1905_v36 = vpop.eup %1904  ;;  %1355 = vrot.lane.b32.xlu0 %v1351_v35, %s1957_s7 }
 0x885   : > { %v1220_v38 = vmul.f32 %v1905_v36, %v1901_v21 }
 0x887   : > { %v1222_v40 = vpack.c.bf16 %v1221_v37, %v1220_v38 }
 0x889   : > { %1805 = vmatmul.mubr.msk.bf16.vlgmr.msra.gmra.mrb[20].mxu1 %vm710_vm12, %v1222_v40 }
 0x88a   : > { %1817 = vmatpush3.bf16.xpose.msra.mxu1 %v1397_v39  ;;  %1818 = vmatprep.mubr.msk.bf16.mxu1 %vm1955_vm1, %v1954_v7 }
 0x88b   : > { %1822 = vmatprep.subr.bf16.mxu1 %v1954_v7 }
 0x891   : > { %1819 = vmatmul.mubr.msk.bf16.vlgmr.msra.gmra.mrb[24].mxu1 %vm535_vm0, %v1390_v26  ;;  %vm1038_vm0 = vcmask 519424  }
 0x892   : > { %1824 = vmatprep.mubr.msk.bf16.mxu1 %vm1955_vm1, %v1954_v7  ;;  %vm1282_vm1 = vcmask 781824  }
 0x8ef   : > { %v1358_v34 = vpop.permute.xlu1 %1357 }
 0x8f0   : > { %v1362_v41 = vsel %vm611_vm5, %v1358_v34, 0.0 }
 0x8f1   : > { %v1364_v17 = vsel %vm2151_vm7, %v1362_v41, %v1352_v19 }
 0x8f2   : > { %1369 = vrot.lane.b32.xlu1 %v1364_v17, %s1959_s9 }
 0x8f6   : > { %v1356_v44 = vpop.permute.xlu0 %1355 }
 0x8f7   : > { %v1361_v46 = vsel %vm611_vm5, %v1356_v44, 0.0 }
 0x8f8   : > { %v1363_v47 = vsel %vm2143_vm6, %v1361_v46, %v1351_v35 }
 0x8f9   : > { %1367 = vrot.lane.b32.xlu0 %v1363_v47, %s1959_s9 }
 0x95c   : > { %v1263_v49 = vpop.f32.mrb[20].mxu1 }
 0x95d   : > { %v1806_v50 = vpop.f32.mrb[21].mxu1  ;;  %v1712_v45 = vpack.c.bf16 %v1263_v49, %v1263_v49 }
 0x95e   : > { %v1266_v51 = vpop.f32.mrb[22].mxu1 }
 0x95f   : > { %v1807_v7 = vpop.f32.mrb[23].mxu1  ;;  %v1713_v12 = vpack.c.bf16 %v1266_v51, %v1266_v51 }
 0x964   : > { %v1433_v52 = vpop.f32.mrb[24].mxu1  ;;  %v1370_v48 = vpop.permute.xlu1 %1369 }
 0x965   : > { %v1820_v54 = vpop.f32.mrb[25].mxu1  ;;  %v1374_v59 = vsel %vm628_vm8, %v1370_v48, 0.0 }
 0x966   : > { %v1436_v55 = vpop.f32.mrb[26].mxu1  ;;  %v1376_v60 = vsel %vm2177_vm10, %v1374_v59, %v1364_v17 }
 0x967   : > { %v1821_v56 = vpop.f32.mrb[27].mxu1  ;;  %v1437_v61 = vadd.f32 %v1436_v55, %v1376_v60 }
 0x969   : > { %v1441_v63 = vmul.f32 2.9802322e-08, %v1437_v61 }
 0x96b   : > { %v1368_v53 = vpop.permute.xlu0 %1367  ;;  %v1443_v0 = vsel %vm504_vm11, -1e+30, %v1441_v63 }
 0x96c   : > { %v1373_v57 = vsel %vm628_vm8, %v1368_v53, 0.0  ;;  %v1447_v1 = vsel %vm710_vm12, %v1443_v0, -inf }
 0x96d   : > { %v1375_v58 = vsel %vm2165_vm9, %v1373_v57, %v1363_v47 }
 0x96e   : > { %1379 = vrot.lane.b32.xlu0 %v1375_v58, %s1960_s10 }
 0x98d   : > { %1448 = vmax.xlane.f32.xlu0 %v1447_v1 }
 0x9e0   : > { %v1380_v2 = vpop.permute.xlu0 %1379 }
 0x9e1   : > { %v1385_v62 = vsel %vm645_vm13, %v1380_v2, 0.0 }
 0x9e2   : > { %v1434_v3 = vadd.f32 %v1433_v52, %v1385_v62 }
 0x9e4   : > { %v1440_v4 = vmul.f32 2.9802322e-08, %v1434_v3 }
 0x9e6   : > { %v1442_v5 = vsel %vm503_vm14, -1e+30, %v1440_v4 }
 0x9e7   : > { %v1444_v8 = vsel %vm710_vm12, %v1442_v5, -inf }
 0x9e8   : > { %1445 = vmax.xlane.f32.xlu1 %v1444_v8 }
 0xa1a   : > { %v1449_v10 = vpop.xlane.xlu0 %1448 }
 0xa1b   : > { %v1451_v11 = vsub.f32 %v1443_v0, %v1449_v10 }
 0xa1d   : > { %v1454_v13 = vmul.f32 1.442695, %v1451_v11 }
 0xa1f   : > { %1906 = vpow2.f32 %v1454_v13 }
 0xa29   : > { %v1907_v31 = vpop.eup %1906 }
 0xa2a   : > { %v1459_v14 = vsel %vm710_vm12, %v1907_v31, 0.0 }
 0xa2b   : > { %1460 = vadd.xlane.f32.xlu1 %v1459_v14 }
 0xa3c   : > { %1032 = vrot.lane.b32.xlu1 %v1710_v15, %s1962_s23 }
 0xa40   : > { %1034 = vrot.lane.b32.xlu1 %v1711_v29, %s1962_s23 }
 0xa44   : > { %1278 = vrot.lane.b32.xlu1 %v1713_v12, %s1961_s27 }
 0xa75   : > { %v1446_v16 = vpop.xlane.xlu1 %1445 }
 0xa76   : > { %v1450_v18 = vsub.f32 %v1442_v5, %v1446_v16 }
 0xa78   : > { %v1452_v6 = vmul.f32 1.442695, %v1450_v18 }
 0xa7a   : > { %1908 = vpow2.f32 %v1452_v6 }
 0xa84   : > { %v1909_v20 = vpop.eup %1908 }
 0xa85   : > { %v1456_v42 = vsel %vm710_vm12, %v1909_v20, 0.0 }
 0xa86   : > { %1457 = vadd.xlane.f32.xlu0 %v1456_v42 }
 0xa9c   : > { %1467 = vrot.lane.b32.xlu0 %v2206_v43, %s1962_s23 }
 0xaa0   : > { %1276 = vrot.lane.b32.xlu0 %v1712_v45, %s1961_s27 }
 0xab8   : > { %v1461_v21 = vpop.xlane.xlu1 %1460 }
 0xab9   : > { %1910 = vrcp.f32 %v1461_v21 }
 0xabc   : > { %v1033_v22 = vpop.permute.xlu1 %1032 }
 0xabd   : > { %1039 = vst.msk [vmem:[%s2258_s15] sm:$0xf] %vm1038_vm0, %v1033_v22 }
 0xac0   : > { %v1035_v23 = vpop.permute.xlu1 %1034 }
 0xac1   : > { %1040 = vst.msk [vmem:[%s2258_s15 + $0x4] sm:$0xf] %vm1038_vm0, %v1035_v23 }
 0xac3   : > { %v1911_v43 = vpop.eup %1910 }
 0xac4   : > { %v1279_v24 = vpop.permute.xlu1 %1278  ;;  %v1465_v19 = vmul.f32 %v1911_v43, %v1907_v31 }
 0xac5   : > { %1284 = vst.msk [vmem:[%s2258_s15 + $0x4] sm:$0xf] %vm1282_vm1, %v1279_v24 }
 0xb13   : > { %v1458_v26 = vpop.xlane.xlu0 %1457 }
 0xb14   : > { %1912 = vrcp.f32 %v1458_v26 }
 0xb17   : > { %v1468_v27 = vpop.permute.xlu0 %1467 }
 0xb18   : > { %1823 = vmatpush3.bf16.msra.mxu1 %v1468_v27 }
 0xb1b   : > { %v1277_v28 = vpop.permute.xlu0 %1276 }
 0xb1c   : > { %1283 = vst.msk [vmem:[%s2258_s15] sm:$0xf] %vm1282_vm1, %v1277_v28 }
 0xb1e   : > { %v1913_v30 = vpop.eup %1912 }
 0xb1f   : > { %v1464_v25 = vmul.f32 %v1913_v30, %v1909_v20 }
 0xb21   : > { %v1466_v32 = vpack.c.bf16 %v1465_v19, %v1464_v25 }
 0xb23   : > { %1825 = vmatmul.mubr.msk.bf16.vlgmr.msra.gmra.mrb[28].mxu1 %vm710_vm12, %v1466_v32 }
 0xbf6   : > { %v1507_v9 = vpop.f32.mrb[28].mxu1 }
 0xbf7   : > { %v1714_v33 = vpack.c.bf16 %v1507_v9, %v1507_v9  ;;  %v1826_v35 = vpop.f32.mrb[29].mxu1 }
 0xbf8   : > { %v1510_v36 = vpop.f32.mrb[30].mxu1 }
 0xbf9   : > { %v1715_v37 = vpack.c.bf16 %v1510_v36, %v1510_v36  ;;  %1520 = vrot.lane.b32.xlu0 %v1714_v33, %s1958_s8  ;;  %v1827_v38 = vpop.f32.mrb[31].mxu1 }
 0xbfb   : > { %1522 = vrot.lane.b32.xlu1 %v1715_v37, %s1958_s8 }
 0xc6b   : > { %v1521_v39 = vpop.permute.xlu0 %1520 }
 0xc6c   : > { %1527 = vst.msk [vmem:[%s2258_s15] sm:$0xf] %vm1526_vm2, %v1521_v39 }
 0xc6d   : > { %v1523_v40 = vpop.permute.xlu1 %1522 }
 0xc6e   : > { %1528 = vst.msk [vmem:[%s2258_s15 + $0x4] sm:$0xf] %vm1526_vm2, %v1523_v40 }
 0xc6f PF: > { %s16_s25 = sadd.s32 1, %s1952_s25   ;;  %s2446_s21 = smov %s1940_s22 }
 0xc70   : > { %p13_p10 = scmp.ge.s32.totalorder %s16_s25, 4   ;;  %s2447_s22 = smov %s2037_s30 }
 0xc71   : > { %s2448_s23 = smov %s1948_s24  ;;  %s2449_s24 = smov %s2451_s26 }
 0xc72   :  { %15 = sbr.rel (!%p13_p10) target bundleno = 3 (0x3), region = 218 }

// kernel: transformer_xl_forward.21
= control target key start
LH: loop header
LB: loop body
LE: loop exit
PB: predicated region body
PF: predicated region fallthrough
CT: control target
= control target key end

     0   :  { %v261_v18 = vlaneseq  ;;  %s465_s1 = inlined_call_operand.vmem [shape: bf16[256,128], index: 1, kind: input, shape index: {}]   ;;  %s466_s0 = inlined_call_operand.vmem [shape: bf16[32,128], index: 0, kind: input, shape index: {}]   ;;  %s467_s2 = inlined_call_operand.vmem [shape: f32[1,256], index: 2, kind: input, shape index: {}]   ;;  %s468_s3 = inlined_call_operand.vmem [shape: f32[32,256], index: 3, kind: output, shape index: {}]  }
   0x1   :  { %v346_v0 = vld [vmem:[%s465_s1 + $0x40] sm:$0xff]   ;;  %v348_v2 = vld [vmem:[%s465_s1 + $0x48] sm:$0xff]   ;;  %v350_v4 = vld [vmem:[%s465_s1 + $0x50] sm:$0xff]  }
   0x2   :  { %v347_v1 = vld [vmem:[%s465_s1] sm:$0xff]   ;;  %309 = vmatprep.subr.bf16.mxu0 %v346_v0  ;;  %329 = vmatprep.subr.bf16.mxu1 %v346_v0  ;;  %v349_v3 = vld [vmem:[%s465_s1 + $0x8] sm:$0xff]   ;;  %v351_v5 = vld [vmem:[%s465_s1 + $0x10] sm:$0xff]   ;;  %v262_v19 = vshrl.u32 %v261_v18, 7 }
   0x3   :  { %310 = vmatpush3.bf16.xpose.msra.mxu0 %v347_v1  ;;  %337 = vmatpush3.bf16.xpose.msra.mxu1 %v347_v1  ;;  %v352_v6 = vld [vmem:[%s465_s1 + $0x58] sm:$0xff]   ;;  %v362_v7 = vld [vmem:[%s466_s0] sm:$0xff]   ;;  %v363_v8 = vld [vmem:[%s466_s0 + $0x8] sm:$0xff]  }
   0x4   :  { %311 = vmatprep.subr.bf16.mxu0 %v348_v2  ;;  %330 = vmatprep.subr.bf16.mxu1 %v348_v2  ;;  %v353_v9 = vld [vmem:[%s465_s1 + $0x18] sm:$0xff]   ;;  %v354_v10 = vld [vmem:[%s465_s1 + $0x60] sm:$0xff]   ;;  %v356_v12 = vld [vmem:[%s465_s1 + $0x68] sm:$0xff]   ;;  %v263_v20 = vsub.s32 0, %v262_v19  ;;  %v267_v22 = vsub.s32 1, %v262_v19 }
   0x5   :  { %325 = vmatprep.mubr.bf16.mxu0 %v362_v7  ;;  %327 = vmatprep.mubr.bf16.mxu1 %v363_v8  ;;  %v355_v11 = vld [vmem:[%s465_s1 + $0x20] sm:$0xff]   ;;  %v357_v13 = vld [vmem:[%s465_s1 + $0x28] sm:$0xff]   ;;  %v358_v14 = vld [vmem:[%s465_s1 + $0x70] sm:$0xff]  }
   0x6   :  { %v359_v15 = vld [vmem:[%s465_s1 + $0x30] sm:$0xff]   ;;  %v360_v16 = vld [vmem:[%s465_s1 + $0x78] sm:$0xff]   ;;  %v259_v21 = vld [vmem:[%s467_s2] sm:$0x3] }
   0x7   :  { %v361_v17 = vld [vmem:[%s465_s1 + $0x38] sm:$0xff]   ;;  %v264_v23 = vrot.slane %v259_v21, %v263_v20  ;;  %v268_v26 = vrot.slane %v259_v21, %v267_v22 }
   0xb   :  { %312 = vmatpush3.bf16.xpose.msra.mxu0 %v349_v3  ;;  %338 = vmatpush3.bf16.xpose.msra.mxu1 %v349_v3 }
   0xc   :  { %313 = vmatprep.subr.bf16.mxu0 %v350_v4  ;;  %331 = vmatprep.subr.bf16.mxu1 %v350_v4 }
  0x13   :  { %314 = vmatpush3.bf16.xpose.msra.mxu0 %v351_v5  ;;  %339 = vmatpush3.bf16.xpose.msra.mxu1 %v351_v5 }
  0x14   :  { %315 = vmatprep.subr.bf16.mxu0 %v352_v6  ;;  %332 = vmatprep.subr.bf16.mxu1 %v352_v6 }
  0x1b   :  { %316 = vmatpush3.bf16.xpose.msra.mxu0 %v353_v9  ;;  %340 = vmatpush3.bf16.xpose.msra.mxu1 %v353_v9 }
  0x1c   :  { %317 = vmatprep.subr.bf16.mxu0 %v354_v10  ;;  %333 = vmatprep.subr.bf16.mxu1 %v354_v10 }
  0x23   :  { %318 = vmatpush3.bf16.xpose.msra.mxu0 %v355_v11  ;;  %341 = vmatpush3.bf16.xpose.msra.mxu1 %v355_v11 }
  0x24   :  { %319 = vmatprep.subr.bf16.mxu0 %v356_v12  ;;  %334 = vmatprep.subr.bf16.mxu1 %v356_v12 }
  0x2b   :  { %320 = vmatpush3.bf16.xpose.msra.mxu0 %v357_v13  ;;  %342 = vmatpush3.bf16.xpose.msra.mxu1 %v357_v13 }
  0x2c   :  { %321 = vmatprep.subr.bf16.mxu0 %v358_v14  ;;  %335 = vmatprep.subr.bf16.mxu1 %v358_v14 }
  0x33   :  { %322 = vmatpush3.bf16.xpose.msra.mxu0 %v359_v15  ;;  %343 = vmatpush3.bf16.xpose.msra.mxu1 %v359_v15 }
  0x34   :  { %323 = vmatprep.subr.bf16.mxu0 %v360_v16  ;;  %336 = vmatprep.subr.bf16.mxu1 %v360_v16 }
  0x3b   :  { %324 = vmatpush3.bf16.xpose.msra.mxu0 %v361_v17  ;;  %344 = vmatpush3.bf16.xpose.msra.mxu1 %v361_v17 }
  0x42   :  { %326 = vmatmul.mubr.bf16.vlgmr.msra.gmra.mrb[0].mxu0 %v362_v7  ;;  %328 = vmatmul.mubr.bf16.vlgmr.msra.gmra.mrb[0].mxu1 %v363_v8 }
 0x115   :  { %v213_v24 = vpop.f32.mrb[0].mxu0  ;;  %v223_v25 = vpop.f32.mrb[0].mxu1 }
 0x116   :  { %v215_v27 = vpop.f32.mrb[1].mxu0  ;;  %v225_v28 = vpop.f32.mrb[1].mxu1  ;;  %v271_v31 = vadd.f32 %v264_v23, %v213_v24  ;;  %v275_v32 = vadd.f32 %v264_v23, %v223_v25 }
 0x117   :  { %v217_v29 = vpop.f32.mrb[2].mxu0  ;;  %v227_v30 = vpop.f32.mrb[2].mxu1  ;;  %v272_v35 = vadd.f32 %v268_v26, %v215_v27  ;;  %v276_v36 = vadd.f32 %v268_v26, %v225_v28 }
 0x118   :  { %v219_v33 = vpop.f32.mrb[3].mxu0  ;;  %v229_v34 = vpop.f32.mrb[3].mxu1  ;;  %279 = vst [vmem:[%s468_s3] sm:$0xff] %v271_v31  ;;  %283 = vst [vmem:[%s468_s3 + $0x20] sm:$0xff] %v275_v32  ;;  %v273_v37 = vadd.f32 %v264_v23, %v217_v29  ;;  %v277_v38 = vadd.f32 %v264_v23, %v227_v30 }
 0x119   :  { %280 = vst [vmem:[%s468_s3 + $0x8] sm:$0xff] %v272_v35  ;;  %284 = vst [vmem:[%s468_s3 + $0x28] sm:$0xff] %v276_v36  ;;  %v274_v39 = vadd.f32 %v268_v26, %v219_v33  ;;  %v278_v40 = vadd.f32 %v268_v26, %v229_v34 }
 0x11a   :  { %281 = vst [vmem:[%s468_s3 + $0x10] sm:$0xff] %v273_v37  ;;  %285 = vst [vmem:[%s468_s3 + $0x30] sm:$0xff] %v277_v38 }
 0x11b   :  { %282 = vst [vmem:[%s468_s3 + $0x18] sm:$0xff] %v274_v39  ;;  %286 = vst [vmem:[%s468_s3 + $0x38] sm:$0xff] %v278_v40 }

// kernel: transformer_xl_forward.15
= control target key start
LH: loop header
LB: loop body
LE: loop exit
PB: predicated region body
PF: predicated region fallthrough
CT: control target
= control target key end

     0   :  { %v1084_v1 = vmov 0   ;;  %s1357_s1 = inlined_call_operand.vmem [shape: bf16[128,512], index: 1, kind: input, shape index: {}]   ;;  %s1358_s3 = inlined_call_operand.vmem [shape: bf16[512,128], index: 3, kind: input, shape index: {}]   ;;  %s1359_s0 = inlined_call_operand.vmem [shape: bf16[32,128], index: 0, kind: input, shape index: {}]   ;;  %s1360_s2 = inlined_call_operand.vmem [shape: f32[1,512], index: 2, kind: input, shape index: {}]   ;;  %s1361_s4 = inlined_call_operand.vmem [shape: f32[1,128], index: 4, kind: input, shape index: {}]   ;;  %s1362_s5 = inlined_call_operand.vmem [shape: f32[1,128], index: 5, kind: input, shape index: {}]   ;;  %s1363_s6 = inlined_call_operand.vmem [shape: f32[1,128], index: 6, kind: input, shape index: {}]   ;;  %s1364_s7 = inlined_call_operand.vmem [shape: bf16[32,128], index: 7, kind: output, shape index: {}]  }
   0x1   :  { %v992_v0 = vld [vmem:[%s1357_s1 + $0x4] ss:$16 sps:$4 sm:$0xff]   ;;  %289 = vmatprep.mubr.bf16.mxu0 %v1084_v1  ;;  %342 = vmatprep.mubr.bf16.mxu1 %v1084_v1  ;;  %v994_v2 = vld [vmem:[%s1357_s1 + $0xc] ss:$16 sps:$4 sm:$0xff]   ;;  %v996_v3 = vld [vmem:[%s1357_s1] ss:$16 sps:$4 sm:$0xff]  }
   0x2   :  { %257 = vmatprep.subr.bf16.mxu0 %v992_v0  ;;  %v997_v4 = vld [vmem:[%s1357_s1 + $0x8] ss:$16 sps:$4 sm:$0xff]   ;;  %310 = vmatprep.subr.bf16.mxu1 %v994_v2  ;;  %v998_v5 = vld [vmem:[%s1357_s1 + $0x24] ss:$16 sps:$4 sm:$0xff]   ;;  %v1000_v6 = vld [vmem:[%s1357_s1 + $0x2c] ss:$16 sps:$4 sm:$0xff]  }
   0x3   :  { %258 = vmatpush1.bf16.msra.mxu0 %v996_v3  ;;  %311 = vmatpush1.bf16.msra.mxu1 %v997_v4  ;;  %v1002_v7 = vld [vmem:[%s1357_s1 + $0x20] ss:$16 sps:$4 sm:$0xff]   ;;  %v1003_v8 = vld [vmem:[%s1357_s1 + $0x28] ss:$16 sps:$4 sm:$0xff]   ;;  %v1004_v9 = vld [vmem:[%s1357_s1 + $0x44] ss:$16 sps:$4 sm:$0xff]   ;;  %v65_v3 = vlaneseq }
   0x4   :  { %259 = vmatprep.subr.bf16.mxu0 %v998_v5  ;;  %312 = vmatprep.subr.bf16.mxu1 %v1000_v6  ;;  %v1006_v10 = vld [vmem:[%s1357_s1 + $0x4c] ss:$16 sps:$4 sm:$0xff]   ;;  %v1008_v11 = vld [vmem:[%s1357_s1 + $0x40] ss:$16 sps:$4 sm:$0xff]   ;;  %v1009_v12 = vld [vmem:[%s1357_s1 + $0x48] ss:$16 sps:$4 sm:$0xff]  }
   0x5   :  { %v1010_v13 = vld [vmem:[%s1357_s1 + $0x64] ss:$16 sps:$4 sm:$0xff]   ;;  %v1012_v14 = vld [vmem:[%s1357_s1 + $0x6c] ss:$16 sps:$4 sm:$0xff]   ;;  %v1014_v15 = vld [vmem:[%s1357_s1 + $0x60] ss:$16 sps:$4 sm:$0xff]  }
   0x6   :  { %v1015_v16 = vld [vmem:[%s1357_s1 + $0x68] ss:$16 sps:$4 sm:$0xff]   ;;  %v1016_v17 = vld [vmem:[%s1357_s1 + $0x84] ss:$16 sps:$4 sm:$0xff]   ;;  %v1018_v18 = vld [vmem:[%s1357_s1 + $0x8c] ss:$16 sps:$4 sm:$0xff]  }
   0x7   :  { %260 = vmatpush1.bf16.msra.mxu0 %v1002_v7  ;;  %313 = vmatpush1.bf16.msra.mxu1 %v1003_v8  ;;  %v1020_v19 = vld [vmem:[%s1357_s1 + $0x80] ss:$16 sps:$4 sm:$0xff]   ;;  %v1021_v20 = vld [vmem:[%s1357_s1 + $0x88] ss:$16 sps:$4 sm:$0xff]   ;;  %v1022_v21 = vld [vmem:[%s1357_s1 + $0xa4] ss:$16 sps:$4 sm:$0xff]  }
   0x8   :  { %261 = vmatprep.subr.bf16.mxu0 %v1004_v9  ;;  %314 = vmatprep.subr.bf16.mxu1 %v1006_v10  ;;  %v1024_v22 = vld [vmem:[%s1357_s1 + $0xac] ss:$16 sps:$4 sm:$0xff]   ;;  %v1026_v23 = vld [vmem:[%s1357_s1 + $0xa0] ss:$16 sps:$4 sm:$0xff]   ;;  %v1027_v24 = vld [vmem:[%s1357_s1 + $0xa8] ss:$16 sps:$4 sm:$0xff]  }
   0x9   :  { %v1028_v25 = vld [vmem:[%s1357_s1 + $0xc4] ss:$16 sps:$4 sm:$0xff]   ;;  %v1030_v26 = vld [vmem:[%s1357_s1 + $0xcc] ss:$16 sps:$4 sm:$0xff]   ;;  %v1032_v27 = vld [vmem:[%s1357_s1 + $0xc0] ss:$16 sps:$4 sm:$0xff]  }
   0xa   :  { %v1033_v28 = vld [vmem:[%s1357_s1 + $0xc8] ss:$16 sps:$4 sm:$0xff]   ;;  %v1034_v29 = vld [vmem:[%s1357_s1 + $0xe4] ss:$16 sps:$4 sm:$0xff]   ;;  %v1036_v30 = vld [vmem:[%s1357_s1 + $0xec] ss:$16 sps:$4 sm:$0xff]  }
   0xb   :  { %262 = vmatpush1.bf16.msra.mxu0 %v1008_v11  ;;  %315 = vmatpush1.bf16.msra.mxu1 %v1009_v12  ;;  %v1038_v31 = vld [vmem:[%s1357_s1 + $0xe0] ss:$16 sps:$4 sm:$0xff]   ;;  %v1039_v32 = vld [vmem:[%s1357_s1 + $0xe8] ss:$16 sps:$4 sm:$0xff]   ;;  %v66_v4 = vshrl.u32 %v65_v3, 7 }
   0xc   :  { %263 = vmatprep.subr.bf16.mxu0 %v1010_v13  ;;  %316 = vmatprep.subr.bf16.mxu1 %v1012_v14  ;;  %v1226_v33 = vld [vmem:[%s1359_s0] sm:$0xff]   ;;  %v1046_v38 = vld [vmem:[%s1358_s3 + $0x48] sm:$0xff]   ;;  %v1050_v43 = vld [vmem:[%s1358_s3 + $0x50] sm:$0xff]  }
   0xd   :  { %v1042_v34 = vld [vmem:[%s1358_s3 + $0x40] sm:$0xff]   ;;  %v1246_v39 = vld [vmem:[%s1359_s0 + $0x8] sm:$0xff]   ;;  %v1051_v44 = vld [vmem:[%s1358_s3 + $0xd0] sm:$0xff]   ;;  %v67_v5 = vsub.s32 0, %v66_v4  ;;  %v75_v6 = vsub.s32 2, %v66_v4  ;;  %v71_v8 = vsub.s32 1, %v66_v4 }
   0xe   :  { %v1043_v35 = vld [vmem:[%s1358_s3 + $0xc0] sm:$0xff]   ;;  %v1047_v40 = vld [vmem:[%s1358_s3 + $0xc8] sm:$0xff]   ;;  %v1052_v45 = vld [vmem:[%s1358_s3 + $0x10] sm:$0xff]   ;;  %v79_v9 = vsub.s32 3, %v66_v4 }
   0xf   :  { %264 = vmatpush1.bf16.msra.mxu0 %v1014_v15  ;;  %317 = vmatpush1.bf16.msra.mxu1 %v1015_v16  ;;  %v1044_v36 = vld [vmem:[%s1358_s3] sm:$0xff]   ;;  %v1048_v41 = vld [vmem:[%s1358_s3 + $0x8] sm:$0xff]   ;;  %v1053_v46 = vld [vmem:[%s1358_s3 + $0x90] sm:$0xff]  }
  0x10   :  { %265 = vmatprep.subr.bf16.mxu0 %v1016_v17  ;;  %318 = vmatprep.subr.bf16.mxu1 %v1018_v18  ;;  %v1045_v37 = vld [vmem:[%s1358_s3 + $0x80] sm:$0xff]   ;;  %v1049_v42 = vld [vmem:[%s1358_s3 + $0x88] sm:$0xff]   ;;  %v1054_v47 = vld [vmem:[%s1358_s3 + $0x58] sm:$0xff]  }
  0x11   :  { %v1055_v48 = vld [vmem:[%s1358_s3 + $0xd8] sm:$0xff]   ;;  %v1058_v51 = vld [vmem:[%s1358_s3 + $0x60] sm:$0xff]   ;;  %v1062_v55 = vld [vmem:[%s1358_s3 + $0x68] sm:$0xff]  }
  0x12   :  { %v1056_v49 = vld [vmem:[%s1358_s3 + $0x18] sm:$0xff]   ;;  %v1059_v52 = vld [vmem:[%s1358_s3 + $0xe0] sm:$0xff]   ;;  %v1063_v56 = vld [vmem:[%s1358_s3 + $0xe8] sm:$0xff]  }
  0x13   :  { %266 = vmatpush1.bf16.msra.mxu0 %v1020_v19  ;;  %319 = vmatpush1.bf16.msra.mxu1 %v1021_v20  ;;  %v1057_v50 = vld [vmem:[%s1358_s3 + $0x98] sm:$0xff]   ;;  %v1060_v53 = vld [vmem:[%s1358_s3 + $0x20] sm:$0xff]   ;;  %v1064_v57 = vld [vmem:[%s1358_s3 + $0x28] sm:$0xff]  }
  0x14   :  { %267 = vmatprep.subr.bf16.mxu0 %v1022_v21  ;;  %320 = vmatprep.subr.bf16.mxu1 %v1024_v22  ;;  %v1061_v54 = vld [vmem:[%s1358_s3 + $0xa0] sm:$0xff]   ;;  %v1065_v58 = vld [vmem:[%s1358_s3 + $0xa8] sm:$0xff]   ;;  %v1066_v59 = vld [vmem:[%s1358_s3 + $0x70] sm:$0xff]  }
  0x15   :  { %v1067_v60 = vld [vmem:[%s1358_s3 + $0xf0] sm:$0xff]   ;;  %v1070_v63 = vld [vmem:[%s1358_s3 + $0x78] sm:$0xff]   ;;  %v63_v7 = vld [vmem:[%s1360_s2] sm:$0xf] }
  0x16   :  { %v1068_v61 = vld [vmem:[%s1358_s3 + $0x30] sm:$0xff]   ;;  %v1071_v0 = vld [vmem:[%s1358_s3 + $0xf8] sm:$0xff]   ;;  %v68_v10 = vrot.slane %v63_v7, %v67_v5  ;;  %v76_v11 = vrot.slane %v63_v7, %v75_v6  ;;  %v72_v12 = vrot.slane %v63_v7, %v71_v8  ;;  %v80_v13 = vrot.slane %v63_v7, %v79_v9 }
  0x17   :  { %268 = vmatpush1.bf16.msra.mxu0 %v1026_v23  ;;  %321 = vmatpush1.bf16.msra.mxu1 %v1027_v24  ;;  %v1069_v62 = vld [vmem:[%s1358_s3 + $0xb0] sm:$0xff]   ;;  %v1073_v2 = vld [vmem:[%s1358_s3 + $0xb8] sm:$0xff]  }
  0x18   :  { %269 = vmatprep.subr.bf16.mxu0 %v1028_v25  ;;  %322 = vmatprep.subr.bf16.mxu1 %v1030_v26 }
  0x1b   :  { %270 = vmatpush1.bf16.msra.mxu0 %v1032_v27  ;;  %323 = vmatpush1.bf16.msra.mxu1 %v1033_v28 }
  0x1c   :  { %271 = vmatprep.subr.bf16.mxu0 %v1034_v29  ;;  %324 = vmatprep.subr.bf16.mxu1 %v1036_v30 }
  0x1f   :  { %272 = vmatpush1.bf16.msra.mxu0 %v1038_v31  ;;  %325 = vmatpush1.bf16.msra.mxu1 %v1039_v32 }
  0x20   :  { %935 = vmatprep.subr.bf16.mxu0 %v1042_v34  ;;  %963 = vmatprep.subr.bf16.mxu1 %v1043_v35 }
  0x22   :  { %290 = vmatmul.mubr.bf16.vlgmr.msra.gmra.mrb[0].mxu0 %v1226_v33  ;;  %343 = vmatmul.mubr.bf16.vlgmr.msra.gmra.mrb[0].mxu1 %v1226_v33 }
  0x23   :  { %299 = vmatprep.mubr.bf16.mxu0 %v1084_v1  ;;  %352 = vmatprep.mubr.bf16.mxu1 %v1084_v1  ;;  %v1072_v1 = vld [vmem:[%s1358_s3 + $0x38] sm:$0xff]  }
  0x24   :  { %936 = vmatpush3.bf16.msra.mxu0 %v1044_v36  ;;  %964 = vmatpush3.bf16.msra.mxu1 %v1045_v37 }
  0x25   :  { %937 = vmatprep.subr.bf16.mxu0 %v1046_v38  ;;  %965 = vmatprep.subr.bf16.mxu1 %v1047_v40 }
  0x28   :  { %938 = vmatpush3.bf16.msra.mxu0 %v1048_v41  ;;  %966 = vmatpush3.bf16.msra.mxu1 %v1049_v42 }
  0x29   :  { %939 = vmatprep.subr.bf16.mxu0 %v1050_v43  ;;  %967 = vmatprep.subr.bf16.mxu1 %v1051_v44 }
  0x2a   :  { %300 = vmatmul.mubr.bf16.gmra.mrb[4].mxu0 %v1246_v39  ;;  %353 = vmatmul.mubr.bf16.gmra.mrb[4].mxu1 %v1246_v39 }
  0x2c   :  { %940 = vmatpush3.bf16.msra.mxu0 %v1052_v45  ;;  %968 = vmatpush3.bf16.msra.mxu1 %v1053_v46 }
  0x2d   :  { %941 = vmatprep.subr.bf16.mxu0 %v1054_v47  ;;  %969 = vmatprep.subr.bf16.mxu1 %v1055_v48 }
  0x30   :  { %942 = vmatpush3.bf16.msra.mxu0 %v1056_v49  ;;  %970 = vmatpush3.bf16.msra.mxu1 %v1057_v50 }
  0x31   :  { %943 = vmatprep.subr.bf16.mxu0 %v1058_v51  ;;  %971 = vmatprep.subr.bf16.mxu1 %v1059_v52 }
  0x34   :  { %944 = vmatpush3.bf16.msra.mxu0 %v1060_v53  ;;  %972 = vmatpush3.bf16.msra.mxu1 %v1061_v54 }
  0x35   :  { %945 = vmatprep.subr.bf16.mxu0 %v1062_v55  ;;  %973 = vmatprep.subr.bf16.mxu1 %v1063_v56 }
  0x38   :  { %946 = vmatpush3.bf16.msra.mxu0 %v1064_v57  ;;  %974 = vmatpush3.bf16.msra.mxu1 %v1065_v58 }
  0x39   :  { %947 = vmatprep.subr.bf16.mxu0 %v1066_v59  ;;  %975 = vmatprep.subr.bf16.mxu1 %v1067_v60 }
  0x3c   :  { %948 = vmatpush3.bf16.msra.mxu0 %v1068_v61  ;;  %976 = vmatpush3.bf16.msra.mxu1 %v1069_v62 }
  0x3d   :  { %949 = vmatprep.subr.bf16.mxu0 %v1070_v63  ;;  %977 = vmatprep.subr.bf16.mxu1 %v1071_v0 }
  0x40   :  { %950 = vmatpush3.bf16.msra.mxu0 %v1072_v1  ;;  %978 = vmatpush3.bf16.msra.mxu1 %v1073_v2 }
  0xf5   :  { %v291_v14 = vpop.f32.mrb[0].mxu0  ;;  %v344_v15 = vpop.f32.mrb[0].mxu1 }
  0xf6   :  { %v292_v16 = vadd.f32 %v291_v14, %v68_v10  ;;  %v345_v17 = vadd.f32 %v344_v15, %v76_v11  ;;  %v293_v18 = vpop.f32.mrb[1].mxu0  ;;  %v346_v19 = vpop.f32.mrb[1].mxu1 }
  0xf7   :  { %v294_v20 = vadd.f32 %v293_v18, %v72_v12  ;;  %v347_v21 = vadd.f32 %v346_v19, %v80_v13  ;;  %v295_v22 = vpop.f32.mrb[2].mxu0  ;;  %v348_v23 = vpop.f32.mrb[2].mxu1 }
  0xf8   :  { %v365_v24 = vmax.f32 %v345_v17, 0.0  ;;  %v296_v25 = vadd.f32 %v295_v22, %v68_v10  ;;  %v349_v26 = vadd.f32 %v348_v23, %v76_v11  ;;  %v297_v27 = vpop.f32.mrb[3].mxu0  ;;  %v350_v28 = vpop.f32.mrb[3].mxu1  ;;  %v363_v32 = vmax.f32 %v292_v16, 0.0 }
  0xf9   :  { %v366_v29 = vmax.f32 %v347_v21, 0.0  ;;  %v298_v30 = vadd.f32 %v297_v27, %v72_v12  ;;  %v351_v31 = vadd.f32 %v350_v28, %v80_v13  ;;  %v364_v36 = vmax.f32 %v294_v20, 0.0 }
  0xfa   :  { %v367_v34 = vmax.f32 %v296_v25, 0.0  ;;  %v369_v35 = vmax.f32 %v349_v26, 0.0  ;;  %v748_v22 = vunpack.c.l.bf16 %v1226_v33 }
  0xfb   :  { %v368_v37 = vmax.f32 %v298_v30, 0.0  ;;  %v370_v38 = vmax.f32 %v351_v31, 0.0 }
  0xfc   :  { %v379_v40 = vpack.c.bf16 %v367_v34, %v363_v32  ;;  %v381_v41 = vpack.c.bf16 %v369_v35, %v365_v24 }
  0xfd   :  { %v380_v42 = vpack.c.bf16 %v368_v37, %v364_v36  ;;  %v382_v43 = vpack.c.bf16 %v370_v38, %v366_v29  ;;  %v301_v44 = vpop.f32.mrb[4].mxu0  ;;  %v354_v45 = vpop.f32.mrb[4].mxu1  ;;  %v749_v29 = vunpack.c.h.bf16 %v1226_v33 }
  0xfe   :  { %v302_v46 = vadd.f32 %v301_v44, %v68_v10  ;;  %v355_v47 = vadd.f32 %v354_v45, %v76_v11  ;;  %v303_v48 = vpop.f32.mrb[5].mxu0  ;;  %v356_v49 = vpop.f32.mrb[5].mxu1 }
  0xff   :  { %v304_v50 = vadd.f32 %v303_v48, %v72_v12  ;;  %v357_v51 = vadd.f32 %v356_v49, %v80_v13  ;;  %v305_v52 = vpop.f32.mrb[6].mxu0  ;;  %v358_v53 = vpop.f32.mrb[6].mxu1  ;;  %682 = vmatprep.mubr.bf16.mxu0 %v380_v42  ;;  %731 = vmatprep.mubr.bf16.mxu1 %v382_v43  ;;  %v751_v48 = vunpack.c.h.bf16 %v1246_v39 }
 0x100   :  { %v373_v54 = vmax.f32 %v355_v47, 0.0  ;;  %v306_v55 = vadd.f32 %v305_v52, %v68_v10  ;;  %v359_v56 = vadd.f32 %v358_v53, %v76_v11  ;;  %v307_v57 = vpop.f32.mrb[7].mxu0  ;;  %v360_v58 = vpop.f32.mrb[7].mxu1  ;;  %683 = vmatmul.mubr.bf16.vlgmr.msra.gmra.mrb[8].mxu0 %v379_v40  ;;  %732 = vmatmul.mubr.bf16.vlgmr.msra.gmra.mrb[8].mxu1 %v381_v41  ;;  %v371_v62 = vmax.f32 %v302_v46, 0.0  ;;  %v881_v10 = vld [vmem:[%s1361_s4] ss:$0 sm:$0xff] }
 0x101   :  { %v374_v59 = vmax.f32 %v357_v51, 0.0  ;;  %v308_v60 = vadd.f32 %v307_v57, %v72_v12  ;;  %v361_v61 = vadd.f32 %v360_v58, %v80_v13  ;;  %v372_v1 = vmax.f32 %v304_v50, 0.0 }
 0x102   :  { %v375_v63 = vmax.f32 %v306_v55, 0.0  ;;  %v377_v0 = vmax.f32 %v359_v56, 0.0  ;;  %v750_v40 = vunpack.c.l.bf16 %v1246_v39 }
 0x103   :  { %v376_v2 = vmax.f32 %v308_v60, 0.0  ;;  %v378_v3 = vmax.f32 %v361_v61, 0.0 }
 0x104   :  { %v383_v4 = vpack.c.bf16 %v375_v63, %v371_v62  ;;  %v385_v5 = vpack.c.bf16 %v377_v0, %v373_v54 }
 0x105   :  { %v384_v6 = vpack.c.bf16 %v376_v2, %v372_v1  ;;  %v386_v7 = vpack.c.bf16 %v378_v3, %v374_v59 }
 0x107   :  { %690 = vmatprep.mubr.bf16.mxu0 %v384_v6  ;;  %739 = vmatprep.mubr.bf16.mxu1 %v386_v7 }
 0x108   :  { %691 = vmatmul.mubr.bf16.gmra.mrb[12].mxu0 %v383_v4  ;;  %740 = vmatmul.mubr.bf16.gmra.mrb[12].mxu1 %v385_v5 }
 0x1d3   :  { %v951_v8 = vpop.f32.mrb[8].mxu0  ;;  %v979_v9 = vpop.f32.mrb[8].mxu1 }
 0x1d4   :  { %v952_v11 = vpop.f32.mrb[9].mxu0  ;;  %v980_v12 = vpop.f32.mrb[9].mxu1 }
 0x1d5   :  { %v953_v13 = vadd.f32 %v952_v11, %v951_v8  ;;  %v981_v14 = vadd.f32 %v980_v12, %v979_v9  ;;  %v954_v15 = vpop.f32.mrb[10].mxu0  ;;  %v982_v16 = vpop.f32.mrb[10].mxu1 }
 0x1d6   :  { %v955_v17 = vpop.f32.mrb[11].mxu0  ;;  %v983_v18 = vpop.f32.mrb[11].mxu1 }
 0x1d7   :  { %v685_v19 = vadd.f32 %v953_v13, %v881_v10  ;;  %v956_v20 = vadd.f32 %v955_v17, %v954_v15  ;;  %v984_v21 = vadd.f32 %v983_v18, %v982_v16  ;;  %v914_v15 = vld [vmem:[%s1362_s5] ss:$0 sm:$0xff] }
 0x1d9   :  { %v734_v23 = vadd.f32 %v981_v14, %v685_v19  ;;  %v688_v24 = vadd.f32 %v956_v20, %v881_v10  ;;  %v915_v19 = vld [vmem:[%s1363_s6] ss:$0 sm:$0xff] }
 0x1db   :  { %v737_v25 = vadd.f32 %v984_v21, %v688_v24  ;;  %v957_v26 = vpop.f32.mrb[12].mxu0  ;;  %v985_v27 = vpop.f32.mrb[12].mxu1  ;;  %v752_v28 = vadd.f32 %v748_v22, %v734_v23 }
 0x1dc   :  { %v958_v30 = vpop.f32.mrb[13].mxu0  ;;  %v986_v31 = vpop.f32.mrb[13].mxu1 }
 0x1dd   :  { %v959_v32 = vadd.f32 %v958_v30, %v957_v26  ;;  %v987_v34 = vadd.f32 %v986_v31, %v985_v27  ;;  %v960_v35 = vpop.f32.mrb[14].mxu0  ;;  %v988_v36 = vpop.f32.mrb[14].mxu1  ;;  %756 = vadd.xlane.f32.xlu0 %v752_v28  ;;  %v753_v44 = vadd.f32 %v749_v29, %v737_v25 }
 0x1de   :  { %v961_v37 = vpop.f32.mrb[15].mxu0  ;;  %v989_v38 = vpop.f32.mrb[15].mxu1 }
 0x1df   :  { %v693_v41 = vadd.f32 %v959_v32, %v881_v10  ;;  %v962_v42 = vadd.f32 %v961_v37, %v960_v35  ;;  %v990_v43 = vadd.f32 %v989_v38, %v988_v36 }
 0x1e1   :  { %v742_v45 = vadd.f32 %v987_v34, %v693_v41  ;;  %v696_v46 = vadd.f32 %v962_v42, %v881_v10  ;;  %758 = vadd.xlane.f32.xlu0 %v753_v44 }
 0x1e3   :  { %v745_v47 = vadd.f32 %v990_v43, %v696_v46  ;;  %v754_v33 = vadd.f32 %v750_v40, %v742_v45 }
 0x1e5   :  { %760 = vadd.xlane.f32.xlu1 %v754_v33  ;;  %v755_v49 = vadd.f32 %v751_v48, %v745_v47 }
 0x1e9   :  { %762 = vadd.xlane.f32.xlu1 %v755_v49 }
 0x26a   :  { %v757_v50 = vpop.xlane.xlu0 %756 }
 0x26b   :  { %v765_v51 = vmul.f32 0.0078125, %v757_v50 }
 0x26d   :  { %v769_v52 = vsub.f32 %v752_v28, %v765_v51 }
 0x26e   :  { %v759_v53 = vpop.xlane.xlu0 %758 }
 0x26f   :  { %v766_v54 = vmul.f32 0.0078125, %v759_v53  ;;  %v773_v55 = vmul.f32 %v769_v52, %v769_v52 }
 0x271   :  { %v770_v56 = vsub.f32 %v753_v44, %v766_v54  ;;  %777 = vadd.xlane.f32.xlu0 %v773_v55 }
 0x272   :  { %v761_v57 = vpop.xlane.xlu1 %760 }
 0x273   :  { %v767_v58 = vmul.f32 0.0078125, %v761_v57  ;;  %v774_v59 = vmul.f32 %v770_v56, %v770_v56 }
 0x275   :  { %v771_v60 = vsub.f32 %v754_v33, %v767_v58  ;;  %779 = vadd.xlane.f32.xlu1 %v774_v59 }
 0x276   :  { %v763_v61 = vpop.xlane.xlu1 %762 }
 0x277   :  { %v768_v62 = vmul.f32 0.0078125, %v763_v61  ;;  %v775_v63 = vmul.f32 %v771_v60, %v771_v60 }
 0x279   :  { %v772_v39 = vsub.f32 %v755_v49, %v768_v62  ;;  %781 = vadd.xlane.f32.xlu0 %v775_v63 }
 0x27b   :  { %v776_v0 = vmul.f32 %v772_v39, %v772_v39 }
 0x27d   :  { %783 = vadd.xlane.f32.xlu1 %v776_v0 }
 0x2fe   :  { %v778_v1 = vpop.xlane.xlu0 %777 }
 0x2ff   :  { %v785_v2 = vmul.f32 0.0078125, %v778_v1 }
 0x301   :  { %v789_v3 = vadd.f32 1e-05, %v785_v2 }
 0x302   :  { %v780_v4 = vpop.xlane.xlu1 %779 }
 0x303   :  { %1076 = vrsqrt.f32 %v789_v3  ;;  %v786_v5 = vmul.f32 0.0078125, %v780_v4 }
 0x305   :  { %v790_v6 = vadd.f32 1e-05, %v786_v5 }
 0x306   :  { %v782_v7 = vpop.xlane.xlu0 %781 }
 0x307   :  { %1078 = vrsqrt.f32 %v790_v6  ;;  %v787_v8 = vmul.f32 0.0078125, %v782_v7 }
 0x309   :  { %v791_v9 = vadd.f32 1e-05, %v787_v8 }
 0x30a   :  { %v784_v10 = vpop.xlane.xlu1 %783 }
 0x30b   :  { %1080 = vrsqrt.f32 %v791_v9  ;;  %v788_v11 = vmul.f32 0.0078125, %v784_v10 }
 0x30d   :  { %v1077_v12 = vpop.eup %1076  ;;  %v792_v13 = vadd.f32 1e-05, %v788_v11 }
 0x30e   :  { %v797_v14 = vmul.f32 %v1077_v12, %v769_v52 }
 0x30f   :  { %1082 = vrsqrt.f32 %v792_v13 }
 0x310   :  { %v808_v17 = vmul.f32 %v914_v15, %v797_v14 }
 0x311   :  { %v1079_v16 = vpop.eup %1078 }
 0x312   :  { %v798_v18 = vmul.f32 %v1079_v16, %v770_v56  ;;  %v819_v22 = vadd.f32 %v915_v19, %v808_v17 }
 0x314   :  { %v809_v20 = vmul.f32 %v914_v15, %v798_v18 }
 0x315   :  { %v1081_v21 = vpop.eup %1080 }
 0x316   :  { %v820_v23 = vadd.f32 %v915_v19, %v809_v20  ;;  %v799_v24 = vmul.f32 %v1081_v21, %v771_v60 }
 0x318   :  { %v927_v25 = vpack.c.bf16 %v820_v23, %v819_v22  ;;  %v810_v27 = vmul.f32 %v914_v15, %v799_v24 }
 0x319   :  { %v1083_v26 = vpop.eup %1082 }
 0x31a   :  { %928 = vst [vmem:[%s1364_s7] sm:$0xff] %v927_v25   ;;  %v800_v28 = vmul.f32 %v1083_v26, %v772_v39  ;;  %v821_v30 = vadd.f32 %v915_v19, %v810_v27 }
 0x31c   :  { %v811_v29 = vmul.f32 %v914_v15, %v800_v28 }
 0x31e   :  { %v822_v31 = vadd.f32 %v915_v19, %v811_v29 }
 0x320   :  { %v932_v32 = vpack.c.bf16 %v822_v31, %v821_v30 }
 0x322   :  { %934 = vst [vmem:[%s1364_s7 + $0x8] sm:$0xff] %v932_v32  }

</bundles_post_ra>
